<compile_context>
chip_gen: v5e
topology: v5e:2x2
jax: 0.10.0
libtpu: 0.0.40
codegen_flags: <defaults>
</compile_context>

<pallas_src>
import jax
import jax.numpy as jnp
from jax.experimental import pallas as pl
from jax.experimental.pallas import tpu as pltpu


# ---------------------------------------------------------------------------
# Kernel 1: ConvTranspose2d(kernel_size=2, stride=2) + bias, all 4 taps fused
# into a single matmul.  Output is lane-dense (1, 4*Cout, H*W); the spatial
# 2x interleave is a cheap XLA reshape/transpose in the wrapper.
# ---------------------------------------------------------------------------
def _convT_kernel(x_ref, w_ref, b_ref, o_ref):
    # x_ref: (1, Cin, H, W); w_ref: (4*Cout, Cin) rows ordered (ki, kj, co)
    # b_ref: (4*Cout, 1);    o_ref: (1, 4*Cout, H*W)  lane-dense
    cin, h, w = x_ref.shape[1], x_ref.shape[2], x_ref.shape[3]
    x_flat = x_ref[0].reshape(cin, h * w)                       # (Cin, H*W)
    y = jnp.dot(w_ref[...], x_flat, preferred_element_type=jnp.float32)
    o_ref[0] = y + b_ref[...]                                   # (4*Cout, H*W)


def conv_transpose_2x2(x, weight, bias):
    """x: (B, Cin, H, W); weight: (Cin, Cout, 2, 2); bias: (Cout,).
    Returns (B, Cout, 2H, 2W)."""
    B, Cin, H, W = x.shape
    Cout = weight.shape[1]
    # Row r = ki*(2*Cout) + kj*Cout + co ; W2d[r, ci] = weight[ci, co, ki, kj]
    w2d = jnp.transpose(weight, (2, 3, 1, 0)).reshape(4 * Cout, Cin)
    b2d = jnp.tile(bias, 4).reshape(4 * Cout, 1)

    flops = 2 * B * (4 * Cout) * Cin * H * W
    bytes_accessed = 4 * (B * Cin * H * W + 4 * Cout * Cin
                          + 4 * Cout + B * 4 * Cout * H * W)

    y = pl.pallas_call(
        _convT_kernel,
        out_shape=jax.ShapeDtypeStruct((B, 4 * Cout, H * W), jnp.float32),
        grid=(B,),
        in_specs=[
            pl.BlockSpec((1, Cin, H, W), lambda b: (b, 0, 0, 0)),
            pl.BlockSpec((4 * Cout, Cin), lambda b: (0, 0)),
            pl.BlockSpec((4 * Cout, 1), lambda b: (0, 0)),
        ],
        out_specs=pl.BlockSpec((1, 4 * Cout, H * W), lambda b: (b, 0, 0)),
        compiler_params=pltpu.CompilerParams(dimension_semantics=("parallel",)),
        cost_estimate=pl.CostEstimate(flops=flops, transcendentals=0,
                                      bytes_accessed=bytes_accessed),
    )(x, w2d, b2d)

    # (B, ki, kj, Cout, H, W) -> (B, Cout, H, ki, W, kj) -> (B, Cout, 2H, 2W)
    y = y.reshape(B, 2, 2, Cout, H, W)
    y = jnp.transpose(y, (0, 3, 4, 1, 5, 2)).reshape(B, Cout, 2 * H, 2 * W)
    return y


# ---------------------------------------------------------------------------
# Kernel 2: fused DoubleConv on cat([x_up, x2], channel):
#   Conv3x3(pad=1, no bias) + folded BN + ReLU, twice, entirely in VMEM.
# Each 3x3 conv is a single im2col matmul (contraction depth 9*Cin).
# ---------------------------------------------------------------------------
def _pad_hw1(x):
    """Zero-pad a (C, H, W) value by 1 on each spatial side (stays in VMEM)."""
    c, h, w = x.shape
    zc = jnp.zeros((c, h, 1), x.dtype)
    x = jnp.concatenate([zc, x, zc], axis=2)
    zr = jnp.zeros((c, 1, w + 2), x.dtype)
    return jnp.concatenate([zr, x, zr], axis=1)


def _conv3x3_bn_relu(x_pad, w_ref, s_ref, t_ref):
    """x_pad: (C, H+2, W+2) value; w_ref: (Cout, 9*C) with columns ordered
    (dh, dw, c).  Returns lane-dense (Cout, H*W)."""
    c, hp, wp = x_pad.shape
    h, w = hp - 2, wp - 2
    patches = [x_pad[:, dh:dh + h, dw:dw + w].reshape(c, h * w)
               for dh in range(3) for dw in range(3)]
    im2col = jnp.concatenate(patches, axis=0)                   # (9*C, H*W)
    y = jnp.dot(w_ref[...], im2col, preferred_element_type=jnp.float32)
    return jnp.maximum(y * s_ref[...] + t_ref[...], 0.0)        # BN + ReLU


def _double_conv_kernel(xup_ref, x2_ref, w1_ref, s1_ref, t1_ref,
                        w2_ref, s2_ref, t2_ref, o_ref):
    # xup_ref: (1, Cmid, H, W); x2_ref: (1, C2, H, W); o_ref: (1, Cout, H*W)
    h, w = xup_ref.shape[2], xup_ref.shape[3]
    cout = o_ref.shape[1]
    x_cat = jnp.concatenate([xup_ref[0], x2_ref[0]], axis=0)    # channel concat
    y1 = _conv3x3_bn_relu(_pad_hw1(x_cat), w1_ref, s1_ref, t1_ref)
    y2 = _conv3x3_bn_relu(_pad_hw1(y1.reshape(cout, h, w)), w2_ref, s2_ref, t2_ref)
    o_ref[0] = y2                                               # lane-dense store


def double_conv_fused(x_up, x2, w1, bn1_scale, bn1_shift, w2, bn2_scale, bn2_shift):
    """x_up, x2: (B, Cmid, H, W) / (B, C2, H, W); w1: (Cout, Cmid+C2, 3, 3);
    w2: (Cout, Cout, 3, 3).  Returns (B, Cout, H, W)."""
    B, Cmid, H, W = x_up.shape
    C2 = x2.shape[1]
    Cin_tot = Cmid + C2
    Cout = w1.shape[0]
    assert w1.shape[1] == Cin_tot and w2.shape[1] == Cout

    # columns ordered (dh, dw, cin) to match the in-kernel im2col row order
    w1_2d = jnp.transpose(w1, (0, 2, 3, 1)).reshape(Cout, 9 * Cin_tot)
    w2_2d = jnp.transpose(w2, (0, 2, 3, 1)).reshape(Cout, 9 * Cout)
    s1 = bn1_scale.reshape(Cout, 1)
    t1 = bn1_shift.reshape(Cout, 1)
    s2 = bn2_scale.reshape(Cout, 1)
    t2 = bn2_shift.reshape(Cout, 1)

    flops = 2 * B * Cout * 9 * (Cin_tot + Cout) * H * W
    bytes_accessed = 4 * (B * (Cmid + C2 + Cout) * H * W
                          + 9 * Cout * (Cin_tot + Cout) + 4 * Cout)

    out = pl.pallas_call(
        _double_conv_kernel,
        out_shape=jax.ShapeDtypeStruct((B, Cout, H * W), jnp.float32),
        grid=(B,),
        in_specs=[
            pl.BlockSpec((1, Cmid, H, W), lambda b: (b, 0, 0, 0)),
            pl.BlockSpec((1, C2, H, W), lambda b: (b, 0, 0, 0)),
            pl.BlockSpec((Cout, 9 * Cin_tot), lambda b: (0, 0)),
            pl.BlockSpec((Cout, 1), lambda b: (0, 0)),
            pl.BlockSpec((Cout, 1), lambda b: (0, 0)),
            pl.BlockSpec((Cout, 9 * Cout), lambda b: (0, 0)),
            pl.BlockSpec((Cout, 1), lambda b: (0, 0)),
            pl.BlockSpec((Cout, 1), lambda b: (0, 0)),
        ],
        out_specs=pl.BlockSpec((1, Cout, H * W), lambda b: (b, 0, 0)),
        compiler_params=pltpu.CompilerParams(dimension_semantics=("parallel",)),
        cost_estimate=pl.CostEstimate(flops=flops, transcendentals=0,
                                      bytes_accessed=bytes_accessed),
    )(x_up, x2, w1_2d, s1, t1, w2_2d, s2, t2)
    return out.reshape(B, Cout, H, W)


# ---------------------------------------------------------------------------
# UpSample module in JAX/Pallas
# ---------------------------------------------------------------------------
def fold_bn(gamma, beta, running_mean, running_var, eps=1e-5):
    scale = gamma / jnp.sqrt(running_var + eps)
    shift = beta - running_mean * scale
    return scale, shift


def init_upsample_params(key, in_channels, out_channels):
    ks = jax.random.split(key, 10)
    p = {}
    # ConvTranspose2d(in, out, 2, 2): weight (Cin, Cout, 2, 2), bias (Cout,)
    p["up_w"] = jax.random.normal(ks[0], (in_channels, out_channels, 2, 2), jnp.float32) * 0.1
    p["up_b"] = jax.random.normal(ks[1], (out_channels,), jnp.float32) * 0.1
    # DoubleConv(in, out): conv1 (out, in, 3, 3), conv2 (out, out, 3, 3), no bias
    p["c1_w"] = jax.random.normal(ks[2], (out_channels, in_channels, 3, 3), jnp.float32) * 0.1
    p["c2_w"] = jax.random.normal(ks[3], (out_channels, out_channels, 3, 3), jnp.float32) * 0.1
    # BatchNorm2d params (eval-mode semantics with deterministic running stats)
    p["bn1_g"] = 1.0 + 0.1 * jax.random.normal(ks[4], (out_channels,), jnp.float32)
    p["bn1_b"] = 0.1 * jax.random.normal(ks[5], (out_channels,), jnp.float32)
    p["bn1_m"] = 0.05 * jax.random.normal(ks[6], (out_channels,), jnp.float32)
    p["bn1_v"] = jnp.ones((out_channels,), jnp.float32)
    p["bn2_g"] = 1.0 + 0.1 * jax.random.normal(ks[7], (out_channels,), jnp.float32)
    p["bn2_b"] = 0.1 * jax.random.normal(ks[8], (out_channels,), jnp.float32)
    p["bn2_m"] = 0.05 * jax.random.normal(ks[9], (out_channels,), jnp.float32)
    p["bn2_v"] = jnp.ones((out_channels,), jnp.float32)
    return p


def upsample_forward(params, x1, x2):
    # X1 = self.up(X1)
    x1_up = conv_transpose_2x2(x1, params["up_w"], params["up_b"])
    # cat + DoubleConv (Conv3x3->BN->ReLU->Conv3x3->BN->ReLU), fused in one kernel
    s1, t1 = fold_bn(params["bn1_g"], params["bn1_b"], params["bn1_m"], params["bn1_v"])
    s2, t2 = fold_bn(params["bn2_g"], params["bn2_b"], params["bn2_m"], params["bn2_v"])
    return double_conv_fused(x1_up, x2, params["c1_w"], s1, t1,
                             params["c2_w"], s2, t2)


if __name__ == "__main__":
    B = 2
    in_channels = 8
    out_channels = 4
    H1 = W1 = 8            # X1 spatial; after up -> 16x16 matching X2

    key = jax.random.PRNGKey(0)
    k_x1, k_x2, k_p = jax.random.split(key, 3)
    x1 = jax.random.normal(k_x1, (B, in_channels, H1, W1), jnp.float32)
    x2 = jax.random.normal(k_x2, (B, out_channels, 2 * H1, 2 * W1), jnp.float32)
    params = init_upsample_params(k_p, in_channels, out_channels)

    out = jax.jit(upsample_forward)(params, x1, x2)
    jax.block_until_ready(out)
    assert out.shape == (B, out_channels, 2 * H1, 2 * W1)
    print("KERNEL_OK")
</pallas_src>

<mosaic_0001>
module attributes {stable_mosaic.version = 11 : i64} {
  func.func @_convT_kernel(%arg0: i32, %arg1: memref<1x8x8x8xf32, #tpu.memory_space<vmem>>, %arg2: memref<16x8xf32, #tpu.memory_space<vmem>>, %arg3: memref<16x1xf32, #tpu.memory_space<vmem>>, %arg4: memref<1x16x64xf32, #tpu.memory_space<vmem>>) attributes {dimension_semantics = [#tpu.dimension_semantics<parallel>], iteration_bounds = array<i64: 2>, scalar_prefetch = 0 : i64, scratch_operands = 0 : i64, tpu.core_type = #tpu.core_type<tc>, window_params = [{transform_indices = @transform_0, window_bounds = array<i64: 1, 8, 8, 8>}, {pipeline_mode = #tpu.pipeline_mode<synchronous>, transform_indices = @transform_1, window_bounds = array<i64: 16, 8>}, {pipeline_mode = #tpu.pipeline_mode<synchronous>, transform_indices = @transform_2, window_bounds = array<i64: 16, 1>}, {transform_indices = @transform_3, window_bounds = array<i64: 1, 16, 64>}]} {
    %c0 = arith.constant 0 : index
    %c0_0 = arith.constant 0 : index
    %c0_1 = arith.constant 0 : index
    %c0_2 = arith.constant 0 : index
    %0 = vector.load %arg1[%c0, %c0_0, %c0_1, %c0_2] : memref<1x8x8x8xf32, #tpu.memory_space<vmem>>, vector<1x8x8x8xf32>
    %1 = vector.shape_cast %0 : vector<1x8x8x8xf32> to vector<8x8x8xf32>
    %2 = vector.shape_cast %1 : vector<8x8x8xf32> to vector<8x64xf32>
    %c0_3 = arith.constant 0 : index
    %c0_4 = arith.constant 0 : index
    %3 = vector.load %arg2[%c0_3, %c0_4] : memref<16x8xf32, #tpu.memory_space<vmem>>, vector<16x8xf32>
    %cst = arith.constant dense<0.000000e+00> : vector<16x64xf32>
    %4 = tpu.matmul %3, %2, %cst {dimension_numbers = #tpu.dot_dimension_numbers<[1], [0], [0], [1], [0, 0, 1, 1], [], []>} : vector<16x8xf32>, vector<8x64xf32>, vector<16x64xf32> -> vector<16x64xf32>
    %c0_5 = arith.constant 0 : index
    %c0_6 = arith.constant 0 : index
    %5 = vector.load %arg3[%c0_5, %c0_6] : memref<16x1xf32, #tpu.memory_space<vmem>>, vector<16x1xf32>
    %6 = vector.broadcast %5 : vector<16x1xf32> to vector<16x64xf32>
    %7 = arith.addf %4, %6 : vector<16x64xf32>
    %c0_7 = arith.constant 0 : index
    %c0_8 = arith.constant 0 : index
    %c0_9 = arith.constant 0 : index
    %8 = vector.load %arg4[%c0_7, %c0_8, %c0_9] : memref<1x16x64xf32, #tpu.memory_space<vmem>>, vector<1x16x64xf32>
    %9 = vector.shape_cast %8 : vector<1x16x64xf32> to vector<16x64xf32>
    %10 = vector.shape_cast %7 : vector<16x64xf32> to vector<1x16x64xf32>
    tpu.vector_store %arg4[%c0_7, %c0_8, %c0_9], %10 {strides = array<i32>} : memref<1x16x64xf32, #tpu.memory_space<vmem>>, vector<1x16x64xf32>,
    return
  }
  func.func @transform_0(%arg0: i32) -> (i32, i32, i32, i32) {
    %c0_i32 = arith.constant 0 : i32
    %c0_i32_0 = arith.constant 0 : i32
    %c0_i32_1 = arith.constant 0 : i32
    %c0_i32_2 = arith.constant 0 : i32
    return %arg0, %c0_i32, %c0_i32_0, %c0_i32_1 : i32, i32, i32, i32
  }
  func.func @transform_1(%arg0: i32) -> (i32, i32) {
    %c0_i32 = arith.constant 0 : i32
    %c0_i32_0 = arith.constant 0 : i32
    %c0_i32_1 = arith.constant 0 : i32
    return %c0_i32, %c0_i32_0 : i32, i32
  }
  func.func @transform_2(%arg0: i32) -> (i32, i32) {
    %c0_i32 = arith.constant 0 : i32
    %c0_i32_0 = arith.constant 0 : i32
    %c0_i32_1 = arith.constant 0 : i32
    return %c0_i32, %c0_i32_0 : i32, i32
  }
  func.func @transform_3(%arg0: i32) -> (i32, i32, i32) {
    %c0_i32 = arith.constant 0 : i32
    %c0_i32_0 = arith.constant 0 : i32
    %c0_i32_1 = arith.constant 0 : i32
    return %arg0, %c0_i32, %c0_i32_0 : i32, i32, i32
  }
}

module attributes {stable_mosaic.version = 11 : i64} {
  func.func @_double_conv_kernel(%arg0: i32, %arg1: memref<1x4x16x16xf32, #tpu.memory_space<vmem>>, %arg2: memref<1x4x16x16xf32, #tpu.memory_space<vmem>>, %arg3: memref<4x72xf32, #tpu.memory_space<vmem>>, %arg4: memref<4x1xf32, #tpu.memory_space<vmem>>, %arg5: memref<4x1xf32, #tpu.memory_space<vmem>>, %arg6: memref<4x36xf32, #tpu.memory_space<vmem>>, %arg7: memref<4x1xf32, #tpu.memory_space<vmem>>, %arg8: memref<4x1xf32, #tpu.memory_space<vmem>>, %arg9: memref<1x4x256xf32, #tpu.memory_space<vmem>>) attributes {dimension_semantics = [#tpu.dimension_semantics<parallel>], iteration_bounds = array<i64: 2>, scalar_prefetch = 0 : i64, scratch_operands = 0 : i64, tpu.core_type = #tpu.core_type<tc>, window_params = [{transform_indices = @transform_0, window_bounds = array<i64: 1, 4, 16, 16>}, {transform_indices = @transform_1, window_bounds = array<i64: 1, 4, 16, 16>}, {pipeline_mode = #tpu.pipeline_mode<synchronous>, transform_indices = @transform_2, window_bounds = array<i64: 4, 72>}, {pipeline_mode = #tpu.pipeline_mode<synchronous>, transform_indices = @transform_3, window_bounds = array<i64: 4, 1>}, {pipeline_mode = #tpu.pipeline_mode<synchronous>, transform_indices = @transform_4, window_bounds = array<i64: 4, 1>}, {pipeline_mode = #tpu.pipeline_mode<synchronous>, transform_indices = @transform_5, window_bounds = array<i64: 4, 36>}, {pipeline_mode = #tpu.pipeline_mode<synchronous>, transform_indices = @transform_6, window_bounds = array<i64: 4, 1>}, {pipeline_mode = #tpu.pipeline_mode<synchronous>, transform_indices = @transform_7, window_bounds = array<i64: 4, 1>}, {transform_indices = @transform_8, window_bounds = array<i64: 1, 4, 256>}]} {
    %c0 = arith.constant 0 : index
    %c0_0 = arith.constant 0 : index
    %c0_1 = arith.constant 0 : index
    %c0_2 = arith.constant 0 : index
    %0 = vector.load %arg1[%c0, %c0_0, %c0_1, %c0_2] : memref<1x4x16x16xf32, #tpu.memory_space<vmem>>, vector<1x4x16x16xf32>
    %1 = vector.shape_cast %0 : vector<1x4x16x16xf32> to vector<4x16x16xf32>
    %c0_3 = arith.constant 0 : index
    %c0_4 = arith.constant 0 : index
    %c0_5 = arith.constant 0 : index
    %c0_6 = arith.constant 0 : index
    %2 = vector.load %arg2[%c0_3, %c0_4, %c0_5, %c0_6] : memref<1x4x16x16xf32, #tpu.memory_space<vmem>>, vector<1x4x16x16xf32>
    %3 = vector.shape_cast %2 : vector<1x4x16x16xf32> to vector<4x16x16xf32>
    %4 = tpu.concatenate %1, %3 in 0 : vector<4x16x16xf32>, vector<4x16x16xf32> -> vector<8x16x16xf32>
    %cst = arith.constant 0.000000e+00 : f32
    %5 = vector.broadcast %cst : f32 to vector<8x16x1xf32>
    %6 = tpu.concatenate %5, %4, %5 in 2 : vector<8x16x1xf32>, vector<8x16x16xf32>, vector<8x16x1xf32> -> vector<8x16x18xf32>
    %cst_7 = arith.constant 0.000000e+00 : f32
    %7 = vector.broadcast %cst_7 : f32 to vector<8x1x18xf32>
    %8 = tpu.concatenate %7, %6, %7 in 1 : vector<8x1x18xf32>, vector<8x16x18xf32>, vector<8x1x18xf32> -> vector<8x18x18xf32>
    %9 = vector.extract_strided_slice %8 {offsets = [0, 0, 0], sizes = [8, 16, 16], strides = [1, 1, 1]} : vector<8x18x18xf32> to vector<8x16x16xf32>
    %10 = vector.shape_cast %9 : vector<8x16x16xf32> to vector<8x256xf32>
    %11 = vector.extract_strided_slice %8 {offsets = [0, 0, 1], sizes = [8, 16, 16], strides = [1, 1, 1]} : vector<8x18x18xf32> to vector<8x16x16xf32>
    %12 = vector.shape_cast %11 : vector<8x16x16xf32> to vector<8x256xf32>
    %13 = vector.extract_strided_slice %8 {offsets = [0, 0, 2], sizes = [8, 16, 16], strides = [1, 1, 1]} : vector<8x18x18xf32> to vector<8x16x16xf32>
    %14 = vector.shape_cast %13 : vector<8x16x16xf32> to vector<8x256xf32>
    %15 = vector.extract_strided_slice %8 {offsets = [0, 1, 0], sizes = [8, 16, 16], strides = [1, 1, 1]} : vector<8x18x18xf32> to vector<8x16x16xf32>
    %16 = vector.shape_cast %15 : vector<8x16x16xf32> to vector<8x256xf32>
    %17 = vector.extract_strided_slice %8 {offsets = [0, 1, 1], sizes = [8, 16, 16], strides = [1, 1, 1]} : vector<8x18x18xf32> to vector<8x16x16xf32>
    %18 = vector.shape_cast %17 : vector<8x16x16xf32> to vector<8x256xf32>
    %19 = vector.extract_strided_slice %8 {offsets = [0, 1, 2], sizes = [8, 16, 16], strides = [1, 1, 1]} : vector<8x18x18xf32> to vector<8x16x16xf32>
    %20 = vector.shape_cast %19 : vector<8x16x16xf32> to vector<8x256xf32>
    %21 = vector.extract_strided_slice %8 {offsets = [0, 2, 0], sizes = [8, 16, 16], strides = [1, 1, 1]} : vector<8x18x18xf32> to vector<8x16x16xf32>
    %22 = vector.shape_cast %21 : vector<8x16x16xf32> to vector<8x256xf32>
    %23 = vector.extract_strided_slice %8 {offsets = [0, 2, 1], sizes = [8, 16, 16], strides = [1, 1, 1]} : vector<8x18x18xf32> to vector<8x16x16xf32>
    %24 = vector.shape_cast %23 : vector<8x16x16xf32> to vector<8x256xf32>
    %25 = vector.extract_strided_slice %8 {offsets = [0, 2, 2], sizes = [8, 16, 16], strides = [1, 1, 1]} : vector<8x18x18xf32> to vector<8x16x16xf32>
    %26 = vector.shape_cast %25 : vector<8x16x16xf32> to vector<8x256xf32>
    %27 = tpu.concatenate %10, %12, %14, %16, %18, %20, %22, %24, %26 in 0 : vector<8x256xf32>, vector<8x256xf32>, vector<8x256xf32>, vector<8x256xf32>, vector<8x256xf32>, vector<8x256xf32>, vector<8x256xf32>, vector<8x256xf32>, vector<8x256xf32> -> vector<72x256xf32>
    %c0_8 = arith.constant 0 : index
    %c0_9 = arith.constant 0 : index
    %28 = vector.load %arg3[%c0_8, %c0_9] : memref<4x72xf32, #tpu.memory_space<vmem>>, vector<4x72xf32>
    %cst_10 = arith.constant dense<0.000000e+00> : vector<4x256xf32>
    %29 = tpu.matmul %28, %27, %cst_10 {dimension_numbers = #tpu.dot_dimension_numbers<[1], [0], [0], [1], [0, 0, 1, 1], [], []>} : vector<4x72xf32>, vector<72x256xf32>, vector<4x256xf32> -> vector<4x256xf32>
    %c0_11 = arith.constant 0 : index
    %c0_12 = arith.constant 0 : index
    %30 = vector.load %arg4[%c0_11, %c0_12] : memref<4x1xf32, #tpu.memory_space<vmem>>, vector<4x1xf32>
    %31 = vector.broadcast %30 : vector<4x1xf32> to vector<4x256xf32>
    %32 = arith.mulf %29, %31 : vector<4x256xf32>
    %c0_13 = arith.constant 0 : index
    %c0_14 = arith.constant 0 : index
    %33 = vector.load %arg5[%c0_13, %c0_14] : memref<4x1xf32, #tpu.memory_space<vmem>>, vector<4x1xf32>
    %34 = vector.broadcast %33 : vector<4x1xf32> to vector<4x256xf32>
    %35 = arith.addf %32, %34 : vector<4x256xf32>
    %cst_15 = arith.constant 0.000000e+00 : f32
    %36 = vector.broadcast %cst_15 : f32 to vector<4x256xf32>
    %37 = arith.maximumf %35, %36 : vector<4x256xf32>
    %38 = vector.shape_cast %37 : vector<4x256xf32> to vector<4x16x16xf32>
    %cst_16 = arith.constant 0.000000e+00 : f32
    %39 = vector.broadcast %cst_16 : f32 to vector<4x16x1xf32>
    %40 = tpu.concatenate %39, %38, %39 in 2 : vector<4x16x1xf32>, vector<4x16x16xf32>, vector<4x16x1xf32> -> vector<4x16x18xf32>
    %cst_17 = arith.constant 0.000000e+00 : f32
    %41 = vector.broadcast %cst_17 : f32 to vector<4x1x18xf32>
    %42 = tpu.concatenate %41, %40, %41 in 1 : vector<4x1x18xf32>, vector<4x16x18xf32>, vector<4x1x18xf32> -> vector<4x18x18xf32>
    %43 = vector.extract_strided_slice %42 {offsets = [0, 0, 0], sizes = [4, 16, 16], strides = [1, 1, 1]} : vector<4x18x18xf32> to vector<4x16x16xf32>
    %44 = vector.shape_cast %43 : vector<4x16x16xf32> to vector<4x256xf32>
    %45 = vector.extract_strided_slice %42 {offsets = [0, 0, 1], sizes = [4, 16, 16], strides = [1, 1, 1]} : vector<4x18x18xf32> to vector<4x16x16xf32>
    %46 = vector.shape_cast %45 : vector<4x16x16xf32> to vector<4x256xf32>
    %47 = vector.extract_strided_slice %42 {offsets = [0, 0, 2], sizes = [4, 16, 16], strides = [1, 1, 1]} : vector<4x18x18xf32> to vector<4x16x16xf32>
    %48 = vector.shape_cast %47 : vector<4x16x16xf32> to vector<4x256xf32>
    %49 = vector.extract_strided_slice %42 {offsets = [0, 1, 0], sizes = [4, 16, 16], strides = [1, 1, 1]} : vector<4x18x18xf32> to vector<4x16x16xf32>
    %50 = vector.shape_cast %49 : vector<4x16x16xf32> to vector<4x256xf32>
    %51 = vector.extract_strided_slice %42 {offsets = [0, 1, 1], sizes = [4, 16, 16], strides = [1, 1, 1]} : vector<4x18x18xf32> to vector<4x16x16xf32>
    %52 = vector.shape_cast %51 : vector<4x16x16xf32> to vector<4x256xf32>
    %53 = vector.extract_strided_slice %42 {offsets = [0, 1, 2], sizes = [4, 16, 16], strides = [1, 1, 1]} : vector<4x18x18xf32> to vector<4x16x16xf32>
    %54 = vector.shape_cast %53 : vector<4x16x16xf32> to vector<4x256xf32>
    %55 = vector.extract_strided_slice %42 {offsets = [0, 2, 0], sizes = [4, 16, 16], strides = [1, 1, 1]} : vector<4x18x18xf32> to vector<4x16x16xf32>
    %56 = vector.shape_cast %55 : vector<4x16x16xf32> to vector<4x256xf32>
    %57 = vector.extract_strided_slice %42 {offsets = [0, 2, 1], sizes = [4, 16, 16], strides = [1, 1, 1]} : vector<4x18x18xf32> to vector<4x16x16xf32>
    %58 = vector.shape_cast %57 : vector<4x16x16xf32> to vector<4x256xf32>
    %59 = vector.extract_strided_slice %42 {offsets = [0, 2, 2], sizes = [4, 16, 16], strides = [1, 1, 1]} : vector<4x18x18xf32> to vector<4x16x16xf32>
    %60 = vector.shape_cast %59 : vector<4x16x16xf32> to vector<4x256xf32>
    %61 = tpu.concatenate %44, %46, %48, %50, %52, %54, %56, %58, %60 in 0 : vector<4x256xf32>, vector<4x256xf32>, vector<4x256xf32>, vector<4x256xf32>, vector<4x256xf32>, vector<4x256xf32>, vector<4x256xf32>, vector<4x256xf32>, vector<4x256xf32> -> vector<36x256xf32>
    %c0_18 = arith.constant 0 : index
    %c0_19 = arith.constant 0 : index
    %62 = vector.load %arg6[%c0_18, %c0_19] : memref<4x36xf32, #tpu.memory_space<vmem>>, vector<4x36xf32>
    %cst_20 = arith.constant dense<0.000000e+00> : vector<4x256xf32>
    %63 = tpu.matmul %62, %61, %cst_20 {dimension_numbers = #tpu.dot_dimension_numbers<[1], [0], [0], [1], [0, 0, 1, 1], [], []>} : vector<4x36xf32>, vector<36x256xf32>, vector<4x256xf32> -> vector<4x256xf32>
    %c0_21 = arith.constant 0 : index
    %c0_22 = arith.constant 0 : index
    %64 = vector.load %arg7[%c0_21, %c0_22] : memref<4x1xf32, #tpu.memory_space<vmem>>, vector<4x1xf32>
    %65 = vector.broadcast %64 : vector<4x1xf32> to vector<4x256xf32>
    %66 = arith.mulf %63, %65 : vector<4x256xf32>
    %c0_23 = arith.constant 0 : index
    %c0_24 = arith.constant 0 : index
    %67 = vector.load %arg8[%c0_23, %c0_24] : memref<4x1xf32, #tpu.memory_space<vmem>>, vector<4x1xf32>
    %68 = vector.broadcast %67 : vector<4x1xf32> to vector<4x256xf32>
    %69 = arith.addf %66, %68 : vector<4x256xf32>
    %cst_25 = arith.constant 0.000000e+00 : f32
    %70 = vector.broadcast %cst_25 : f32 to vector<4x256xf32>
    %71 = arith.maximumf %69, %70 : vector<4x256xf32>
    %c0_26 = arith.constant 0 : index
    %c0_27 = arith.constant 0 : index
    %c0_28 = arith.constant 0 : index
    %72 = vector.load %arg9[%c0_26, %c0_27, %c0_28] : memref<1x4x256xf32, #tpu.memory_space<vmem>>, vector<1x4x256xf32>
    %73 = vector.shape_cast %72 : vector<1x4x256xf32> to vector<4x256xf32>
    %74 = vector.shape_cast %71 : vector<4x256xf32> to vector<1x4x256xf32>
    tpu.vector_store %arg9[%c0_26, %c0_27, %c0_28], %74 {strides = array<i32>} : memref<1x4x256xf32, #tpu.memory_space<vmem>>, vector<1x4x256xf32>,
    return
  }
  func.func @transform_0(%arg0: i32) -> (i32, i32, i32, i32) {
    %c0_i32 = arith.constant 0 : i32
    %c0_i32_0 = arith.constant 0 : i32
    %c0_i32_1 = arith.constant 0 : i32
    %c0_i32_2 = arith.constant 0 : i32
    return %arg0, %c0_i32, %c0_i32_0, %c0_i32_1 : i32, i32, i32, i32
  }
  func.func @transform_1(%arg0: i32) -> (i32, i32, i32, i32) {
    %c0_i32 = arith.constant 0 : i32
    %c0_i32_0 = arith.constant 0 : i32
    %c0_i32_1 = arith.constant 0 : i32
    %c0_i32_2 = arith.constant 0 : i32
    return %arg0, %c0_i32, %c0_i32_0, %c0_i32_1 : i32, i32, i32, i32
  }
  func.func @transform_2(%arg0: i32) -> (i32, i32) {
    %c0_i32 = arith.constant 0 : i32
    %c0_i32_0 = arith.constant 0 : i32
    %c0_i32_1 = arith.constant 0 : i32
    return %c0_i32, %c0_i32_0 : i32, i32
  }
  func.func @transform_3(%arg0: i32) -> (i32, i32) {
    %c0_i32 = arith.constant 0 : i32
    %c0_i32_0 = arith.constant 0 : i32
    %c0_i32_1 = arith.constant 0 : i32
    return %c0_i32, %c0_i32_0 : i32, i32
  }
  func.func @transform_4(%arg0: i32) -> (i32, i32) {
    %c0_i32 = arith.constant 0 : i32
    %c0_i32_0 = arith.constant 0 : i32
    %c0_i32_1 = arith.constant 0 : i32
    return %c0_i32, %c0_i32_0 : i32, i32
  }
  func.func @transform_5(%arg0: i32) -> (i32, i32) {
    %c0_i32 = arith.constant 0 : i32
    %c0_i32_0 = arith.constant 0 : i32
    %c0_i32_1 = arith.constant 0 : i32
    return %c0_i32, %c0_i32_0 : i32, i32
  }
  func.func @transform_6(%arg0: i32) -> (i32, i32) {
    %c0_i32 = arith.constant 0 : i32
    %c0_i32_0 = arith.constant 0 : i32
    %c0_i32_1 = arith.constant 0 : i32
    return %c0_i32, %c0_i32_0 : i32, i32
  }
  func.func @transform_7(%arg0: i32) -> (i32, i32) {
    %c0_i32 = arith.constant 0 : i32
    %c0_i32_0 = arith.constant 0 : i32
    %c0_i32_1 = arith.constant 0 : i32
    return %c0_i32, %c0_i32_0 : i32, i32
  }
  func.func @transform_8(%arg0: i32) -> (i32, i32, i32) {
    %c0_i32 = arith.constant 0 : i32
    %c0_i32_0 = arith.constant 0 : i32
    %c0_i32_1 = arith.constant 0 : i32
    return %arg0, %c0_i32, %c0_i32_0 : i32, i32, i32
  }
}

</mosaic_0001>

<bundles_post_ra>
// kernel: tile.8
= control target key start
LH: loop header
LB: loop body
LE: loop exit
PB: predicated region body
PF: predicated region fallthrough
CT: control target
= control target key end

     0   :  { %s22_s0 = inlined_call_operand.vmem [shape: f32[4], index: 0, kind: input, shape index: {}]   ;;  %s23_s1 = inlined_call_operand.vmem [shape: f32[4,4], index: 1, kind: output, shape index: {}]  }
   0x1   :  { %v4_v0 = vld [vmem:[%s22_s0] ss:$0 sm:$0xff] }
   0x2   :  { %5 = vst [vmem:[%s23_s1] sm:$0xf] %v4_v0 }

// kernel: tile.0
= control target key start
LH: loop header
LB: loop body
LE: loop exit
PB: predicated region body
PF: predicated region fallthrough
CT: control target
= control target key end

     0   :  { %s34_s8 = smov 125   ;;  %s35_s9 = smov 126   ;;  %vm7_vm0 = vcmask 7168   ;;  %s61_s0 = inlined_call_operand.vmem [shape: f32[4,4], index: 0, kind: input, shape index: {}]   ;;  %s62_s1 = inlined_call_operand.vmem [shape: f32[16,1], index: 1, kind: output, shape index: {}]  }
   0x1   :  { %v4_v0 = vld [vmem:[%s61_s0] sm:$0xf]  ;;  %s33_s0 = smov 127  }
   0x2   :  { %5 = vst [vmem:[#allocation0] sm:$0xf] %v4_v0 }
   0x9   :  { %v9_v1 = vld [vmem:[#allocation0] sm:$0xf]  }
   0xa   :  { %v21_v2 = vld [vmem:[#allocation0] sm:$0xf]   ;;  %10 = vrot.lane.b32.xlu0 %v9_v1, %s33_s0 }
   0xb   :  { %22 = vrot.lane.b32.xlu1 %v21_v2, %s34_s8  ;;  %v15_v3 = vld [vmem:[#allocation0] sm:$0xf]  }
   0xc   :  { %v6_v4 = vld [vmem:[#allocation0] sm:$0xf]  }
   0xd   :  { %8 = vst.msk [vmem:[%s62_s1] ss:$4 sm:$0xf] %vm7_vm0, %v6_v4  }
  0x12   :  { %16 = vrot.lane.b32.xlu0 %v15_v3, %s35_s9 }
  0x7c   :  { %v11_v5 = vpop.permute.xlu0 %10  }
  0x7d   :  { %v23_v6 = vpop.permute.xlu1 %22   ;;  %27 = vst.msk [vmem:[%s62_s1 + $0x1] ss:$4 sm:$0xf] %vm7_vm0, %v11_v5  }
  0x7e   :  { %29 = vst.msk [vmem:[%s62_s1 + $0x3] ss:$4 sm:$0xf] %vm7_vm0, %v23_v6  }
  0x84   :  { %v17_v7 = vpop.permute.xlu0 %16  }
  0x85   :  { %28 = vst.msk [vmem:[%s62_s1 + $0x2] ss:$4 sm:$0xf] %vm7_vm0, %v17_v7  }

// kernel: upsample_forward.2
= control target key start
LH: loop header
LB: loop body
LE: loop exit
PB: predicated region body
PF: predicated region fallthrough
CT: control target
= control target key end

     0   :  { %8 = vsyncpa [#allocation3], 0  ;;  %s769_s0 = inlined_call_operand.hbm [shape: f32[2,8,8,8], index: 0, kind: input, shape index: {}]   ;;  %s770_s1 = inlined_call_operand.vmem [shape: f32[16,8], index: 1, kind: input, shape index: {}]   ;;  %s771_s2 = inlined_call_operand.vmem [shape: f32[16,1], index: 2, kind: input, shape index: {}]   ;;  %s772_s3 = inlined_call_operand.vmem [shape: f32[2,16,64], index: 3, kind: output, shape index: {}]  }
   0x1   :  { %10 = vsyncpa [#allocation3 + $0x1], 0  ;;  %s638_s12 = smov 0   ;;  %s640_s13 = smov 0  }
   0x2   :  { %s642_s14 = smov 0   ;;  %s644_s15 = smov 0  }
   0x3 LB: > { %s657_s16 = sadd.s32 4294967295, %s604_s15   ;;  %s660_s17 = sadd.s32 1, %s604_s15   ;;  %s604_s15 = sphi %s644_s15, %s779_s15   ;;  %s600_s14 = sphi %s642_s14, %s778_s14   ;;  %s596_s13 = sphi %s640_s13, %s777_s13   ;;  %s592_s12 = sphi %s638_s12, %s776_s12  }
   0x4   : > { %s20_s18 = ssub.s32 %s604_s15, %s660_s17  ;;  %s23_s19 = sadd.s32 1, %s600_s14 }
   0x5   : > { %p21_p0 = scmp.eq.s32.totalorder %s20_s18, 0  ;;  %p30_p1 = scmp.ne.s32.totalorder %s600_s14, %s596_s13 }
   0x6   : > { %p31_p2 = scmp.eq.s32.totalorder %s604_s15, 0  ;;  %p36_p3 = scmp.ne.s32.totalorder %s596_s13, %s592_s12 }
   0x7   : > { %s670_s20 = scalar_select %p21_p0, %s600_s14, %s23_s19  }
   0x8   : > { %p672_p4 = por %p31_p2, %p30_p1  ;;  %p37_p5 = scmp.eq.s32.totalorder %s657_s16, 0 }
   0x9   : > { %p492_p6 = scmp.lt.s32.totalorder %s604_s15, 2  ;;  %s134_s23 = sand.u32 1, %s600_s14  }
   0xa   : > { %p678_p7 = por %p37_p5, %p36_p3  ;;  %s472_s24 = sshll.u32 %s134_s23, 6 }
   0xb   : > { %s483_s25 = sshll.u32 %s604_s15, 6  ;;  %s138_s29 = scalar_lea.vmem [#allocation2], %s472_s24 }
   0xc   : > { %s143_s28 = scalar_lea.hbm %s769_s0, %s483_s25  ;;  %s146_s30 = sshll.u32 %s138_s29, 4  ;;  %s147_s30 = int_to_ptr.vmem [resolvable:$true] %s146_s30 }
   0xd   : > { %s144_s4 = sshll.u32 %s143_s28, 4  ;;  %p689_p8 = pnand %p492_p6, %p672_p4  ;;  %s145_s4 = int_to_ptr.hbm [resolvable:$true] %s144_s4 }
   0xe   : > { %p475_p9 = scmp.ge.s32.totalorder %s604_s15, 1  ;;  %s135_s6 = scalar_lea.sflag [#allocation3], %s134_s23 }
   0xf   : > { %s540_s7 = sshra.s32 %s145_s4, 4  ;;  %p544_p11 = pneg %p689_p8  ;;  %s541_s7 = int_to_ptr.hbm [resolvable:$true] %s540_s7 }
  0x10   : > { %s542_s8 = scalar_lea.hbm %s541_s7, 64  ;;  %s547_s11 = scalar_lea.hbm %s769_s0, 128 }
  0x11   : > { %p543_p10 = scmp.ne.s32.totalorder %s541_s7, %s542_s8  ;;  %p548_p0 = scmp.lt.s32.totalorder %s541_s7, %s769_s0 }
  0x12   : > { %p549_p1 = scmp.lt.s32.totalorder %s547_s11, %s542_s8 }
  0x13   : > { %p545_p12 = pnand %p544_p11, %p543_p10 }
  0x14   : > { %p550_p2 = por %p549_p1, %p548_p0 }
  0x15   : > { %p546_p13 = pneg %p545_p12 }
  0x17   : > { %p551_p3 = pnand %p550_p2, %p546_p13 }
  0x19   : > { %554 = shalt.err (!%p551_p3)
}
  0x1a   : > { %s606_s19 = smov 128   ;;  %s607_s21 = smov 8  }
  0x1b   : > { %491 = dma.hbm_to_vmem [thread:$0]  (!%p689_p8), %s145_s4, 1024, %s147_s30, %s135_s6, %s606_s19, %s606_s19, %s607_s21  }
  0x1c   : > { %p154_p4 = scmp.lt.s32.totalorder %s604_s15, 3 }
  0x1e   : > { %p155_p5 = pnand %p475_p9, %p154_p4 }
  0x1f   : > { %s160_s23 = sand.u32 (!%p155_p5), 1, %s596_s13  }
  0x20   : > { %158 = sbr.rel (%p155_p5) target bundleno = 317 (0x13d), region = 32  ;;  %s476_s24 = sshll.u32 (!%p155_p5), %s160_s23, 6 }
  0x21   : > { %s161_s25 = scalar_lea.sflag (!%p155_p5), [#allocation3], %s160_s23  ;;  %s164_s26 = scalar_lea.vmem (!%p155_p5), [#allocation2], %s476_s24 }
  0x25   : > { %587 = dma.done.wait (%p678_p7), %s161_s25, 1024  }
  0x26   : > { %589 = vsyncadd (%p678_p7), %s161_s25, 4294966272  ;;  %v608_v0 = vmov 1983009808   ;;  %v609_v2 = vmov 1934713408   ;;  %v193_v4 = vld [vmem:[%s164_s26] sm:$0xff] }
  0x27   : > { %v207_v1 = vunpack.c.l.s4 %v608_v0  ;;  %v255_v3 = vunpack.c.l.s4 %v609_v2  ;;  %v194_v5 = vld [vmem:[%s164_s26 + $0x8] sm:$0xff]  ;;  %v195_v6 = vld [vmem:[%s164_s26 + $0x10] sm:$0xff]  ;;  %vm202_vm0 = vcmask 1047556   ;;  %v196_v7 = vld [vmem:[%s164_s26 + $0x18] sm:$0xff]  ;;  %v204_v11 = vrot.slane %v193_v4, 4  ;;  %s610_s15 = smov 24  }
  0x28   : > { %v197_v8 = vld [vmem:[%s164_s26 + $0x20] sm:$0xff]  ;;  %v198_v9 = vld [vmem:[%s164_s26 + $0x28] sm:$0xff]  ;;  %v201_v10 = vrot.slane %v195_v6, 4  ;;  %v216_v13 = vrot.slane %v194_v5, 4  ;;  %v199_v14 = vld [vmem:[%s164_s26 + $0x30] sm:$0xff]  ;;  %v214_v16 = vrot.slane %v196_v7, 4 }
  0x29   : > { %v208_v12 = vunpack.c.0.s8 %v207_v1  ;;  %v200_v15 = vld [vmem:[%s164_s26 + $0x38] sm:$0xff]  ;;  %v228_v17 = vrot.slane %v197_v8, 4  ;;  %v240_v18 = vrot.slane %v198_v9, 4  ;;  %v256_v19 = vunpack.c.0.s8 %v255_v3  ;;  %s611_s22 = smov 8   ;;  %s612_s27 = smov 40  }
  0x2a   : > { %v203_v20 = vsel %vm202_vm0, %v201_v10, %v193_v4  ;;  %v226_v21 = vrot.slane %v199_v14, 4  ;;  %v238_v22 = vrot.slane %v200_v15, 4  ;;  %v205_v23 = vsel %vm202_vm0, %v195_v6, %v204_v11  ;;  %s613_s28 = smov 32   ;;  %s614_s29 = smov 16  }
  0x2b   : > { %v209_v24 = vperm.slane %v203_v20, %v208_v12  ;;  %v215_v25 = vsel %vm202_vm0, %v214_v16, %v194_v5  ;;  %v213_v26 = vperm.slane %v205_v23, %v208_v12  ;;  %v217_v27 = vsel %vm202_vm0, %v196_v7, %v216_v13  ;;  %s615_s30 = smov 48   ;;  %s616_s4 = smov 56   ;;  %v359_v13 = vld [vmem:[%s771_s2 + $0x8] sm:$0xff] }
  0x2c   : > { %v221_v28 = vperm.slane %v215_v25, %v208_v12  ;;  %v227_v29 = vsel %vm202_vm0, %v226_v21, %v197_v8  ;;  %v239_v30 = vsel %vm202_vm0, %v238_v22, %v198_v9  ;;  %v225_v31 = vperm.slane %v217_v27, %v208_v12  ;;  %p188_p6 = scmp.lt.s32.totalorder %s657_s16, 1 }
  0x2d   : > { %v233_v32 = vperm.slane %v227_v29, %v208_v12  ;;  %v245_v33 = vperm.slane %v239_v30, %v208_v12  ;;  %v252_v34 = vrot.slane %v209_v24, 4  ;;  %v229_v35 = vsel %vm202_vm0, %v199_v14, %v228_v17  ;;  %v356_v30 = vld [vmem:[%s770_s1] sm:$0xff] }
  0x2e   : > { %v250_v36 = vrot.slane %v221_v28, 4  ;;  %v241_v37 = vsel %vm202_vm0, %v200_v15, %v240_v18  ;;  %v262_v38 = vrot.slane %v225_v31, 4  ;;  %v237_v45 = vperm.slane %v229_v35, %v208_v12  ;;  %s781_s16 = smov (!%p188_p6, %s657_s16), 1 }
  0x2f   : > { %v274_v39 = vrot.slane %v245_v33, 4  ;;  %v253_v40 = vsel %vm202_vm0, %v221_v28, %v252_v34  ;;  %v276_v41 = vrot.slane %v233_v32, 4  ;;  %v249_v42 = vperm.slane %v241_v37, %v208_v12  ;;  %v358_v12 = vld [vmem:[%s771_s2] sm:$0xff]  ;;  %s484_s18 = sshll.u32 %s781_s16, 4 }
  0x30   : > { %v251_v43 = vsel %vm202_vm0, %v250_v36, %v209_v24  ;;  %v261_v44 = vperm.slane %v253_v40, %v256_v19  ;;  %v263_v46 = vsel %vm202_vm0, %v262_v38, %v213_v26  ;;  %v288_v56 = vrot.slane %v237_v45, 4  ;;  %s192_s23 = scalar_lea.vmem %s772_s3, %s484_s18 }
  0x31   : > { %v257_v47 = vperm.slane %v251_v43, %v256_v19  ;;  %v275_v48 = vsel %vm202_vm0, %v274_v39, %v233_v32  ;;  %v277_v49 = vsel %vm202_vm0, %v245_v33, %v276_v41  ;;  %v269_v50 = vperm.slane %v263_v46, %v256_v19 }
  0x32   : > { %v281_v51 = vperm.slane %v275_v48, %v256_v19  ;;  %v285_v52 = vperm.slane %v277_v49, %v256_v19  ;;  %v304_v53 = vrot.slane %v261_v44, 4  ;;  %v286_v54 = vrot.slane %v249_v42, 4 }
  0x33   : > { %v300_v55 = vrot.slane %v257_v47, 4  ;;  %v308_v57 = vrot.slane %v269_v50, 4  ;;  %v264_v60 = vrot.slane %v213_v26, 4  ;;  %v289_v63 = vsel %vm202_vm0, %v249_v42, %v288_v56 }
  0x34   : > { %v305_v58 = vsel %vm202_vm0, %v285_v52, %v304_v53  ;;  %v287_v59 = vsel %vm202_vm0, %v286_v54, %v237_v45  ;;  %v302_v0 = vrot.slane %v285_v52, 4  ;;  %v297_v2 = vperm.slane %v289_v63, %v256_v19 }
  0x35   : > { %v301_v61 = vsel %vm202_vm0, %v281_v51, %v300_v55  ;;  %323 = vrot.lane.b32.xlu1 %v305_v58, %s610_s15  ;;  %v293_v62 = vperm.slane %v287_v59, %v256_v19  ;;  %v265_v4 = vsel %vm202_vm0, %v225_v31, %v264_v60  ;;  %v617_v14 = vmov 0   ;;  %v357_v31 = vld [vmem:[%s770_s1 + $0x8] sm:$0xff] }
  0x36   : > { %315 = vrot.lane.b32.xlu0 %v301_v61, %s611_s22  ;;  %v310_v5 = vrot.slane %v297_v2, 4  ;;  %v303_v7 = vsel %vm202_vm0, %v302_v0, %v261_v44  ;;  %v273_v8 = vperm.slane %v265_v4, %v256_v19  ;;  %537 = vset.pattern.permute.xlu1 %v617_v14  ;;  %v298_v17 = vrot.slane %v281_v51, 4 }
  0x37   : > { %v306_v1 = vrot.slane %v293_v62, 4  ;;  %v309_v3 = vsel %vm202_vm0, %v293_v62, %v308_v57  ;;  %538 = vset.pattern.permute.xlu2 %v617_v14  ;;  %539 = vset.pattern.permute.xlu0 %v617_v14  ;;  %vm342_vm1 = vcmask 64512   ;;  %vm344_vm2 = vcmask 130048  }
  0x38   : > { %331 = vrot.lane.b32.xlu2 %v309_v3, %s612_s27  ;;  %v311_v9 = vsel %vm202_vm0, %v310_v5, %v273_v8  ;;  %v312_v10 = vrot.slane %v273_v8, 4  ;;  %v299_v19 = vsel %vm202_vm0, %v298_v17, %v257_v47  ;;  %vm346_vm3 = vcmask 195584  }
  0x39   : > { %v307_v6 = vsel %vm202_vm0, %v306_v1, %v269_v50  ;;  %vm348_vm4 = vcmask 261120   ;;  %vm350_vm5 = vcmask 326656   ;;  %vm352_vm6 = vcmask 392192  }
  0x3a   : > { %v313_v11 = vsel %vm202_vm0, %v297_v2, %v312_v10  ;;  %vm354_vm7 = vcmask 457728   ;;  %vm399_vm8 = vcmask 523264  }
  0x3d   : > { %327 = vrot.lane.b32.xlu1 %v307_v6, %s613_s28 }
  0x3e   : > { %319 = vrot.lane.b32.xlu0 %v303_v7, %s614_s29 }
  0x40   : > { %335 = vrot.lane.b32.xlu2 %v311_v9, %s615_s30 }
  0x45   : > { %362 = vperm.xlu1 %537, %v358_v12  }
  0x46   : > { %339 = vrot.lane.b32.xlu0 %v313_v11, %s616_s4 }
  0x48   : > { %367 = vperm.xlu2 %538, %v359_v13  }
  0x92   : > { %v332_v18 = vpop.permute.xlu2 %331 }
  0x9a   : > { %v336_v26 = vpop.permute.xlu2 %335 }
  0xa2   : > { %v368_v33 = vpop.permute.xlu2 %367 }
  0xa7   : > { %v324_v15 = vpop.permute.xlu1 %323 }
  0xa8   : > { %v316_v16 = vpop.permute.xlu0 %315 }
  0xa9   : > { %v343_v20 = vsel %vm342_vm1, %v299_v19, %v316_v16 }
  0xaf   : > { %v328_v22 = vpop.permute.xlu1 %327 }
  0xb0   : > { %v320_v21 = vpop.permute.xlu0 %319 }
  0xb1   : > { %v345_v23 = vsel %vm344_vm2, %v343_v20, %v320_v21 }
  0xb2   : > { %v347_v24 = vsel %vm346_vm3, %v345_v23, %v324_v15 }
  0xb3   : > { %v349_v25 = vsel %vm348_vm4, %v347_v24, %v328_v22 }
  0xb4   : > { %v351_v27 = vsel %vm350_vm5, %v349_v25, %v332_v18 }
  0xb5   : > { %v353_v28 = vsel %vm352_vm6, %v351_v27, %v336_v26 }
  0xb7   : > { %v363_v34 = vpop.permute.xlu1 %362 }
  0xb8   : > { %v340_v29 = vpop.permute.xlu0 %339 }
  0xb9   : > { %v355_v32 = vsel %vm354_vm7, %v353_v28, %v340_v29 }
  0xba   : > { %391 = vmatpush.msra.mxu0 %v355_v32  ;;  %485 = vmatpush.msra.mxu1 %v355_v32 }
  0xbb   : > { %479 = vmatmul.msk.f32.vlgmr.msra.gmra.mxu0 %vm342_vm1, %v356_v30  ;;  %480 = vmatmul.msk.f32.vlgmr.msra.gmra.mxu1 %vm342_vm1, %v357_v31 }
 0x138   : > { %v393_v35 = vpop.f32.mrf.mxu0  ;;  %v396_v36 = vpop.f32.mrf.mxu1 }
 0x139   : > { %v394_v37 = vadd.f32 %v393_v35, %v363_v34  ;;  %v397_v38 = vadd.f32 %v396_v36, %v368_v33 }
 0x13b   : > { %400 = vst.msk [vmem:[%s192_s23] sm:$0xff] %vm399_vm8, %v394_v37 }
 0x13c   : > { %401 = vst.msk [vmem:[%s192_s23 + $0x8] sm:$0xff] %vm399_vm8, %v397_v38 }
 0x13d PF: > { %p13_p7 = scmp.ge.s32.totalorder %s660_s17, 4   ;;  %s776_s12 = smov %s596_s13 }
 0x13e   : > { %s777_s13 = smov %s600_s14  ;;  %s778_s14 = smov %s670_s20 }
 0x13f   : > { %s779_s15 = smov %s660_s17  ;;  %15 = sbr.rel (!%p13_p7) target bundleno = 3 (0x3), region = 72 }
 0x144   :  { %423 = vsyncpa [#allocation3], 1 }
 0x145   :  { %425 = vsyncpa [#allocation3 + $0x1], 1 }

// kernel: upsample_forward.3
= control target key start
LH: loop header
LB: loop body
LE: loop exit
PB: predicated region body
PF: predicated region fallthrough
CT: control target
= control target key end

     0   :  { %s7007_s27 = smov 0   ;;  %s11687_s0 = inlined_call_operand.vmem [shape: f32[2,4,16,16], index: 0, kind: input, shape index: {}]   ;;  %s11688_s1 = inlined_call_operand.vmem [shape: f32[2,4,16,16], index: 1, kind: input, shape index: {}]   ;;  %s11689_s2 = inlined_call_operand.vmem [shape: f32[4,72], index: 2, kind: input, shape index: {}]   ;;  %s11690_s3 = inlined_call_operand.vmem [shape: f32[4,1], index: 3, kind: input, shape index: {}]   ;;  %s11691_s4 = inlined_call_operand.vmem [shape: f32[4,1], index: 4, kind: input, shape index: {}]   ;;  %s11692_s5 = inlined_call_operand.vmem [shape: f32[4,36], index: 5, kind: input, shape index: {}]   ;;  %s11693_s6 = inlined_call_operand.vmem [shape: f32[4,1], index: 6, kind: input, shape index: {}]   ;;  %s11694_s7 = inlined_call_operand.vmem [shape: f32[4,1], index: 7, kind: input, shape index: {}]   ;;  %s11695_s8 = inlined_call_operand.vmem [shape: f32[2,4,256], index: 8, kind: output, shape index: {}]  }
   0x1 LB: > { %s5921_s28 = sadd.s32 4294967295, %s6947_s27   ;;  %p5925_p0 = scmp.ge.s32.totalorder %s6947_s27, 1  ;;  %s6947_s27 = sphi %s7007_s27, %s18_s27  }
   0x2   : > { %p272_p1 = scmp.lt.s32.totalorder %s6947_s27, 3 }
   0x4   : > { %p273_p2 = pnand %p5925_p0, %p272_p1 }
   0x6   : > { %276 = sbr.rel (%p273_p2) target bundleno = 1765 (0x6e5), region = 52 }
   0xb   : > { %p311_p3 = scmp.lt.s32.totalorder %s5921_s28, 1  ;;  %s6949_s14 = smov 1   ;;  %vm406_vm0 = vcmask 7168   ;;  %vm423_vm1 = vcmask 138240   ;;  %vm456_vm2 = vcmask 1040384   ;;  %vm2558_vm3 = vcmask 1045504  }
   0xc   : > { %v6950_v44 = vmov 1983009808   ;;  %vm522_vm4 = vcmask 1047556   ;;  %s6951_s15 = smov 127   ;;  %vm1523_vm5 = vcmask 1046528   ;;  %s6952_s16 = smov 126  }
   0xd   : > { %s12212_s28 = smov (!%p311_p3, %s5921_s28), 1  ;;  %v527_v45 = vunpack.c.l.s4 %v6950_v44  ;;  %s6954_s17 = smov 16   ;;  %vm802_vm6 = vcmask 130048   ;;  %vm804_vm7 = vcmask 261120   ;;  %vm806_vm8 = vcmask 392192  }
   0xe   : > { %s5940_s29 = sshll.u32 %s12212_s28, 6  ;;  %s6955_s18 = smov 64   ;;  %vm808_vm9 = vcmask 523264   ;;  %vm810_vm10 = vcmask 654336   ;;  %vm812_vm11 = vcmask 785408   ;;  %vm814_vm12 = vcmask 916480  }
   0xf   : > { %s315_s10 = scalar_lea.vmem %s11687_s0, %s5940_s29  ;;  %s320_s13 = scalar_lea.vmem %s11688_s1, %s5940_s29  ;;  %vm3594_vm13 = vcmask 588800   ;;  %vm5770_vm14 = vcmask 1043456   ;;  %vm5780_vm15 = vcmask 293888  }
  0x10   : > { %v330_v0 = vld [vmem:[%s315_s10 + $0x20] sm:$0xff]  ;;  %v331_v1 = vld [vmem:[%s315_s10 + $0x28] sm:$0xff]  ;;  %v332_v6 = vld [vmem:[%s315_s10 + $0x30] sm:$0xff]  ;;  %s6956_s19 = smov 32   ;;  %s6957_s20 = smov 112  }
  0x11   : > { %v326_v2 = vld [vmem:[%s315_s10] sm:$0xff]  ;;  %v5974_v3 = vpack.i.bf16 %v331_v1, %v330_v0  ;;  %v327_v4 = vld [vmem:[%s315_s10 + $0x8] sm:$0xff]  ;;  %v333_v7 = vld [vmem:[%s315_s10 + $0x38] sm:$0xff]  ;;  %s6958_s21 = smov 80   ;;  %s6959_s22 = smov 48  }
  0x12   : > { %v5964_v5 = vpack.i.bf16 %v327_v4, %v326_v2  ;;  %v334_v8 = vld [vmem:[%s320_s13] sm:$0xff]  ;;  %v335_v9 = vld [vmem:[%s320_s13 + $0x8] sm:$0xff]  ;;  %v328_v10 = vld [vmem:[%s315_s10 + $0x10] sm:$0xff]  ;;  %v5979_v13 = vpack.i.bf16 %v333_v7, %v332_v6  ;;  %s6960_s23 = smov 96  }
  0x13   : > { %5975 = vrot.lane.b32.xlu1 %v5974_v3, %s6949_s14  ;;  %v329_v11 = vld [vmem:[%s315_s10 + $0x18] sm:$0xff]  ;;  %v5984_v12 = vpack.i.bf16 %v335_v9, %v334_v8  ;;  %v336_v15 = vld [vmem:[%s320_s13 + $0x10] sm:$0xff]  ;;  %v338_v20 = vld [vmem:[%s320_s13 + $0x20] sm:$0xff] }
  0x14   : > { %5965 = vrot.lane.b32.xlu0 %v5964_v5, %s6949_s14  ;;  %v5969_v14 = vpack.i.bf16 %v329_v11, %v328_v10  ;;  %v337_v16 = vld [vmem:[%s320_s13 + $0x18] sm:$0xff]  ;;  %v340_v18 = vld [vmem:[%s320_s13 + $0x30] sm:$0xff]  ;;  %v339_v21 = vld [vmem:[%s320_s13 + $0x28] sm:$0xff]  ;;  %v7065_v5 = vunpack.c.0.s8 %v527_v45 }
  0x15   : > { %5985 = vrot.lane.b32.xlu2 %v5984_v12, %s6949_s14  ;;  %v5989_v17 = vpack.i.bf16 %v337_v16, %v336_v15  ;;  %v341_v19 = vld [vmem:[%s320_s13 + $0x38] sm:$0xff]  ;;  %v5994_v23 = vpack.i.bf16 %v339_v21, %v338_v20 }
  0x16   : > { %v5999_v22 = vpack.i.bf16 %v341_v19, %v340_v18 }
  0x1b   : > { %5980 = vrot.lane.b32.xlu1 %v5979_v13, %s6949_s14 }
  0x1c   : > { %5970 = vrot.lane.b32.xlu0 %v5969_v14, %s6949_s14 }
  0x1d   : > { %5990 = vrot.lane.b32.xlu2 %v5989_v17, %s6949_s14 }
  0x23   : > { %6000 = vrot.lane.b32.xlu1 %v5999_v22, %s6949_s14 }
  0x24   : > { %5995 = vrot.lane.b32.xlu0 %v5994_v23, %s6949_s14 }
  0x6f   : > { %v5986_v24 = vpop.permute.xlu2 %5985 }
  0x70   : > { %v5988_v25 = vunpack.i.h.bf16 %v5986_v24  ;;  %v5987_v26 = vunpack.i.l.bf16 %v5986_v24 }
  0x72   : > { %v416_v28 = vsel %vm406_vm0, 0.0, %v5988_v25  ;;  %v415_v29 = vsel %vm406_vm0, 0.0, %v5987_v26 }
  0x73   : > { %v433_v32 = vsel %vm423_vm1, %v416_v28, 0.0  ;;  %v432_v33 = vsel %vm423_vm1, %v415_v29, 0.0 }
  0x74   : > { %v470_v37 = vrot.slane %v433_v32, 7  ;;  %v469_v41 = vrot.slane %v432_v33, 7 }
  0x76   : > { %v7047_v54 = vsel %vm456_vm2, %v470_v37, 0.0  ;;  %v7054_v58 = vsel %vm456_vm2, 0.0, %v469_v41  ;;  %v7058_v62 = vsel %vm456_vm2, %v469_v41, %v470_v37 }
  0x77   : > { %v5991_v27 = vpop.permute.xlu2 %5990  ;;  %11822 = vst [vmem:[#allocation2_spill] sm:$0xff] %v7047_v54  ;;  %v1547_v2 = vrot.slane %v7047_v54, 1  ;;  %v548_v7 = vrot.slane %v7054_v58, 4 }
  0x78   : > { %v5993_v30 = vunpack.i.h.bf16 %v5991_v27  ;;  %v5992_v31 = vunpack.i.l.bf16 %v5991_v27  ;;  %11823 = vst [vmem:[#allocation3_spill] sm:$0xff] %v7054_v58 }
  0x7a   : > { %v418_v35 = vsel %vm406_vm0, 0.0, %v5993_v30  ;;  %v417_v36 = vsel %vm406_vm0, 0.0, %v5992_v31 }
  0x7b   : > { %v435_v48 = vsel %vm423_vm1, %v418_v35, 0.0  ;;  %v434_v49 = vsel %vm423_vm1, %v417_v36, 0.0 }
  0x7c   : > { %v473_v0 = vrot.slane %v435_v48, 7  ;;  %v472_v1 = vrot.slane %v434_v49, 7 }
  0x7e   : > { %v7075_v9 = vsel %vm456_vm2, %v473_v0, 0.0  ;;  %v7091_v17 = vsel %vm456_vm2, %v472_v1, %v473_v0  ;;  %v7094_v18 = vsel %vm456_vm2, 0.0, %v472_v1 }
  0x7f   : > { %11824 = vst [vmem:[#allocation4_spill] sm:$0xff] %v7075_v9  ;;  %v560_v32 = vrot.slane %v7094_v18, 4 }
  0x80   : > { %11825 = vst [vmem:[#allocation5_spill] sm:$0xff] %v7094_v18 }
  0x85   : > { %v5976_v34 = vpop.permute.xlu1 %5975 }
  0x86   : > { %v5978_v38 = vunpack.i.h.bf16 %v5976_v34  ;;  %v5977_v39 = vunpack.i.l.bf16 %v5976_v34  ;;  %v5966_v40 = vpop.permute.xlu0 %5965 }
  0x87   : > { %v5968_v42 = vunpack.i.h.bf16 %v5966_v40  ;;  %v5967_v43 = vunpack.i.l.bf16 %v5966_v40 }
  0x88   : > { %v412_v46 = vsel %vm406_vm0, 0.0, %v5978_v38  ;;  %v411_v47 = vsel %vm406_vm0, 0.0, %v5977_v39 }
  0x89   : > { %v429_v50 = vsel %vm423_vm1, %v412_v46, 0.0  ;;  %v428_v51 = vsel %vm423_vm1, %v411_v47, 0.0  ;;  %v408_v52 = vsel %vm406_vm0, 0.0, %v5968_v42  ;;  %v407_v53 = vsel %vm406_vm0, 0.0, %v5967_v43 }
  0x8a   : > { %v463_v55 = vrot.slane %v428_v51, 7  ;;  %v7050_v56 = vsel %vm423_vm1, %v408_v52, 0.0  ;;  %v424_v57 = vsel %vm423_vm1, %v407_v53, 0.0  ;;  %v464_v59 = vrot.slane %v429_v50, 7 }
  0x8b   : > { %v458_v60 = vrot.slane %v7050_v56, 7  ;;  %v457_v61 = vrot.slane %v424_v57, 7  ;;  %v7140_v51 = vpack.i.bf16 %v7091_v17, %v7094_v18 }
  0x8c   : > { %v7061_v63 = vsel %vm456_vm2, 0.0, %v463_v55  ;;  %v7080_v12 = vsel %vm456_vm2, %v463_v55, %v464_v59  ;;  %v7115_v31 = vsel %vm456_vm2, %v464_v59, 0.0 }
  0x8d   : > { %v521_v3 = vrot.slane %v7061_v63, 4  ;;  %v5981_v4 = vpop.permute.xlu1 %5980  ;;  %v7072_v8 = vsel %vm456_vm2, %v457_v61, %v458_v60  ;;  %v7083_v13 = vsel %vm456_vm2, 0.0, %v457_v61  ;;  %v7101_v26 = vpack.i.bf16 %v7080_v12, %v7061_v63 }
  0x8e   : > { %v5971_v14 = vpop.permute.xlu0 %5970  ;;  %v2559_v19 = vrot.slane %v7083_v13, 2  ;;  %v2560_v20 = vrot.slane %v7072_v8, 2  ;;  %v5983_v22 = vunpack.i.h.bf16 %v5981_v4  ;;  %v5982_v23 = vunpack.i.l.bf16 %v5981_v4 }
  0x8f   : > { %v7088_v16 = vsel %vm522_vm4, %v521_v3, %v7083_v13  ;;  %v5973_v24 = vunpack.i.h.bf16 %v5971_v14  ;;  %v5972_v25 = vunpack.i.l.bf16 %v5971_v14  ;;  %v7112_v30 = vpack.i.bf16 %v7072_v8, %v7083_v13  ;;  %6015 = vrot.lane.b32.xlu2 %v7101_v26, %s6951_s15 }
  0x90   : > { %v7106_v27 = vsel %vm2558_vm3, %v2559_v19, %v2560_v20  ;;  %v414_v29 = vsel %vm406_vm0, 0.0, %v5983_v22  ;;  %v413_v34 = vsel %vm406_vm0, 0.0, %v5982_v23  ;;  %v2572_v52 = vrot.slane %v7115_v31, 2 }
  0x91   : > { %11826 = vst [vmem:[#allocation6_spill] sm:$0xff] %v7106_v27  ;;  %v431_v33 = vsel %vm423_vm1, %v414_v29, 0.0  ;;  %v430_v36 = vsel %vm423_vm1, %v413_v34, 0.0  ;;  %v410_v37 = vsel %vm406_vm0, 0.0, %v5973_v24  ;;  %v409_v38 = vsel %vm406_vm0, 0.0, %v5972_v25  ;;  %6005 = vrot.lane.b32.xlu0 %v7112_v30, %s6951_s15 }
  0x92   : > { %v467_v35 = vrot.slane %v431_v33, 7  ;;  %v466_v40 = vrot.slane %v430_v36, 7  ;;  %v427_v41 = vsel %vm423_vm1, %v410_v37, 0.0  ;;  %v426_v42 = vsel %vm423_vm1, %v409_v38, 0.0 }
  0x93   : > { %v461_v46 = vrot.slane %v427_v41, 7  ;;  %v460_v47 = vrot.slane %v426_v42, 7  ;;  %v2570_v53 = vrot.slane %v7080_v12, 2  ;;  %v7159_v19 = vpack.i.bf16 %v7058_v62, %v7054_v58 }
  0x94   : > { %v7133_v49 = vsel %vm456_vm2, %v466_v40, %v467_v35  ;;  %v7136_v50 = vsel %vm456_vm2, 0.0, %v466_v40  ;;  %v1537_v22 = vrot.slane %v7115_v31, 1  ;;  %v7166_v24 = vsel %vm456_vm2, %v458_v60, 0.0 }
  0x95   : > { %v6001_v39 = vpop.permute.xlu1 %6000  ;;  %v2574_v55 = vrot.slane %v7136_v50, 2  ;;  %v2575_v57 = vrot.slane %v7133_v49, 2  ;;  %v7147_v59 = vsel %vm456_vm2, %v461_v46, 0.0  ;;  %v7150_v61 = vsel %vm456_vm2, %v460_v47, %v461_v46 }
  0x96   : > { %v6003_v43 = vunpack.i.h.bf16 %v6001_v39  ;;  %v6002_v1 = vunpack.i.l.bf16 %v6001_v39  ;;  %v2567_v4 = vrot.slane %v7147_v59, 2  ;;  %v5996_v14 = vpop.permute.xlu0 %5995  ;;  %v7169_v25 = vsel %vm456_vm2, 0.0, %v460_v47 }
  0x97   : > { %v7154_v3 = vsel %vm2558_vm3, %v2574_v55, %v2575_v57  ;;  %6030 = vrot.lane.b32.xlu2 %v7140_v51, %s6951_s15  ;;  %v7174_v29 = vsel %vm2558_vm3, %v2570_v53, %v2572_v52  ;;  %v7177_v33 = vsel %vm456_vm2, %v467_v35, 0.0  ;;  %v11696_v34 = vrot.slane %v7150_v61, 2 }
  0x98   : > { %v422_v0 = vsel %vm406_vm0, 0.0, %v6003_v43  ;;  %11827 = vst [vmem:[#allocation7_spill] sm:$0xff] %v7154_v3  ;;  %v421_v60 = vsel %vm406_vm0, 0.0, %v6002_v1  ;;  %v5998_v37 = vunpack.i.h.bf16 %v5996_v14  ;;  %v5997_v38 = vunpack.i.l.bf16 %v5996_v14 }
  0x99   : > { %11828 = vst [vmem:[#allocation8_spill] sm:$0xff] %v7174_v29  ;;  %v439_v36 = vsel %vm423_vm1, %v422_v0, 0.0  ;;  %v7185_v39 = vsel %vm2558_vm3, %v11696_v34, %v2567_v4  ;;  %v438_v40 = vsel %vm423_vm1, %v421_v60, 0.0  ;;  %v7190_v35 = vpack.i.bf16 %v7150_v61, %v7169_v25 }
  0x9a   : > { %v479_v56 = vrot.slane %v439_v36, 7  ;;  %11829 = vst [vmem:[#allocation9_spill] sm:$0xff] %v7185_v39  ;;  %v7194_v41 = vpack.i.bf16 %v7133_v49, %v7136_v50  ;;  %v2569_v42 = vrot.slane %v7061_v63, 2  ;;  %v2562_v43 = vrot.slane %v7166_v24, 2 }
  0x9b   : > { %v478_v46 = vrot.slane %v438_v40, 7  ;;  %v420_v47 = vsel %vm406_vm0, 0.0, %v5998_v37  ;;  %v2727_v52 = vrot.slane %v7174_v29, 4  ;;  %v2577_v55 = vrot.slane %v7177_v33, 2  ;;  %6010 = vrot.lane.b32.xlu1 %v7190_v35, %s6951_s15 }
  0x9c   : > { %v437_v0 = vsel %vm423_vm1, %v420_v47, 0.0  ;;  %v419_v1 = vsel %vm406_vm0, 0.0, %v5997_v38  ;;  %6020 = vrot.lane.b32.xlu0 %v7194_v41, %s6951_s15  ;;  %v534_v38 = vrot.slane %v7136_v50, 4  ;;  %v7219_v28 = vsel %vm2558_vm3, %v2569_v42, %v2570_v53 }
  0x9d   : > { %v7208_v4 = vsel %vm456_vm2, %v478_v46, %v479_v56  ;;  %v7211_v14 = vsel %vm456_vm2, 0.0, %v478_v46  ;;  %v476_v36 = vrot.slane %v437_v0, 7  ;;  %v436_v60 = vsel %vm423_vm1, %v419_v1, 0.0  ;;  %11830 = vst [vmem:[#allocation10_spill] sm:$0xff] %v7219_v28 }
  0x9e   : > { %v2594_v47 = vrot.slane %v7211_v14, 2  ;;  %v7224_v45 = vsel %vm2558_vm3, %v2560_v20, %v2562_v43  ;;  %v2595_v46 = vrot.slane %v7208_v4, 2  ;;  %v475_v0 = vrot.slane %v436_v60, 7 }
  0x9f   : > { %11831 = vst [vmem:[#allocation11_spill] sm:$0xff] %v7224_v45  ;;  %v7230_v48 = vsel %vm522_vm4, %v2727_v52, %v7224_v45  ;;  %v7233_v6 = vsel %vm2558_vm3, %v2575_v57, %v2577_v55  ;;  %v520_v53 = vsel %vm456_vm2, %v479_v56, 0.0  ;;  %v1532_v11 = vrot.slane %v7147_v59, 1  ;;  %6055 = vrot.lane.b32.xlu2 %v7101_v26, %s6952_s16 }
  0xa0   : > { %11832 = vst [vmem:[#allocation12_spill] sm:$0xff] %v7230_v48  ;;  %v7237_v42 = vsel %vm2558_vm3, %v2594_v47, %v2595_v46  ;;  %v7240_v20 = vsel %vm456_vm2, %v475_v0, %v476_v36  ;;  %v7243_v43 = vsel %vm456_vm2, 0.0, %v475_v0  ;;  %v535_v57 = vsel %vm522_vm4, %v534_v38, %v7169_v25 }
  0xa1   : > { %11833 = vst [vmem:[#allocation13_spill] sm:$0xff] %v7233_v6  ;;  %v2589_v55 = vrot.slane %v7243_v43, 2  ;;  %v2590_v47 = vrot.slane %v7240_v20, 2  ;;  %v7257_v0 = vpack.i.bf16 %v7240_v20, %v7243_v43  ;;  %v2597_v59 = vrot.slane %v520_v53, 2 }
  0xa2   : > { %11834 = vst [vmem:[#allocation14_spill] sm:$0xff] %v7237_v42  ;;  %v561_v38 = vsel %vm522_vm4, %v7211_v14, %v560_v32  ;;  %v7265_v26 = vsel %vm456_vm2, %v476_v36, 0.0  ;;  %v7270_v56 = vperm.slane %v535_v57, %v7065_v5  ;;  %v1530_v10 = vrot.slane %v7150_v61, 1 }
  0xa3   : > { %6025 = vrot.lane.b32.xlu1 %v7159_v19, %s6951_s15  ;;  %v7274_v44 = vsel %vm2558_vm3, %v2589_v55, %v2590_v47  ;;  %v1562_v36 = vrot.slane %v520_v53, 1  ;;  %v1529_v15 = vrot.slane %v7169_v25, 1  ;;  %v7283_v57 = vperm.slane %v561_v38, %v7065_v5 }
  0xa4   : > { %11835 = vst [vmem:[#allocation15_spill] sm:$0xff] %v7274_v44  ;;  %6035 = vrot.lane.b32.xlu0 %v7257_v0, %s6951_s15  ;;  %v2592_v1 = vrot.slane %v7265_v26, 2  ;;  %v7289_v52 = vsel %vm2558_vm3, %v2595_v46, %v2597_v59  ;;  %v7293_v32 = vpack.i.bf16 %v7208_v4, %v7211_v14  ;;  %v1559_v53 = vrot.slane %v7211_v14, 1 }
  0xa5   : > { %11836 = vst [vmem:[#allocation16_spill] sm:$0xff] %v7289_v52  ;;  %v1560_v23 = vrot.slane %v7208_v4, 1  ;;  %v7302_v34 = vsel %vm522_vm4, %v7243_v43, %v548_v7  ;;  %v7306_v46 = vsel %vm1523_vm5, %v1530_v10, %v1532_v11  ;;  %v7311_v59 = vsel %vm1523_vm5, %v1529_v15, %v1530_v10 }
  0xa6   : > { %v1544_v40 = vrot.slane %v7054_v58, 1  ;;  %v1545_v38 = vrot.slane %v7058_v62, 1  ;;  %v7316_v60 = vsel %vm2558_vm3, %v2590_v47, %v2592_v1  ;;  %v1535_v7 = vrot.slane %v7080_v12, 1 }
  0xa7   : > { %6070 = vrot.lane.b32.xlu2 %v7140_v51, %s6952_s16  ;;  %11837 = vst [vmem:[#allocation17_spill] sm:$0xff] %v7316_v60  ;;  %v1561_v55 = vsel %vm1523_vm5, %v1559_v53, %v1560_v23  ;;  %v1534_v51 = vrot.slane %v7061_v63, 1  ;;  %v7328_v10 = vpack.i.bf16 %v7306_v46, %v7311_v59  ;;  %v1563_v15 = vsel %vm1523_vm5, %v1560_v23, %v1562_v36 }
  0xa8   : > { %v1549_v1 = vrot.slane %v7094_v18, 1  ;;  %v1550_v47 = vrot.slane %v7091_v17, 1  ;;  %v1594_v37 = vrot.slane %v7311_v59, 4  ;;  %v7335_v11 = vsel %vm1523_vm5, %v1544_v40, %v1545_v38 }
  0xa9   : > { %v7340_v53 = vsel %vm1523_vm5, %v1545_v38, %v1547_v2  ;;  %v7345_v21 = vsel %vm1523_vm5, %v1535_v7, %v1537_v22  ;;  %v11838_v36 = vrot.slane %v7075_v9, 1  ;;  %v1728_v45 = vrot.slane %v1563_v15, 4 }
  0xaa   : > { %v1551_v23 = vsel %vm1523_vm5, %v1549_v1, %v1550_v47  ;;  %v7352_v40 = vsel %vm1523_vm5, %v1534_v51, %v1535_v7  ;;  %v1539_v48 = vrot.slane %v7136_v50, 1  ;;  %v1540_v2 = vrot.slane %v7133_v49, 1 }
  0xab   : > { %6040 = vrot.lane.b32.xlu1 %v7293_v32, %s6951_s15  ;;  %v1553_v29 = vsel %vm1523_vm5, %v1550_v47, %v11838_v36  ;;  %v1618_v6 = vrot.slane %v1551_v23, 4  ;;  %v1525_v31 = vrot.slane %v7072_v8, 1  ;;  %v7362_v1 = vpack.i.bf16 %v7340_v53, %v7335_v11 }
  0xac   : > { %6045 = vrot.lane.b32.xlu0 %v7112_v30, %s6952_s16  ;;  %v1616_v30 = vrot.slane %v1561_v55, 4  ;;  %v1730_v38 = vrot.slane %v1553_v29, 4  ;;  %v1692_v7 = vrot.slane %v7345_v21, 4  ;;  %v1524_v51 = vrot.slane %v7083_v13, 1 }
  0xad   : > { %v7367_v36 = vpack.i.bf16 %v1563_v15, %v1561_v55  ;;  %v7371_v39 = vpack.i.bf16 %v7345_v21, %v7352_v40  ;;  %v1580_v9 = vrot.slane %v7352_v40, 4  ;;  %v1729_v54 = vsel %vm522_vm4, %v1728_v45, %v1553_v29 }
  0xae   : > { %v1617_v22 = vsel %vm522_vm4, %v1616_v30, %v1551_v23  ;;  %v1541_v42 = vsel %vm1523_vm5, %v1539_v48, %v1540_v2  ;;  %v1619_v47 = vsel %vm522_vm4, %v1561_v55, %v1618_v6  ;;  %v1731_v27 = vsel %vm522_vm4, %v1563_v15, %v1730_v38 }
  0xaf   : > { %6090 = vrot.lane.b32.xlu2 %v7328_v10, %s6951_s15  ;;  %11839 = vst [vmem:[#allocation18_spill] sm:$0xff] %v7367_v36  ;;  %v11840_v60 = vrot.slane %v7166_v24, 1  ;;  %v1592_v44 = vrot.slane %v1541_v42, 4  ;;  %v11841_v48 = vrot.slane %v7177_v33, 1  ;;  %v7398_v6 = vpack.i.bf16 %v1553_v29, %v1551_v23 }
  0xb0   : > { %v7401_v55 = vperm.slane %v1617_v22, %v7065_v5  ;;  %v7404_v24 = vperm.slane %v1729_v54, %v7065_v5  ;;  %v7410_v15 = vperm.slane %v1731_v27, %v7065_v5  ;;  %v11842_v27 = vrot.slane %v7243_v43, 4 }
  0xb1   : > { %v7386_v52 = vsel %vm1523_vm5, %v1525_v31, %v11840_v60  ;;  %v7407_v60 = vperm.slane %v1619_v47, %v7065_v5  ;;  %v11843_v38 = vrot.slane %v7211_v14, 4  ;;  %v570_v22 = vrot.slane %v7270_v56, 4 }
  0xb2   : > { %v1693_v45 = vsel %vm522_vm4, %v1692_v7, %v7386_v52  ;;  %v1554_v14 = vrot.slane %v7243_v43, 1 }
  0xb3   : > { %6050 = vrot.lane.b32.xlu1 %v7190_v35, %s6952_s16  ;;  %v7389_v35 = vsel %vm1523_vm5, %v1524_v51, %v1525_v31  ;;  %v7416_v29 = vperm.slane %v1693_v45, %v7065_v5  ;;  %v559_v31 = vsel %vm522_vm4, %v11843_v38, %v7094_v18 }
  0xb4   : > { %6060 = vrot.lane.b32.xlu0 %v7194_v41, %s6952_s16  ;;  %v7396_v41 = vsel %vm1523_vm5, %v1540_v2, %v11841_v48  ;;  %v1581_v33 = vsel %vm522_vm4, %v1580_v9, %v7389_v35  ;;  %v7420_v23 = vpack.i.bf16 %v7386_v52, %v7389_v35  ;;  %v1593_v2 = vsel %vm522_vm4, %v1592_v44, %v7311_v59 }
  0xb5   : > { %v1704_v54 = vrot.slane %v7396_v41, 4  ;;  %v547_v9 = vsel %vm522_vm4, %v11842_v27, %v7054_v58  ;;  %v7438_v51 = vperm.slane %v1581_v33, %v7065_v5  ;;  %v565_v44 = vperm.slane %v559_v31, %v7065_v5 }
  0xb6   : > { %v6953_v59 = vmov 1934713408   ;;  %v7444_v45 = vpack.i.bf16 %v7396_v41, %v1541_v42  ;;  %v1555_v48 = vrot.slane %v7240_v20, 1  ;;  %v529_v27 = vperm.slane %v7088_v16, %v7065_v5 }
  0xb7   : > { %6105 = vrot.lane.b32.xlu2 %v7362_v1, %s6951_s15  ;;  %v575_v47 = vunpack.c.l.s4 %v6953_v59  ;;  %v7453_v33 = vsel %vm522_vm4, %v1541_v42, %v1594_v37  ;;  %v7456_v38 = vperm.slane %v1593_v2, %v7065_v5  ;;  %v553_v31 = vperm.slane %v547_v9, %v7065_v5 }
  0xb8   : > { %v571_v43 = vsel %vm522_vm4, %v570_v22, %v529_v27  ;;  %v594_v59 = vrot.slane %v565_v44, 4  ;;  %v11844_v16 = vrot.slane %v7080_v12, 4  ;;  %v11845_v37 = vrot.slane %v7133_v49, 4 }
  0xb9   : > { %v11846_v9 = vrot.slane %v7240_v20, 4  ;;  %v7479_v7 = vsel %vm1523_vm5, %v1554_v14, %v1555_v48 }
  0xba   : > { %v635_v30 = vsel %vm522_vm4, %v11844_v16, %v7072_v8  ;;  %v647_v42 = vsel %vm522_vm4, %v11845_v37, %v7150_v61  ;;  %v11847_v16 = vrot.slane %v7265_v26, 1  ;;  %v572_v26 = vrot.slane %v529_v27, 4 }
  0xbb   : > { %6065 = vrot.lane.b32.xlu1 %v7159_v19, %s6952_s16  ;;  %v1705_v19 = vsel %vm522_vm4, %v1704_v54, %v7306_v46  ;;  %v641_v2 = vperm.slane %v635_v30, %v7065_v5  ;;  %v653_v54 = vperm.slane %v647_v42, %v7065_v5  ;;  %v659_v22 = vsel %vm522_vm4, %v11846_v9, %v7058_v62 }
  0xbc   : > { %6075 = vrot.lane.b32.xlu0 %v7257_v0, %s6952_s16  ;;  %v7470_v0 = vunpack.c.0.s8 %v575_v47  ;;  %v7484_v18 = vsel %vm1523_vm5, %v1555_v48, %v11847_v16  ;;  %v665_v47 = vperm.slane %v659_v22, %v7065_v5  ;;  %v11848_v30 = vrot.slane %v7208_v4, 4 }
  0xbd   : > { %v595_v9 = vsel %vm522_vm4, %v594_v59, %v553_v31  ;;  %v682_v58 = vrot.slane %v653_v54, 4  ;;  %v596_v48 = vrot.slane %v553_v31, 4  ;;  %v684_v16 = vrot.slane %v641_v2, 4 }
  0xbe   : > { %v671_v37 = vsel %vm522_vm4, %v11848_v30, %v7091_v17  ;;  %v7492_v42 = vperm.slane %v571_v43, %v7470_v0  ;;  %v708_v22 = vrot.slane %v665_v47, 4  ;;  %v7499_v3 = vperm.slane %v1705_v19, %v7065_v5 }
  0xbf   : > { %v677_v14 = vperm.slane %v671_v37, %v7065_v5  ;;  %6120 = vrot.lane.b32.xlu2 %v7367_v36, %s6951_s15  ;;  %v683_v43 = vsel %vm522_vm4, %v682_v58, %v641_v2  ;;  %v573_v27 = vsel %vm522_vm4, %v7270_v56, %v572_v26  ;;  %v597_v31 = vsel %vm522_vm4, %v565_v44, %v596_v48 }
  0xc0   : > { %11849 = vst [vmem:[#allocation19_spill] sm:$0xff] %v7492_v42  ;;  %v7506_v59 = vperm.slane %v683_v43, %v7470_v0  ;;  %v685_v37 = vsel %vm522_vm4, %v653_v54, %v684_v16  ;;  %v7516_v58 = vperm.slane %v595_v9, %v7470_v0  ;;  %v7520_v2 = vperm.slane %v597_v31, %v7470_v0 }
  0xc1   : > { %v706_v28 = vrot.slane %v677_v14, 4  ;;  %v620_v43 = vrot.slane %v7492_v42, 4  ;;  %v7524_v56 = vperm.slane %v573_v27, %v7470_v0  ;;  %v709_v44 = vsel %vm522_vm4, %v677_v14, %v708_v22 }
  0xc2   : > { %11850 = vst [vmem:[#allocation20_spill] sm:$0xff] %v7506_v59  ;;  %v11852_v54 = vrot.slane %v7083_v13, 4  ;;  %v622_v9 = vrot.slane %v7520_v2, 4  ;;  %v7533_v48 = vperm.slane %v685_v37, %v7470_v0  ;;  %v732_v13 = vrot.slane %v7506_v59, 4 }
  0xc3   : > { %6080 = vrot.lane.b32.xlu1 %v7293_v32, %s6952_s16  ;;  %11851 = vst [vmem:[#allocation21_spill] sm:$0xff] %v7516_v58  ;;  %v707_v32 = vsel %vm522_vm4, %v706_v28, %v665_v47  ;;  %v7536_v28 = vperm.slane %v709_v44, %v7470_v0  ;;  %v11853_v47 = vrot.slane %v7169_v25, 4  ;;  %v557_v37 = vperm.slane %v7302_v34, %v7065_v5 }
  0xc4   : > { %6095 = vrot.lane.b32.xlu0 %v7371_v39, %s6951_s15  ;;  %v525_v26 = vsel %vm522_vm4, %v7061_v63, %v11852_v54  ;;  %v7543_v14 = vperm.slane %v707_v32, %v7470_v0  ;;  %v7550_v27 = vsel %vm522_vm4, %v622_v9, %v7524_v56  ;;  %v11855_v44 = vrot.slane %v7072_v8, 4 }
  0xc5   : > { %v537_v16 = vsel %vm522_vm4, %v7136_v50, %v11853_v47  ;;  %v533_v63 = vperm.slane %v525_v26, %v7065_v5  ;;  %v734_v31 = vrot.slane %v7536_v28, 4  ;;  %v606_v50 = vrot.slane %v7283_v57, 4 }
  0xc6   : > { %11854 = vst [vmem:[#allocation22_spill] sm:$0xff] %v7543_v14  ;;  %v545_v22 = vperm.slane %v537_v16, %v7065_v5  ;;  %v637_v54 = vsel %vm522_vm4, %v7080_v12, %v11855_v44  ;;  %v11856_v26 = vrot.slane %v7150_v61, 4  ;;  %v11857_v47 = vrot.slane %v7058_v62, 4 }
  0xc7   : > { %6130 = vrot.lane.b32.xlu2 %v7328_v10, %s6952_s16  ;;  %v7572_v16 = vsel %vm522_vm4, %v734_v31, %v7533_v48  ;;  %v607_v10 = vsel %vm522_vm4, %v606_v50, %v557_v37  ;;  %v645_v8 = vperm.slane %v637_v54, %v7065_v5  ;;  %v621_v31 = vsel %vm522_vm4, %v7516_v58, %v620_v43 }
  0xc8   : > { %v582_v32 = vrot.slane %v545_v22, 4  ;;  %v649_v9 = vsel %vm522_vm4, %v7133_v49, %v11856_v26  ;;  %v661_v34 = vsel %vm522_vm4, %v7240_v20, %v11857_v47  ;;  %v613_v20 = vperm.slane %v607_v10, %v7470_v0 }
  0xc9   : > { %v657_v12 = vperm.slane %v649_v9, %v7065_v5  ;;  %v669_v26 = vperm.slane %v661_v34, %v7065_v5  ;;  %v11858_v54 = vrot.slane %v7091_v17, 4  ;;  %v584_v34 = vrot.slane %v533_v63, 4 }
  0xca   : > { %v583_v44 = vsel %vm522_vm4, %v582_v32, %v533_v63  ;;  %v733_v32 = vsel %vm522_vm4, %v7543_v14, %v732_v13  ;;  %v608_v49 = vrot.slane %v557_v37, 4  ;;  %v696_v59 = vrot.slane %v645_v8, 4 }
  0xcb   : > { %6085 = vrot.lane.b32.xlu1 %v7420_v23, %s6951_s15  ;;  %v589_v50 = vperm.slane %v583_v44, %v7470_v0  ;;  %v673_v9 = vsel %vm522_vm4, %v7208_v4, %v11858_v54  ;;  %v694_v47 = vrot.slane %v657_v12, 4  ;;  %v720_v43 = vrot.slane %v669_v26, 4 }
  0xcc   : > { %6110 = vrot.lane.b32.xlu0 %v7398_v6, %s6951_s15  ;;  %v681_v10 = vperm.slane %v673_v9, %v7065_v5  ;;  %v626_v42 = vrot.slane %v613_v20, 4  ;;  %v585_v36 = vsel %vm522_vm4, %v545_v22, %v584_v34  ;;  %v609_v63 = vsel %vm522_vm4, %v7283_v57, %v608_v49 }
  0xcd   : > { %v695_v30 = vsel %vm522_vm4, %v694_v47, %v645_v8  ;;  %v628_v19 = vrot.slane %v589_v50, 4  ;;  %v7603_v13 = vperm.slane %v585_v36, %v7470_v0  ;;  %v697_v37 = vsel %vm522_vm4, %v657_v12, %v696_v59 }
  0xce   : > { %v701_v44 = vperm.slane %v695_v30, %v7470_v0  ;;  %v718_v58 = vrot.slane %v681_v10, 4  ;;  %v7612_v54 = vperm.slane %v609_v63, %v7470_v0  ;;  %v721_v57 = vsel %vm522_vm4, %v681_v10, %v720_v43 }
  0xcf   : > { %v7600_v4 = vsel %vm522_vm4, %v613_v20, %v628_v19  ;;  %6145 = vrot.lane.b32.xlu2 %v7362_v1, %s6952_s16  ;;  %v7615_v19 = vperm.slane %v697_v37, %v7470_v0  ;;  %v632_v22 = vrot.slane %v7603_v13, 4  ;;  %v624_v59 = vrot.slane %v7524_v56, 4 }
  0xd0   : > { %v719_v8 = vsel %vm522_vm4, %v718_v58, %v669_v26  ;;  %v740_v30 = vrot.slane %v701_v44, 4  ;;  %v627_v1 = vsel %vm522_vm4, %v626_v42, %v589_v50  ;;  %v729_v58 = vperm.slane %v721_v57, %v7470_v0 }
  0xd1   : > { %v725_v36 = vperm.slane %v719_v8, %v7470_v0  ;;  %v744_v12 = vrot.slane %v7615_v19, 4  ;;  %v736_v49 = vrot.slane %v7533_v48, 4  ;;  %v7634_v56 = vsel %vm522_vm4, %v7612_v54, %v632_v22 }
  0xd2   : > { %v7638_v42 = vsel %vm522_vm4, %v7520_v2, %v624_v59  ;;  %v11859_v9 = vrot.slane %v7479_v7, 4  ;;  %v1628_v43 = vrot.slane %v7456_v38, 4  ;;  %v6154_v63 = vpack.i.bf16 %v733_v32, %v621_v31 }
  0xd3   : > { %6100 = vrot.lane.b32.xlu1 %v7444_v45, %s6951_s15  ;;  %v738_v20 = vrot.slane %v725_v36, 4  ;;  %v7630_v26 = vsel %vm522_vm4, %v725_v36, %v740_v30  ;;  %v7643_v48 = vsel %vm522_vm4, %v729_v58, %v744_v12  ;;  %v1740_v8 = vrot.slane %v7499_v3, 4 }
  0xd4   : > { %6135 = vrot.lane.b32.xlu0 %v7371_v39, %s6952_s16  ;;  %v6174_v50 = vpack.i.bf16 %v7630_v26, %v7600_v4  ;;  %v7647_v39 = vsel %vm522_vm4, %v7536_v28, %v736_v49  ;;  %v1605_v47 = vsel %vm522_vm4, %v11859_v9, %v7335_v11  ;;  %v6184_v2 = vpack.i.bf16 %v7643_v48, %v7634_v56 }
  0xd5   : > { %v739_v10 = vsel %vm522_vm4, %v738_v20, %v701_v44  ;;  %v6164_v34 = vpack.i.bf16 %v7647_v39, %v7638_v42  ;;  %v1652_v28 = vrot.slane %v7401_v55, 4  ;;  %v1630_v30 = vrot.slane %v7438_v51, 4 }
  0xd6   : > { %v6169_v37 = vpack.i.bf16 %v739_v10, %v627_v1  ;;  %v11860_v36 = vrot.slane %v7306_v46, 4  ;;  %v1611_v22 = vperm.slane %v1605_v47, %v7065_v5  ;;  %v1629_v57 = vsel %vm522_vm4, %v1628_v43, %v7438_v51 }
  0xd7   : > { %v11861_v59 = vrot.slane %v7340_v53, 4  ;;  %v7675_v32 = vpack.i.bf16 %v7484_v18, %v7479_v7  ;;  %v11862_v1 = vrot.slane %v7335_v11, 4  ;;  %6155 = vrot.lane.b32.xlu2 %v6154_v63, %s6954_s17  ;;  %v1742_v12 = vrot.slane %v7416_v29, 4 }
  0xd8   : > { %v1707_v44 = vsel %vm522_vm4, %v7396_v41, %v11860_v36  ;;  %v11863_v41 = vrot.slane %v7484_v18, 4  ;;  %v1653_v49 = vsel %vm522_vm4, %v1652_v28, %v1611_v22  ;;  %v1631_v20 = vsel %vm522_vm4, %v7456_v38, %v1630_v30 }
  0xd9   : > { %v1719_v31 = vsel %vm522_vm4, %v7484_v18, %v11861_v59  ;;  %v1607_v46 = vsel %vm522_vm4, %v7479_v7, %v11862_v1  ;;  %v1603_v11 = vperm.slane %v7453_v33, %v7065_v5  ;;  %v7695_v7 = vperm.slane %v1629_v57, %v7470_v0 }
  0xda   : > { %v1717_v51 = vsel %vm522_vm4, %v11863_v41, %v7340_v53  ;;  %v1741_v18 = vsel %vm522_vm4, %v1740_v8, %v7416_v29  ;;  %v1764_v53 = vrot.slane %v7404_v24, 4  ;;  %v7701_v9 = vperm.slane %v1707_v44, %v7065_v5 }
  0xdb   : > { %6115 = vrot.lane.b32.xlu1 %v7675_v32, %s6951_s15  ;;  %11864 = vst [vmem:[#allocation23_spill] sm:$0xff] %v7695_v7  ;;  %v7706_v38 = vperm.slane %v1719_v31, %v7065_v5  ;;  %v1615_v33 = vperm.slane %v1607_v46, %v7065_v5  ;;  %v1723_v47 = vperm.slane %v1717_v51, %v7065_v5  ;;  %v1654_v63 = vrot.slane %v1611_v22, 4 }
  0xdc   : > { %6150 = vrot.lane.b32.xlu0 %v7398_v6, %s6952_s16  ;;  %v7711_v10 = vperm.slane %v1653_v49, %v7470_v0  ;;  %v7714_v29 = vperm.slane %v1631_v20, %v7470_v0  ;;  %v7717_v43 = vperm.slane %v1741_v18, %v7470_v0  ;;  %v630_v28 = vrot.slane %v7612_v54, 4 }
  0xdd   : > { %v742_v6 = vrot.slane %v729_v58, 4  ;;  %v1678_v8 = vrot.slane %v7695_v7, 4  ;;  %v1765_v30 = vsel %vm522_vm4, %v1764_v53, %v1723_v47  ;;  %v1743_v36 = vsel %vm522_vm4, %v7499_v3, %v1742_v12 }
  0xde   : > { %11865 = vst [vmem:[#allocation24_spill] sm:$0xff] %v7711_v10  ;;  %v11867_v44 = vrot.slane %v7389_v35, 4  ;;  %v1766_v59 = vrot.slane %v1723_v47, 4  ;;  %v7730_v31 = vsel %vm522_vm4, %v630_v28, %v7603_v13  ;;  %v1640_v35 = vrot.slane %v1603_v11, 4 }
  0xdf   : > { %11866 = vst [vmem:[#allocation25_spill] sm:$0xff] %v7717_v43  ;;  %v7734_v54 = vsel %vm522_vm4, %v742_v6, %v7615_v19  ;;  %6170 = vrot.lane.b32.xlu2 %v6169_v37, %s6955_s18  ;;  %v11868_v22 = vrot.slane %v7386_v52, 4  ;;  %v1655_v19 = vsel %vm522_vm4, %v7401_v55, %v1654_v63  ;;  %v1752_v46 = vrot.slane %v7701_v9, 4 }
  0xe0   : > { %v1583_v57 = vsel %vm522_vm4, %v7352_v40, %v11867_v44  ;;  %v6179_v3 = vpack.i.bf16 %v7734_v54, %v7730_v31  ;;  %v1664_v40 = vrot.slane %v7407_v60, 4  ;;  %v1776_v37 = vrot.slane %v7410_v15, 4 }
  0xe1   : > { %v1591_v58 = vperm.slane %v1583_v57, %v7065_v5  ;;  %v1695_v13 = vsel %vm522_vm4, %v7345_v21, %v11868_v22  ;;  %v7753_v41 = vperm.slane %v1765_v30, %v7470_v0  ;;  %v1682_v52 = vrot.slane %v7714_v29, 4 }
  0xe2   : > { %v1703_v1 = vperm.slane %v1695_v13, %v7065_v5  ;;  %v1665_v21 = vsel %vm522_vm4, %v1664_v40, %v1615_v33  ;;  %v11870_v55 = vpack.i.bf16 %v7572_v16, %v7550_v27  ;;  %v1767_v12 = vsel %vm522_vm4, %v7404_v24, %v1766_v59 }
  0xe3   : > { %6125 = vrot.lane.b32.xlu1 %v7420_v23, %s6952_s16  ;;  %11869 = vst [vmem:[#allocation26_spill] sm:$0xff] %v7753_v41  ;;  %v1641_v51 = vsel %vm522_vm4, %v1640_v35, %v1591_v58  ;;  %v1671_v23 = vperm.slane %v1665_v21, %v7470_v0  ;;  %v1777_v20 = vsel %vm522_vm4, %v1776_v37, %v7706_v38  ;;  %v1790_v18 = vrot.slane %v7717_v43, 4 }
  0xe4   : > { %6160 = vrot.lane.b32.xlu0 %v11870_v55, %s6956_s19  ;;  %v1753_v49 = vsel %vm522_vm4, %v1752_v46, %v1703_v1  ;;  %v7770_v53 = vperm.slane %v1655_v19, %v7470_v0  ;;  %v7773_v47 = vperm.slane %v1743_v36, %v7470_v0  ;;  %v1783_v27 = vperm.slane %v1777_v20, %v7470_v0 }
  0xe5   : > { %v1647_v16 = vperm.slane %v1641_v51, %v7470_v0  ;;  %v1684_v24 = vrot.slane %v1671_v23, 4  ;;  %v1642_v63 = vrot.slane %v1591_v58, 4  ;;  %v1666_v28 = vrot.slane %v1615_v33, 4 }
  0xe6   : > { %v7778_v6 = vperm.slane %v1767_v12, %v7470_v0  ;;  %v1759_v30 = vperm.slane %v1753_v49, %v7470_v0  ;;  %v1796_v44 = vrot.slane %v1783_v27, 4  ;;  %v1778_v57 = vrot.slane %v7706_v38, 4 }
  0xe7   : > { %v7783_v59 = vsel %vm522_vm4, %v1684_v24, %v1647_v16  ;;  %v1643_v36 = vsel %vm522_vm4, %v1603_v11, %v1642_v63  ;;  %v1667_v35 = vsel %vm522_vm4, %v7407_v60, %v1666_v28  ;;  %v1754_v40 = vrot.slane %v1703_v1, 4  ;;  %6185 = vrot.lane.b32.xlu2 %v6184_v2, %s6957_s20  ;;  %v11875_v28 = vld [vmem:[#allocation15_spill] sm:$0xff] }
  0xe8   : > { %v1679_v33 = vsel %vm522_vm4, %v7711_v10, %v1678_v8  ;;  %v1794_v38 = vrot.slane %v7773_v47, 4  ;;  %v7796_v58 = vsel %vm522_vm4, %v1796_v44, %v1759_v30  ;;  %v1651_v11 = vperm.slane %v1643_v36, %v7470_v0 }
  0xe9   : > { %v6204_v60 = vpack.i.bf16 %v7796_v58, %v7783_v59  ;;  %v1675_v22 = vperm.slane %v1667_v35, %v7470_v0  ;;  %v1755_v13 = vsel %vm522_vm4, %v7701_v9, %v1754_v40  ;;  %v1779_v56 = vsel %vm522_vm4, %v7410_v15, %v1778_v57  ;;  %v11877_v57 = vld [vmem:[#allocation17_spill] sm:$0xff] }
  0xea   : > { %v1683_v48 = vsel %vm522_vm4, %v7770_v53, %v1682_v52  ;;  %v1795_v2 = vsel %vm522_vm4, %v7778_v6, %v1794_v38  ;;  %v1690_v8 = vrot.slane %v1651_v11, 4  ;;  %v1763_v19 = vperm.slane %v1755_v13, %v7470_v0  ;;  %v11879_v38 = vld [vmem:[#allocation3_spill] sm:$0xff]  ;;  %v7864_v13 = vpop.permute.xlu2 %6015 }
  0xeb   : > { %6140 = vrot.lane.b32.xlu1 %v7444_v45, %s6952_s16  ;;  %v1787_v15 = vperm.slane %v1779_v56, %v7470_v0  ;;  %v1688_v9 = vrot.slane %v1675_v22, 4  ;;  %v1686_v1 = vrot.slane %v1647_v16, 4  ;;  %v1798_v45 = vrot.slane %v1759_v30, 4  ;;  %v11876_v30 = vld [vmem:[#allocation16_spill] sm:$0xff] }
  0xec   : > { %6175 = vrot.lane.b32.xlu0 %v6174_v50, %s6958_s21  ;;  %v1791_v46 = vsel %vm522_vm4, %v7753_v41, %v1790_v18  ;;  %v7821_v37 = vsel %vm522_vm4, %v1675_v22, %v1690_v8  ;;  %v1802_v52 = vrot.slane %v1763_v19, 4  ;;  %v11871_v51 = vrot.slane %v7150_v61, 2 }
  0xed   : > { %v11872_v21 = vrot.slane %v7169_v25, 2  ;;  %v7831_v4 = vsel %vm522_vm4, %v1688_v9, %v1651_v11  ;;  %v1800_v26 = vrot.slane %v1787_v15, 4  ;;  %v7834_v50 = vsel %vm522_vm4, %v1671_v23, %v1686_v1  ;;  %v11873_v25 = vld [vmem:[#allocation10_spill] sm:$0xff]  ;;  %v11874_v23 = vld [vmem:[#allocation7_spill] sm:$0xff] }
  0xee   : > { %v7837_v12 = vsel %vm522_vm4, %v1783_v27, %v1798_v45  ;;  %v6199_v49 = vpack.i.bf16 %v1795_v2, %v1683_v48  ;;  %v7840_v20 = vsel %vm522_vm4, %v1787_v15, %v1802_v52  ;;  %v2615_v18 = vrot.slane %v11873_v25, 4  ;;  %v11881_v48 = vld [vmem:[#allocation6_spill] sm:$0xff] }
  0xef   : > { %v7828_v55 = vsel %vm2558_vm3, %v11872_v21, %v11871_v51  ;;  %v7848_v24 = vsel %vm522_vm4, %v1800_v26, %v1763_v19  ;;  %v2627_v63 = vrot.slane %v11874_v23, 4  ;;  %v2639_v27 = vrot.slane %v11875_v28, 4  ;;  %v11882_v19 = vld [vmem:[#allocation14_spill] sm:$0xff] }
  0xf0   : > { %v2763_v44 = vrot.slane %v11876_v30, 4  ;;  %v2751_v36 = vrot.slane %v11877_v57, 4  ;;  %6200 = vrot.lane.b32.xlu2 %v6199_v49, %s6959_s22  ;;  %v6224_v35 = vpack.i.bf16 %v7848_v24, %v7831_v4  ;;  %v11878_v40 = vrot.slane %v7058_v62, 2  ;;  %v11883_v9 = vld [vmem:[#allocation2_spill] sm:$0xff]  ;;  %v11889_v49 = vld [vmem:[#allocation4_spill] sm:$0xff] }
  0xf1   : > { %v11880_v11 = vrot.slane %v11879_v38, 2  ;;  %v6189_v56 = vpack.i.bf16 %v1791_v46, %v1679_v33  ;;  %v2616_v2 = vsel %vm522_vm4, %v2615_v18, %v11881_v48  ;;  %v2651_v15 = vrot.slane %v11882_v19, 4  ;;  %v11887_v46 = vld [vmem:[#allocation5_spill] sm:$0xff] }
  0xf2   : > { %v11884_v1 = vrot.slane %v11883_v9, 2  ;;  %v11885_v45 = vmov %v11878_v40  ;;  %v11886_v33 = vrot.slane %v7091_v17, 2  ;;  %v11888_v51 = vrot.slane %v11887_v46, 2  ;;  %v11895_v9 = vld [vmem:[#allocation12_spill] sm:$0xff] }
  0xf3   : > { %v7862_v22 = vsel %vm2558_vm3, %v11880_v11, %v11878_v40  ;;  %6165 = vrot.lane.b32.xlu1 %v6164_v34, %s6959_s22  ;;  %v11890_v62 = vrot.slane %v11889_v49, 2  ;;  %v2628_v42 = vsel %vm522_vm4, %v2627_v63, %v7828_v55  ;;  %v11892_v34 = vld [vmem:[#allocation9_spill] sm:$0xff]  ;;  %v1680_v46 = vrot.slane %v7770_v53, 4 }
  0xf4   : > { %v2640_v8 = vsel %vm522_vm4, %v2639_v27, %v7862_v22  ;;  %v7876_v52 = vsel %vm2558_vm3, %v11885_v45, %v11884_v1  ;;  %v7887_v21 = vsel %vm2558_vm3, %v11888_v51, %v11886_v33  ;;  %v11891_v18 = vmov %v11886_v33  ;;  %6190 = vrot.lane.b32.xlu0 %v6189_v56, %s6954_s17  ;;  %v11893_v40 = vld [vmem:[#allocation13_spill] sm:$0xff] }
  0xf5   : > { %v7890_v26 = vperm.slane %v2640_v8, %v7065_v5  ;;  %v7897_v27 = vsel %vm2558_vm3, %v11891_v18, %v11890_v62  ;;  %v2652_v39 = vsel %vm522_vm4, %v2651_v15, %v7887_v21  ;;  %v11894_v38 = vrot.slane %v11893_v40, 4  ;;  %v11896_v62 = vld [vmem:[#allocation18_spill] sm:$0xff] }
  0xf6   : > { %v7909_v8 = vperm.slane %v2616_v2, %v7065_v5  ;;  %v7914_v1 = vperm.slane %v11895_v9, %v7065_v5  ;;  %v2752_v63 = vsel %vm522_vm4, %v2751_v36, %v7876_v52  ;;  %v7919_v56 = vperm.slane %v2652_v39, %v7065_v5 }
  0xf7   : > { %v2740_v11 = vsel %vm522_vm4, %v11894_v38, %v11892_v34  ;;  %v2689_v17 = vrot.slane %v7890_v26, 4  ;;  %v7922_v15 = vperm.slane %v2752_v63, %v7065_v5  ;;  %v2764_v45 = vsel %vm522_vm4, %v2763_v44, %v7897_v27  ;;  %v7958_v63 = vpop.permute.xlu2 %6030 }
  0xf8   : > { %v7927_v2 = vperm.slane %v2628_v42, %v7065_v5  ;;  %v7930_v33 = vperm.slane %v2740_v11, %v7065_v5  ;;  %v7936_v51 = vperm.slane %v2764_v45, %v7065_v5  ;;  %6220 = vrot.lane.b32.xlu2 %v11896_v62, %s6952_s16  ;;  %v1792_v44 = vrot.slane %v7778_v6, 4 }
  0xf9   : > { %v2690_v36 = vsel %vm522_vm4, %v7919_v56, %v2689_v17  ;;  %v2801_v49 = vrot.slane %v7922_v15, 4  ;;  %v2665_v18 = vrot.slane %v7909_v8, 4  ;;  %v2777_v42 = vrot.slane %v7914_v1, 4 }
  0xfa   : > { %v2641_v39 = vrot.slane %v7862_v22, 4  ;;  %v2698_v6 = vperm.slane %v2690_v36, %v7470_v0  ;;  %v2653_v17 = vrot.slane %v7887_v21, 4  ;;  %v2753_v9 = vrot.slane %v7876_v52, 4 }
  0xfb   : > { %v2802_v53 = vsel %vm522_vm4, %v7936_v51, %v2801_v49  ;;  %6180 = vrot.lane.b32.xlu1 %v6179_v3, %s6960_s23  ;;  %v2666_v38 = vsel %vm522_vm4, %v7927_v2, %v2665_v18  ;;  %v2778_v11 = vsel %vm522_vm4, %v7930_v33, %v2777_v42  ;;  %v2617_v54 = vrot.slane %v11881_v48, 4  ;;  %v11897_v3 = vld [vmem:[#allocation11_spill] sm:$0xff] }
  0xfc   : > { %6205 = vrot.lane.b32.xlu0 %v6204_v60, %s6955_s18  ;;  %v2810_v31 = vperm.slane %v2802_v53, %v7470_v0  ;;  %v2729_v45 = vrot.slane %v11897_v3, 4  ;;  %v1681_v36 = vsel %vm522_vm4, %v1680_v46, %v7714_v29  ;;  %v1793_v49 = vsel %vm522_vm4, %v1792_v44, %v7773_v47 }
  0xfd   : > { %v2642_v62 = vsel %vm522_vm4, %v11875_v28, %v2641_v39  ;;  %v2674_v18 = vperm.slane %v2666_v38, %v7470_v0  ;;  %v2786_v59 = vperm.slane %v2778_v11, %v7470_v0  ;;  %v2629_v58 = vrot.slane %v7828_v55, 4  ;;  %v11898_v11 = vld [vmem:[#allocation8_spill] sm:$0xff] }
  0xfe   : > { %v2650_v60 = vperm.slane %v2642_v62, %v7065_v5  ;;  %v2765_v42 = vrot.slane %v7897_v27, 4  ;;  %v2741_v53 = vrot.slane %v11892_v34, 4  ;;  %v2715_v61 = vrot.slane %v2698_v6, 4 }
  0xff   : > { %v2654_v29 = vsel %vm522_vm4, %v11882_v19, %v2653_v17  ;;  %v2827_v47 = vrot.slane %v2810_v31, 4  ;;  %v2618_v46 = vsel %vm522_vm4, %v11873_v25, %v2617_v54  ;;  %v2754_v39 = vsel %vm522_vm4, %v11877_v57, %v2753_v9 }
 0x100   : > { %v2701_v44 = vrot.slane %v2650_v60, 4  ;;  %v6194_v38 = vpack.i.bf16 %v1793_v49, %v1681_v36  ;;  %6225 = vrot.lane.b32.xlu2 %v6224_v35, %s6960_s23  ;;  %v2730_v62 = vsel %vm522_vm4, %v11898_v11, %v2729_v45  ;;  %v2717_v16 = vrot.slane %v2674_v18, 4 }
 0x101   : > { %v2829_v43 = vrot.slane %v2786_v59, 4  ;;  %v2630_v17 = vsel %vm522_vm4, %v11874_v23, %v2629_v58  ;;  %v2662_v54 = vperm.slane %v2654_v29, %v7065_v5  ;;  %v2716_v9 = vsel %vm522_vm4, %v2715_v61, %v2674_v18  ;;  %v8012_v29 = vpop.permute.xlu2 %6055 }
 0x102   : > { %v2626_v36 = vperm.slane %v2618_v46, %v7065_v5  ;;  %v2742_v4 = vsel %vm522_vm4, %v11893_v40, %v2741_v53  ;;  %v2766_v24 = vsel %vm522_vm4, %v11876_v30, %v2765_v42  ;;  %v11899_v35 = vpack.i.bf16 %v7840_v20, %v7821_v37 }
 0x103   : > { %6195 = vrot.lane.b32.xlu1 %v6194_v38, %s6956_s19  ;;  %v7995_v7 = vpop.permute.xlu0 %6005  ;;  %v2828_v45 = vsel %vm522_vm4, %v2827_v47, %v2786_v59  ;;  %v2702_v49 = vsel %vm522_vm4, %v2662_v54, %v2701_v44  ;;  %v2738_v58 = vperm.slane %v2730_v62, %v7065_v5  ;;  %v2762_v61 = vperm.slane %v2754_v39, %v7065_v5 }
 0x104   : > { %6230 = vrot.lane.b32.xlu0 %v11899_v35, %s6957_s20  ;;  %v2638_v18 = vperm.slane %v2630_v17, %v7065_v5  ;;  %v2718_v53 = vsel %vm522_vm4, %v2698_v6, %v2717_v16  ;;  %v2830_v42 = vsel %vm522_vm4, %v2810_v31, %v2829_v43  ;;  %v2750_v46 = vperm.slane %v2742_v4, %v7065_v5 }
 0x105   : > { %v2774_v37 = vperm.slane %v2766_v24, %v7065_v5  ;;  %v6239_v20 = vpack.i.bf16 %v2828_v45, %v2716_v9  ;;  %v2677_v59 = vrot.slane %v2626_v36, 4  ;;  %v8019_v47 = vperm.slane %v2702_v49, %v7470_v0 }
 0x106   : > { %v2789_v44 = vrot.slane %v2738_v58, 4  ;;  %v2813_v38 = vrot.slane %v2762_v61, 4  ;;  %v6244_v39 = vpack.i.bf16 %v2830_v42, %v2718_v53  ;;  %v2675_v17 = vrot.slane %v2638_v18, 4 }
 0x107   : > { %v2678_v62 = vsel %vm522_vm4, %v2638_v18, %v2677_v59  ;;  %v2699_v16 = vrot.slane %v2662_v54, 4  ;;  %v2787_v31 = vrot.slane %v2750_v46, 4  ;;  %v2811_v4 = vrot.slane %v2774_v37, 4 }
 0x108   : > { %6240 = vrot.lane.b32.xlu2 %v6239_v20, %s6956_s19  ;;  %v2790_v43 = vsel %vm522_vm4, %v2750_v46, %v2789_v44  ;;  %v2814_v6 = vsel %vm522_vm4, %v2774_v37, %v2813_v38  ;;  %v11900_v9 = vpack.i.bf16 %v7837_v12, %v7834_v50  ;;  %v2723_v24 = vrot.slane %v8019_v47, 4 }
 0x109   : > { %v8031_v35 = vperm.slane %v2814_v6, %v7470_v0  ;;  %v2676_v45 = vsel %vm522_vm4, %v2675_v17, %v2626_v36  ;;  %v2700_v54 = vsel %vm522_vm4, %v2699_v16, %v2650_v60  ;;  %v8044_v50 = vperm.slane %v2678_v62, %v7470_v0  ;;  %v8059_v59 = vpop.permute.xlu2 %6070 }
 0x10a   : > { %v8037_v49 = vperm.slane %v2676_v45, %v7470_v0  ;;  %v8047_v12 = vperm.slane %v2790_v43, %v7470_v0  ;;  %v2788_v36 = vsel %vm522_vm4, %v2787_v31, %v2738_v58  ;;  %v8052_v60 = vperm.slane %v2700_v54, %v7470_v0 }
 0x10b   : > { %6210 = vrot.lane.b32.xlu1 %v11900_v9, %s6958_s21  ;;  %v2835_v42 = vrot.slane %v8031_v35, 4  ;;  %v2812_v46 = vsel %vm522_vm4, %v2811_v4, %v2762_v61  ;;  %v2724_v37 = vsel %vm522_vm4, %v2723_v24, %v8044_v50  ;;  %v2794_v38 = vperm.slane %v2788_v36, %v7470_v0 }
 0x10c   : > { %6245 = vrot.lane.b32.xlu0 %v6244_v39, %s6959_s22  ;;  %v2721_v44 = vrot.slane %v8037_v49, 4  ;;  %v2818_v39 = vperm.slane %v2812_v46, %v7470_v0  ;;  %v2663_v61 = vrot.slane %v7927_v2, 4  ;;  %v2687_v9 = vrot.slane %v7919_v56, 4 }
 0x10d   : > { %v8039_v18 = vpop.permute.xlu1 %6010  ;;  %v2836_v20 = vsel %vm522_vm4, %v2835_v42, %v8047_v12  ;;  %v2833_v17 = vrot.slane %v2794_v38, 4  ;;  %v2799_v24 = vrot.slane %v7936_v51, 4  ;;  %v8115_v46 = vpack.i.bf16 %v11897_v3, %v11881_v48 }
 0x10e   : > { %v8041_v53 = vpop.permute.xlu0 %6020  ;;  %v6259_v58 = vpack.i.bf16 %v2836_v20, %v2724_v37  ;;  %v2722_v62 = vsel %vm522_vm4, %v8052_v60, %v2721_v44  ;;  %v2664_v31 = vsel %vm522_vm4, %v2663_v61, %v7909_v8  ;;  %v2688_v54 = vsel %vm522_vm4, %v2687_v9, %v7890_v26 }
 0x10f   : > { %v2834_v16 = vsel %vm522_vm4, %v2818_v39, %v2833_v17  ;;  %v8080_v2 = vperm.slane %v2664_v31, %v7470_v0  ;;  %v8090_v8 = vpack.i.bf16 %v11892_v34, %v7828_v55  ;;  %v8093_v42 = vperm.slane %v2688_v54, %v7470_v0 }
 0x110   : > { %v6254_v43 = vpack.i.bf16 %v2834_v16, %v2722_v62  ;;  %v2800_v26 = vsel %vm522_vm4, %v2799_v24, %v7922_v15  ;;  %v6018_v37 = vunpack.i.h.bf16 %v7864_v13  ;;  %v11721_v44 = vunpack.i.l.bf16 %v7864_v13 }
 0x111   : > { %11901 = vst [vmem:[#allocation10_spill] sm:$0xff] %v8080_v2  ;;  %v8084_v45 = vpop.permute.xlu2 %6090  ;;  %v8110_v34 = vperm.slane %v2800_v26, %v7470_v0  ;;  %v6033_v62 = vunpack.i.h.bf16 %v7958_v63  ;;  %v6008_v17 = vunpack.i.h.bf16 %v7995_v7  ;;  %v6032_v3 = vunpack.i.l.bf16 %v7958_v63 }
 0x112   : > { %6255 = vrot.lane.b32.xlu2 %v6254_v43, %s6958_s21  ;;  %11902 = vst [vmem:[#allocation7_spill] sm:$0xff] %v8093_v42  ;;  %v991_v48 = vrot.slane %v6018_v37, 4  ;;  %v879_v43 = vrot.slane %v11721_v44, 4  ;;  %v2719_v9 = vrot.slane %v8052_v60, 4  ;;  %v11724_v63 = vunpack.i.h.bf16 %v8041_v53 }
 0x113   : > { %6215 = vrot.lane.b32.xlu1 %v7675_v32, %s6952_s16  ;;  %v2775_v32 = vrot.slane %v7930_v33, 4  ;;  %v2713_v33 = vrot.slane %v8080_v2, 4  ;;  %11904 = vst [vmem:[#allocation16_spill] sm:$0xff] %v8110_v34  ;;  %v8137_v24 = vrot.slane %v6033_v62, 4  ;;  %v993_v44 = vrot.slane %v6008_v17, 4 }
 0x114   : > { %6260 = vrot.lane.b32.xlu0 %v6259_v58, %s6960_s23  ;;  %v992_v54 = vsel %vm522_vm4, %v991_v48, %v6008_v17  ;;  %v2720_v60 = vsel %vm522_vm4, %v2719_v9, %v8037_v49  ;;  %v2837_v9 = vrot.slane %v8047_v12, 4 }
 0x115   : > { %v8071_v6 = vpop.permute.xlu1 %6025  ;;  %v2776_v56 = vsel %vm522_vm4, %v2775_v32, %v7914_v1  ;;  %v2714_v55 = vsel %vm522_vm4, %v8093_v42, %v2713_v33  ;;  %v2831_v32 = vrot.slane %v2818_v39, 4  ;;  %v8143_v33 = vpack.i.bf16 %v7876_v52, %v7862_v22 }
 0x116   : > { %v8076_v4 = vpop.permute.xlu0 %6035  ;;  %v8101_v51 = vperm.slane %v2776_v56, %v7470_v0  ;;  %v11723_v56 = vunpack.i.l.bf16 %v8041_v53  ;;  %v8150_v39 = vrot.slane %v6032_v3, 4  ;;  %v8158_v22 = vpack.i.bf16 %v11893_v40, %v11874_v23 }
 0x117   : > { %v11722_v31 = vunpack.i.l.bf16 %v8076_v4  ;;  %11905 = vst [vmem:[#allocation17_spill] sm:$0xff] %v8143_v33  ;;  %v11725_v26 = vunpack.i.h.bf16 %v8076_v4  ;;  %v11730_v40 = vunpack.i.l.bf16 %v8071_v6  ;;  %v2838_v12 = vsel %vm522_vm4, %v8031_v35, %v2837_v9 }
 0x118   : > { %11903 = vst [vmem:[#allocation15_spill] sm:$0xff] %v8101_v51  ;;  %v2825_v1 = vrot.slane %v8101_v51, 4 }
 0x119   : > { %v8127_v61 = vpop.permute.xlu2 %6105  ;;  %11906 = vst [vmem:[#allocation3_spill] sm:$0xff] %v8158_v22  ;;  %v903_v49 = vrot.slane %v11722_v31, 4  ;;  %v2725_v31 = vrot.slane %v8044_v50, 4 }
 0x11a   : > { %v2826_v20 = vsel %vm522_vm4, %v8110_v34, %v2825_v1  ;;  %6270 = vrot.lane.b32.xlu2 %v8115_v46, %s6951_s15 }
 0x11b   : > { %v6234_v58 = vpack.i.bf16 %v2826_v20, %v2714_v55  ;;  %v2832_v20 = vsel %vm522_vm4, %v2831_v32, %v2794_v38  ;;  %v8166_v38 = vperm.slane %v992_v54, %v7065_v5  ;;  %v891_v32 = vrot.slane %v11723_v56, 4 }
 0x11c   : > { %6275 = vrot.lane.b32.xlu0 %v8090_v8, %s6951_s15  ;;  %v6249_v48 = vpack.i.bf16 %v2832_v20, %v2720_v60  ;;  %v1015_v60 = vrot.slane %v11725_v26, 4  ;;  %v6012_v54 = vunpack.i.l.bf16 %v8039_v18  ;;  %v6028_v26 = vunpack.i.h.bf16 %v8071_v6 }
 0x11d   : > { %v8105_v36 = vpop.permute.xlu1 %6040  ;;  %6235 = vrot.lane.b32.xlu1 %v6234_v58, %s6954_s17  ;;  %v6007_v58 = vunpack.i.l.bf16 %v7995_v7  ;;  %v1003_v7 = vrot.slane %v11724_v63, 4  ;;  %v6013_v63 = vunpack.i.h.bf16 %v8039_v18  ;;  %v2726_v50 = vsel %vm522_vm4, %v8019_v47, %v2725_v31 }
 0x11e   : > { %v8122_v15 = vpop.permute.xlu0 %6045  ;;  %v11726_v55 = vunpack.i.l.bf16 %v8105_v36  ;;  %v11728_v1 = vunpack.i.h.bf16 %v8105_v36  ;;  %v994_v18 = vsel %vm522_vm4, %v6018_v37, %v993_v44  ;;  %v1016_v51 = vsel %vm522_vm4, %v1015_v60, %v6028_v26 }
 0x11f   : > { %v880_v56 = vsel %vm522_vm4, %v879_v43, %v6007_v58  ;;  %v881_v2 = vrot.slane %v6007_v58, 4  ;;  %v1004_v43 = vsel %vm522_vm4, %v1003_v7, %v6013_v63  ;;  %v8211_v47 = vpack.i.bf16 %v11876_v30, %v11882_v19 }
 0x120   : > { %v915_v17 = vrot.slane %v11726_v55, 4  ;;  %v1027_v20 = vrot.slane %v11728_v1, 4  ;;  %v904_v55 = vsel %vm522_vm4, %v903_v49, %v11730_v40  ;;  %v892_v1 = vsel %vm522_vm4, %v891_v32, %v6012_v54 }
 0x121   : > { %v886_v40 = vperm.slane %v880_v56, %v7065_v5  ;;  %v910_v58 = vperm.slane %v904_v55, %v7065_v5  ;;  %11907 = vst [vmem:[#allocation6_spill] sm:$0xff] %v8211_v47  ;;  %v1005_v31 = vrot.slane %v6013_v63, 4  ;;  %v898_v35 = vperm.slane %v892_v1, %v7065_v5 }
 0x122   : > { %6285 = vrot.lane.b32.xlu2 %v8158_v22, %s6951_s15  ;;  %v916_v49 = vsel %vm522_vm4, %v915_v17, %v6032_v3  ;;  %v1028_v32 = vsel %vm522_vm4, %v1027_v20, %v6033_v62  ;;  %v6264_v37 = vpack.i.bf16 %v2838_v12, %v2726_v50  ;;  %v8216_v44 = vpack.i.bf16 %v11877_v57, %v11875_v28 }
 0x123   : > { %v11909_v3 = vunpack.i.l.bf16 %v7864_v13  ;;  %v1010_v55 = vperm.slane %v1004_v43, %v7065_v5  ;;  %v1022_v62 = vperm.slane %v1016_v51, %v7065_v5  ;;  %v922_v9 = vperm.slane %v916_v49, %v7065_v5 }
 0x124   : > { %6290 = vrot.lane.b32.xlu0 %v8143_v33, %s6951_s15  ;;  %11908 = vst [vmem:[#allocation14_spill] sm:$0xff] %v8216_v44  ;;  %v11910_v30 = vunpack.i.h.bf16 %v8012_v29  ;;  %v1034_v13 = vperm.slane %v1028_v32, %v7065_v5  ;;  %v929_v51 = vrot.slane %v886_v40, 4  ;;  %v893_v63 = vrot.slane %v6012_v54, 4 }
 0x125   : > { %v8131_v16 = vpop.permute.xlu1 %6050  ;;  %6250 = vrot.lane.b32.xlu1 %v6249_v48, %s6955_s18  ;;  %v8193_v48 = vpop.permute.xlu2 %6120  ;;  %v882_v56 = vsel %vm522_vm4, %v11909_v3, %v881_v2  ;;  %v8237_v2 = vperm.slane %v994_v18, %v7065_v5  ;;  %v953_v1 = vrot.slane %v910_v58, 4  ;;  %v1041_v60 = vrot.slane %v8166_v38, 4 }
 0x126   : > { %v8172_v23 = vpop.permute.xlu0 %6060  ;;  %v8228_v19 = vrot.slane %v11910_v30, 4  ;;  %v8243_v17 = vperm.slane %v882_v56, %v7065_v5  ;;  %v11911_v20 = vunpack.i.h.bf16 %v8041_v53  ;;  %v927_v12 = vrot.slane %v898_v35, 4 }
 0x127   : > { %v1039_v43 = vrot.slane %v1010_v55, 4  ;;  %v1065_v49 = vrot.slane %v1022_v62, 4  ;;  %v930_v18 = vsel %vm522_vm4, %v898_v35, %v929_v51  ;;  %v954_v32 = vsel %vm522_vm4, %v922_v9, %v953_v1 }
 0x128   : > { %v1006_v50 = vsel %vm522_vm4, %v11911_v20, %v1005_v31  ;;  %v1063_v54 = vrot.slane %v1034_v13, 4  ;;  %v8253_v30 = vperm.slane %v954_v32, %v7470_v0  ;;  %v1042_v56 = vsel %vm522_vm4, %v1010_v55, %v1041_v60 }
 0x129   : > { %v11912_v31 = vunpack.i.l.bf16 %v8041_v53  ;;  %v1017_v28 = vrot.slane %v6028_v26, 4  ;;  %v11913_v35 = vunpack.i.h.bf16 %v8105_v36  ;;  %v8270_v1 = vperm.slane %v930_v18, %v7470_v0 }
 0x12a   : > { %6300 = vrot.lane.b32.xlu2 %v8216_v44, %s6951_s15  ;;  %v979_v55 = vrot.slane %v8253_v30, 4  ;;  %v1066_v60 = vsel %vm522_vm4, %v1034_v13, %v1065_v49  ;;  %v928_v53 = vsel %vm522_vm4, %v927_v12, %v886_v40  ;;  %v11915_v26 = vunpack.i.l.bf16 %v8105_v36 }
 0x12b   : > { %v894_v20 = vsel %vm522_vm4, %v11912_v31, %v893_v63  ;;  %v1030_v51 = vsel %vm522_vm4, %v11913_v35, %v8137_v24  ;;  %v8280_v24 = vperm.slane %v1042_v56, %v7470_v0  ;;  %v1040_v36 = vsel %vm522_vm4, %v1039_v43, %v8166_v38 }
 0x12c   : > { %6305 = vrot.lane.b32.xlu0 %v8211_v47, %s6951_s15  ;;  %v918_v63 = vsel %vm522_vm4, %v11915_v26, %v8150_v39  ;;  %v980_v40 = vsel %vm522_vm4, %v979_v55, %v8270_v1  ;;  %v1064_v39 = vsel %vm522_vm4, %v1063_v54, %v1022_v62  ;;  %v8302_v32 = vperm.slane %v1040_v36, %v7470_v0 }
 0x12d   : > { %v8195_v52 = vpop.permute.xlu1 %6065  ;;  %6265 = vrot.lane.b32.xlu1 %v6264_v37, %s6957_s20  ;;  %v951_v37 = vrot.slane %v922_v9, 4  ;;  %v8250_v3 = vpop.permute.xlu2 %6130  ;;  %v8267_v9 = vpack.i.bf16 %v11898_v11, %v11873_v25  ;;  %v8283_v25 = vperm.slane %v1066_v60, %v7470_v0  ;;  %v8286_v11 = vperm.slane %v928_v53, %v7470_v0 }
 0x12e   : > { %v8239_v7 = vpop.permute.xlu0 %6075  ;;  %11918 = vst [vmem:[#allocation9_spill] sm:$0xff] %v8302_v32  ;;  %v8305_v56 = vperm.slane %v894_v20, %v7065_v5  ;;  %v11920_v38 = vunpack.i.h.bf16 %v8076_v4  ;;  %v8313_v43 = vperm.slane %v1064_v39, %v7470_v0  ;;  %v8316_v54 = vperm.slane %v918_v63, %v7065_v5 }
 0x12f   : > { %11914 = vst [vmem:[#allocation2_spill] sm:$0xff] %v8267_v9  ;;  %v952_v13 = vsel %vm522_vm4, %v951_v37, %v910_v58  ;;  %v1091_v12 = vrot.slane %v8283_v25, 4  ;;  %v977_v18 = vrot.slane %v8286_v11, 4  ;;  %v11919_v58 = vunpack.i.l.bf16 %v8071_v6 }
 0x130   : > { %11916 = vst [vmem:[#allocation5_spill] sm:$0xff] %v8286_v11  ;;  %v8298_v49 = vperm.slane %v952_v13, %v7470_v0  ;;  %v1018_v62 = vsel %vm522_vm4, %v11920_v38, %v1017_v28  ;;  %v1089_v35 = vrot.slane %v8302_v32, 4  ;;  %v11731_v55 = vunpack.i.h.bf16 %v8084_v45 }
 0x131   : > { %v905_v37 = vrot.slane %v11919_v58, 4  ;;  %11921 = vst [vmem:[#allocation13_spill] sm:$0xff] %v8313_v43  ;;  %v1092_v31 = vsel %vm522_vm4, %v1091_v12, %v8280_v24  ;;  %v8327_v28 = vperm.slane %v1006_v50, %v7065_v5  ;;  %v8330_v60 = vperm.slane %v1030_v51, %v7065_v5 }
 0x132   : > { %11917 = vst [vmem:[#allocation4_spill] sm:$0xff] %v8298_v49  ;;  %v978_v20 = vsel %vm522_vm4, %v8298_v49, %v977_v18  ;;  %v6314_v53 = vpack.i.bf16 %v1092_v31, %v980_v40  ;;  %v11922_v26 = vunpack.i.l.bf16 %v8012_v29  ;;  %v11923_v13 = vunpack.i.h.bf16 %v8059_v59 }
 0x133   : > { %v1090_v12 = vsel %vm522_vm4, %v8313_v43, %v1089_v35  ;;  %v939_v18 = vrot.slane %v8305_v56, 4  ;;  %v8343_v50 = vperm.slane %v1018_v62, %v7065_v5  ;;  %v11924_v51 = vunpack.i.l.bf16 %v8076_v4 }
 0x134   : > { %v1221_v63 = vrot.slane %v11922_v26, 4  ;;  %v8336_v36 = vrot.slane %v11923_v13, 4  ;;  %6315 = vrot.lane.b32.xlu0 %v6314_v53, %s6956_s19  ;;  %v6309_v38 = vpack.i.bf16 %v1090_v12, %v978_v20  ;;  %v11925_v26 = vunpack.i.l.bf16 %v8059_v59 }
 0x135   : > { %v8256_v57 = vpop.permute.xlu1 %6080  ;;  %6280 = vrot.lane.b32.xlu1 %v8267_v9, %s6951_s15  ;;  %v906_v40 = vsel %vm522_vm4, %v11924_v51, %v905_v37  ;;  %v8348_v58 = vpop.permute.xlu2 %6145  ;;  %v963_v62 = vrot.slane %v8316_v54, 4  ;;  %v6048_v39 = vunpack.i.h.bf16 %v8122_v15  ;;  %v8363_v37 = vrot.slane %v11731_v55, 4 }
 0x136   : > { %v8323_v6 = vpop.permute.xlu0 %6095  ;;  %v8355_v13 = vrot.slane %v11925_v26, 4  ;;  %v1051_v20 = vrot.slane %v8327_v28, 4  ;;  %v1075_v53 = vrot.slane %v8330_v60, 4  ;;  %6310 = vrot.lane.b32.xlu2 %v6309_v38, %s6954_s17  ;;  %v11926_v12 = vunpack.i.l.bf16 %v8084_v45 }
 0x137   : > { %v8375_v4 = vperm.slane %v906_v40, %v7065_v5  ;;  %v6047_v32 = vunpack.i.l.bf16 %v8122_v15  ;;  %v8381_v11 = vpack.i.bf16 %v7897_v27, %v7887_v21  ;;  %v940_v38 = vsel %vm522_vm4, %v939_v18, %v8243_v17 }
 0x138   : > { %v8370_v51 = vrot.slane %v11926_v12, 4  ;;  %v1334_v12 = vsel %vm522_vm4, %v8228_v19, %v6048_v39  ;;  %v6052_v26 = vunpack.i.l.bf16 %v8131_v16  ;;  %v946_v35 = vperm.slane %v940_v38, %v7470_v0 }
 0x139   : > { %11927 = vst [vmem:[#allocation12_spill] sm:$0xff] %v8381_v11  ;;  %v964_v40 = vsel %vm522_vm4, %v963_v62, %v8375_v4  ;;  %v1052_v27 = vsel %vm522_vm4, %v1051_v20, %v8237_v2  ;;  %v1076_v15 = vsel %vm522_vm4, %v1075_v53, %v8343_v50  ;;  %v1222_v55 = vsel %vm522_vm4, %v1221_v63, %v6047_v32 }
 0x13a   : > { %v970_v21 = vperm.slane %v964_v40, %v7470_v0  ;;  %v985_v18 = vrot.slane %v946_v35, 4  ;;  %v1058_v38 = vperm.slane %v1052_v27, %v7470_v0  ;;  %v1082_v62 = vperm.slane %v1076_v15, %v7470_v0 }
 0x13b   : > { %v1223_v49 = vrot.slane %v6047_v32, 4  ;;  %v6062_v40 = vunpack.i.l.bf16 %v8172_v23  ;;  %v6053_v19 = vunpack.i.h.bf16 %v8131_v16  ;;  %v1235_v10 = vrot.slane %v6052_v26, 4 }
 0x13c   : > { %v983_v34 = vrot.slane %v970_v21, 4  ;;  %v986_v42 = vsel %vm522_vm4, %v970_v21, %v985_v18  ;;  %v1097_v53 = vrot.slane %v1058_v38, 4  ;;  %v1095_v41 = vrot.slane %v1082_v62, 4 }
 0x13d   : > { %v8351_v31 = vpop.permute.xlu1 %6085  ;;  %6295 = vrot.lane.b32.xlu1 %v8381_v11, %s6951_s15  ;;  %v11928_v27 = vunpack.i.h.bf16 %v8172_v23  ;;  %v8411_v14 = vpop.permute.xlu2 %6155  ;;  %v11930_v20 = vunpack.i.l.bf16 %v8239_v7  ;;  %v1233_v16 = vrot.slane %v6062_v40, 4  ;;  %v6083_v47 = vunpack.i.h.bf16 %v8256_v57 }
 0x13e   : > { %v8402_v43 = vpop.permute.xlu0 %6110  ;;  %11929 = vst [vmem:[#allocation18_spill] sm:$0xff] %v8411_v14  ;;  %v984_v63 = vsel %vm522_vm4, %v983_v34, %v946_v35  ;;  %v1098_v21 = vsel %vm522_vm4, %v1082_v62, %v1097_v53  ;;  %v1096_v18 = vsel %vm522_vm4, %v1095_v41, %v1058_v38  ;;  %v965_v14 = vrot.slane %v8375_v4, 4 }
 0x13f   : > { %v1345_v15 = vrot.slane %v11928_v27, 4  ;;  %v1245_v44 = vrot.slane %v11930_v20, 4  ;;  %v6329_v9 = vpack.i.bf16 %v1098_v21, %v986_v42  ;;  %v6324_v27 = vpack.i.bf16 %v1096_v18, %v984_v63 }
 0x140   : > { %v1335_v22 = vrot.slane %v6048_v39, 4  ;;  %v6067_v34 = vunpack.i.l.bf16 %v8195_v52  ;;  %v11931_v35 = vunpack.i.l.bf16 %v8256_v57  ;;  %v8427_v33 = vperm.slane %v1334_v12, %v7065_v5 }
 0x141   : > { %v11932_v62 = vunpack.i.l.bf16 %v8012_v29  ;;  %v8433_v38 = vperm.slane %v1222_v55, %v7065_v5  ;;  %v1347_v42 = vrot.slane %v6053_v19, 4  ;;  %6330 = vrot.lane.b32.xlu0 %v6329_v9, %s6958_s21  ;;  %6325 = vrot.lane.b32.xlu2 %v6324_v27, %s6955_s18  ;;  %v1236_v39 = vsel %vm522_vm4, %v6062_v40, %v1235_v10 }
 0x142   : > { %v1257_v11 = vrot.slane %v11931_v35, 4  ;;  %v11933_v4 = vunpack.i.h.bf16 %v8239_v7  ;;  %v1246_v12 = vsel %vm522_vm4, %v1245_v44, %v6067_v34  ;;  %v981_v53 = vrot.slane %v8270_v1, 4 }
 0x143   : > { %v1224_v41 = vsel %vm522_vm4, %v11932_v62, %v1223_v49  ;;  %v1346_v49 = vsel %vm522_vm4, %v1345_v15, %v6053_v19  ;;  %v1234_v55 = vsel %vm522_vm4, %v1233_v16, %v6052_v26  ;;  %v6068_v63 = vunpack.i.h.bf16 %v8195_v52 }
 0x144   : > { %v1357_v20 = vrot.slane %v11933_v4, 4  ;;  %v1369_v9 = vrot.slane %v6083_v47, 4  ;;  %v11934_v10 = vunpack.i.l.bf16 %v8059_v59  ;;  %v982_v21 = vsel %vm522_vm4, %v8253_v30, %v981_v53 }
 0x145   : > { %v8414_v32 = vpop.permute.xlu1 %6100  ;;  %v1093_v44 = vrot.slane %v8280_v24, 4  ;;  %v11935_v1 = vrot.slane %v8243_v17, 4  ;;  %v8462_v15 = vperm.slane %v1236_v39, %v7065_v5  ;;  %v1252_v18 = vperm.slane %v1246_v12, %v7065_v5  ;;  %v8476_v35 = vpop.permute.xlu2 %6170 }
 0x146   : > { %v1258_v40 = vsel %vm522_vm4, %v1257_v11, %v11934_v10  ;;  %v8459_v26 = vpop.permute.xlu0 %6135  ;;  %v966_v30 = vsel %vm522_vm4, %v8316_v54, %v965_v14  ;;  %v1352_v24 = vperm.slane %v1346_v49, %v7065_v5  ;;  %v1358_v17 = vsel %vm522_vm4, %v1357_v20, %v6068_v63 }
 0x147   : > { %v942_v19 = vsel %vm522_vm4, %v8305_v56, %v11935_v1  ;;  %v1094_v11 = vsel %vm522_vm4, %v8283_v25, %v1093_v44  ;;  %v974_v56 = vperm.slane %v966_v30, %v7470_v0  ;;  %v1264_v27 = vperm.slane %v1258_v40, %v7065_v5 }
 0x148   : > { %v8466_v16 = vperm.slane %v942_v19, %v7470_v0  ;;  %v6319_v62 = vpack.i.bf16 %v1094_v11, %v982_v21  ;;  %v11936_v39 = vrot.slane %v8237_v2, 4  ;;  %v11937_v14 = vrot.slane %v8343_v50, 4 }
 0x149   : > { %v11938_v25 = vunpack.i.h.bf16 %v8059_v59  ;;  %v11939_v10 = vunpack.i.h.bf16 %v8172_v23  ;;  %v1240_v50 = vperm.slane %v1234_v55, %v7065_v5  ;;  %v1295_v40 = vrot.slane %v1252_v18, 4 }
 0x14a   : > { %v1054_v4 = vsel %vm522_vm4, %v8327_v28, %v11936_v39  ;;  %v1078_v54 = vsel %vm522_vm4, %v8330_v60, %v11937_v14  ;;  %v989_v53 = vrot.slane %v8466_v16, 4  ;;  %v1364_v60 = vperm.slane %v1358_v17, %v7065_v5  ;;  %6320 = vrot.lane.b32.xlu1 %v6319_v62, %s6959_s22 }
 0x14b   : > { %v1370_v12 = vsel %vm522_vm4, %v1369_v9, %v11938_v25  ;;  %v1062_v49 = vperm.slane %v1054_v4, %v7470_v0  ;;  %v1086_v2 = vperm.slane %v1078_v54, %v7470_v0  ;;  %v1348_v28 = vsel %vm522_vm4, %v11939_v10, %v1347_v42 }
 0x14c   : > { %v11940_v59 = vunpack.i.h.bf16 %v8012_v29  ;;  %v1383_v21 = vrot.slane %v8427_v33, 4  ;;  %v990_v44 = vsel %vm522_vm4, %v974_v56, %v989_v53  ;;  %v8508_v23 = vperm.slane %v1224_v41, %v7065_v5 }
 0x14d   : > { %v8486_v20 = vpop.permute.xlu1 %6115  ;;  %v1101_v1 = vrot.slane %v1062_v49, 4  ;;  %v1271_v42 = vrot.slane %v8433_v38, 4  ;;  %v1376_v55 = vperm.slane %v1370_v12, %v7065_v5  ;;  %v1296_v19 = vsel %vm522_vm4, %v1264_v27, %v1295_v40 }
 0x14e   : > { %v8503_v9 = vsel %vm522_vm4, %v11940_v59, %v1335_v22  ;;  %v8514_v30 = vperm.slane %v1348_v28, %v7065_v5  ;;  %v1381_v29 = vrot.slane %v1352_v24, 4  ;;  %v1281_v22 = vrot.slane %v8462_v15, 4  ;;  %v8526_v53 = vpop.permute.xlu0 %6150 }
 0x14f   : > { %v1102_v17 = vsel %vm522_vm4, %v1086_v2, %v1101_v1  ;;  %v1407_v11 = vrot.slane %v1364_v60, 4  ;;  %v11941_v62 = vunpack.i.l.bf16 %v8256_v57  ;;  %v1272_v4 = vsel %vm522_vm4, %v1240_v50, %v1271_v42  ;;  %v8550_v57 = vpop.permute.xlu2 %6185 }
 0x150   : > { %v6339_v39 = vpack.i.bf16 %v1102_v17, %v990_v44  ;;  %v1269_v14 = vrot.slane %v1240_v50, 4  ;;  %v1359_v54 = vrot.slane %v6068_v63, 4  ;;  %v1293_v25 = vrot.slane %v1264_v27, 4  ;;  %11942 = vst [vmem:[#allocation11_spill] sm:$0xff] %v8550_v57 }
 0x151   : > { %v1260_v41 = vsel %vm522_vm4, %v11941_v62, %v8355_v13  ;;  %v8524_v12 = vperm.slane %v1296_v19, %v7470_v0  ;;  %v1247_v10 = vrot.slane %v6067_v34, 4  ;;  %v1372_v28 = vsel %vm522_vm4, %v6083_v47, %v8336_v36 }
 0x152   : > { %6340 = vrot.lane.b32.xlu2 %v6339_v39, %s6957_s20  ;;  %v1384_v13 = vsel %vm522_vm4, %v1352_v24, %v1383_v21  ;;  %v1408_v63 = vsel %vm522_vm4, %v1376_v55, %v1407_v11  ;;  %v1405_v27 = vrot.slane %v1376_v55, 4  ;;  %v8538_v50 = vperm.slane %v1260_v41, %v7065_v5 }
 0x153   : > { %v8541_v40 = vperm.slane %v1272_v4, %v7470_v0  ;;  %v1321_v52 = vrot.slane %v8524_v12, 4  ;;  %v8545_v34 = vperm.slane %v1384_v13, %v7470_v0  ;;  %v8548_v47 = vperm.slane %v1408_v63, %v7470_v0 }
 0x154   : > { %v987_v36 = vrot.slane %v974_v56, 4  ;;  %v1099_v24 = vrot.slane %v1086_v2, 4  ;;  %v1270_v44 = vsel %vm522_vm4, %v1269_v14, %v8433_v38  ;;  %v1294_v1 = vsel %vm522_vm4, %v1293_v25, %v1252_v18 }
 0x155   : > { %v8552_v59 = vpop.permute.xlu1 %6125  ;;  %v1322_v21 = vsel %vm522_vm4, %v1321_v52, %v8541_v40  ;;  %v1382_v42 = vsel %vm522_vm4, %v1381_v29, %v8427_v33  ;;  %v1433_v55 = vrot.slane %v8548_v47, 4  ;;  %v8566_v2 = vperm.slane %v1270_v44, %v7470_v0 }
 0x156   : > { %v988_v19 = vsel %vm522_vm4, %v987_v36, %v8466_v16  ;;  %v1100_v56 = vsel %vm522_vm4, %v1099_v24, %v1062_v49  ;;  %v8569_v11 = vperm.slane %v1294_v1, %v7470_v0  ;;  %v8572_v38 = vperm.slane %v1382_v42, %v7470_v0  ;;  %v8607_v24 = vpop.permute.xlu0 %6160 }
 0x157   : > { %11943 = vst [vmem:[#allocation8_spill] sm:$0xff] %v8566_v2  ;;  %v6334_v17 = vpack.i.bf16 %v1100_v56, %v988_v19  ;;  %v1406_v18 = vsel %vm522_vm4, %v1405_v27, %v1364_v60  ;;  %v11945_v33 = vunpack.i.l.bf16 %v8239_v7  ;;  %v1434_v16 = vsel %vm522_vm4, %v1433_v55, %v8545_v34 }
 0x158   : > { %11944 = vst [vmem:[#allocation27_spill] sm:$0xff] %v8572_v38  ;;  %v1319_v49 = vrot.slane %v8566_v2, 4  ;;  %v8582_v62 = vperm.slane %v1406_v18, %v7470_v0  ;;  %v8585_v41 = vperm.slane %v1372_v28, %v7065_v5  ;;  %v1305_v39 = vrot.slane %v8538_v50, 4 }
 0x159   : > { %v1248_v29 = vsel %vm522_vm4, %v11945_v33, %v1247_v10  ;;  %v6349_v4 = vpack.i.bf16 %v1434_v16, %v1322_v21  ;;  %6335 = vrot.lane.b32.xlu1 %v6334_v17, %s6960_s23  ;;  %v1431_v60 = vrot.slane %v8572_v38, 4  ;;  %v11946_v14 = vunpack.i.h.bf16 %v8127_v61 }
 0x15a   : > { %v11749_v10 = vunpack.i.h.bf16 %v8193_v48  ;;  %v11748_v13 = vunpack.i.l.bf16 %v8193_v48  ;;  %v1320_v63 = vsel %vm522_vm4, %v8569_v11, %v1319_v49  ;;  %v1393_v28 = vrot.slane %v8514_v30, 4 }
 0x15b   : > { %v8592_v25 = vrot.slane %v11946_v14, 4  ;;  %v8600_v27 = vperm.slane %v1248_v29, %v7065_v5  ;;  %6350 = vrot.lane.b32.xlu0 %v6349_v4, %s6956_s19  ;;  %v1432_v52 = vsel %vm522_vm4, %v8582_v62, %v1431_v60  ;;  %v1282_v36 = vsel %vm522_vm4, %v1281_v22, %v8508_v23  ;;  %v8632_v29 = vpop.permute.xlu2 %6200 }
 0x15c   : > { %v8611_v21 = vperm.slane %v8503_v9, %v7065_v5  ;;  %v11947_v44 = vunpack.i.h.bf16 %v8239_v7  ;;  %v6344_v42 = vpack.i.bf16 %v1432_v52, %v1320_v63  ;;  %v1288_v55 = vperm.slane %v1282_v36, %v7470_v0 }
 0x15d   : > { %v1417_v19 = vrot.slane %v8585_v41, 4  ;;  %v11750_v56 = vunpack.i.h.bf16 %v8414_v32  ;;  %v11751_v17 = vunpack.i.l.bf16 %v8414_v32  ;;  %v1306_v22 = vsel %vm522_vm4, %v1305_v39, %v8600_v27  ;;  %v8634_v16 = vpop.permute.xlu1 %6140 }
 0x15e   : > { %v1360_v1 = vsel %vm522_vm4, %v11947_v44, %v1359_v54  ;;  %v11948_v18 = vunpack.i.l.bf16 %v8127_v61  ;;  %v2070_v7 = vrot.slane %v11749_v10, 4  ;;  %v1958_v54 = vrot.slane %v11748_v13, 4  ;;  %6345 = vrot.lane.b32.xlu2 %v6344_v42, %s6954_s17 }
 0x15f   : > { %v1312_v33 = vperm.slane %v1306_v22, %v7470_v0  ;;  %v8637_v49 = vperm.slane %v1360_v1, %v7065_v5  ;;  %v6113_v4 = vunpack.i.h.bf16 %v8402_v43  ;;  %v1394_v60 = vsel %vm522_vm4, %v1393_v28, %v8611_v21 }
 0x160   : > { %v8624_v9 = vrot.slane %v11948_v18, 4  ;;  %v6112_v63 = vunpack.i.l.bf16 %v8402_v43  ;;  %v1327_v52 = vrot.slane %v1288_v55, 4  ;;  %v1400_v36 = vperm.slane %v1394_v60, %v7470_v0 }
 0x161   : > { %v2046_v44 = vrot.slane %v11750_v56, 4  ;;  %v1934_v1 = vrot.slane %v11751_v17, 4  ;;  %v1418_v22 = vsel %vm522_vm4, %v1417_v19, %v8637_v49  ;;  %v1323_v43 = vrot.slane %v8541_v40, 4 }
 0x162   : > { %v1328_v28 = vsel %vm522_vm4, %v1312_v33, %v1327_v52  ;;  %v1424_v18 = vperm.slane %v1418_v22, %v7470_v0  ;;  %v1439_v13 = vrot.slane %v1400_v36, 4  ;;  %v2071_v60 = vsel %vm522_vm4, %v2070_v7, %v6113_v4 }
 0x163   : > { %v2072_v10 = vrot.slane %v6113_v4, 4  ;;  %v1435_v56 = vrot.slane %v8545_v34, 4  ;;  %v1325_v14 = vrot.slane %v1312_v33, 4  ;;  %v11753_v17 = vunpack.i.h.bf16 %v8486_v20  ;;  %v8668_v34 = vpop.permute.xlu0 %6175 }
 0x164   : > { %v1440_v39 = vsel %vm522_vm4, %v1424_v18, %v1439_v13  ;;  %v1324_v19 = vsel %vm522_vm4, %v8524_v12, %v1323_v43  ;;  %v1437_v42 = vrot.slane %v1424_v18, 4  ;;  %v11949_v52 = vunpack.i.h.bf16 %v8084_v45 }
 0x165   : > { %v6364_v57 = vpack.i.bf16 %v1440_v39, %v1328_v28  ;;  %v1436_v40 = vsel %vm522_vm4, %v8548_v47, %v1435_v56  ;;  %v1326_v7 = vsel %vm522_vm4, %v1325_v14, %v1288_v55  ;;  %v11950_v33 = vunpack.i.l.bf16 %v8084_v45 }
 0x166   : > { %v2047_v22 = vsel %vm522_vm4, %v2046_v44, %v11949_v52  ;;  %v11951_v4 = vunpack.i.l.bf16 %v8486_v20  ;;  %v6354_v18 = vpack.i.bf16 %v1436_v40, %v1324_v19  ;;  %v1438_v43 = vsel %vm522_vm4, %v1437_v42, %v1400_v36  ;;  %v8687_v36 = vpop.permute.xlu2 %6220 }
 0x167   : > { %v1935_v13 = vsel %vm522_vm4, %v1934_v1, %v11950_v33  ;;  %v1959_v44 = vsel %vm522_vm4, %v1958_v54, %v6112_v63  ;;  %v6088_v39 = vunpack.i.h.bf16 %v8351_v31  ;;  %v6087_v47 = vunpack.i.l.bf16 %v8351_v31  ;;  %6365 = vrot.lane.b32.xlu0 %v6364_v57, %s6958_s21  ;;  %v8689_v54 = vpop.permute.xlu1 %6165 }
 0x168   : > { %v1946_v12 = vrot.slane %v11951_v4, 4  ;;  %v6359_v55 = vpack.i.bf16 %v1438_v43, %v1326_v7  ;;  %v1395_v56 = vrot.slane %v8611_v21, 4  ;;  %v8682_v45 = vperm.slane %v2071_v60, %v7065_v5  ;;  %6355 = vrot.lane.b32.xlu1 %v6354_v18, %s6959_s22 }
 0x169   : > { %v1960_v14 = vrot.slane %v6112_v63, 4  ;;  %v2058_v1 = vrot.slane %v11753_v17, 4  ;;  %v11952_v42 = vunpack.i.h.bf16 %v8323_v6  ;;  %v11953_v57 = vunpack.i.l.bf16 %v8323_v6 }
 0x16a   : > { %v8696_v21 = vperm.slane %v2047_v22, %v7065_v5  ;;  %v8699_v63 = vperm.slane %v1935_v13, %v7065_v5  ;;  %6360 = vrot.lane.b32.xlu2 %v6359_v55, %s6955_s18  ;;  %v1283_v60 = vrot.slane %v8508_v23, 4  ;;  %v1419_v52 = vrot.slane %v8637_v49, 4 }
 0x16b   : > { %v2034_v28 = vrot.slane %v11952_v42, 4  ;;  %v1922_v19 = vrot.slane %v11953_v57, 4  ;;  %v8705_v40 = vperm.slane %v1959_v44, %v7065_v5  ;;  %v11954_v7 = vunpack.i.l.bf16 %v8127_v61 }
 0x16c   : > { %v1307_v4 = vrot.slane %v8600_v27, 4  ;;  %v11955_v22 = vunpack.i.h.bf16 %v8193_v48  ;;  %v2106_v49 = vrot.slane %v8682_v45, 4  ;;  %v11956_v43 = vunpack.i.l.bf16 %v8193_v48 }
 0x16d   : > { %v1947_v33 = vsel %vm522_vm4, %v1946_v12, %v11954_v7  ;;  %v2035_v18 = vsel %vm522_vm4, %v2034_v28, %v6088_v39  ;;  %v1923_v23 = vsel %vm522_vm4, %v1922_v19, %v6087_v47  ;;  %v11957_v12 = vunpack.i.h.bf16 %v8127_v61  ;;  %v8746_v7 = vpop.permute.xlu0 %6190 }
 0x16e   : > { %v2073_v13 = vsel %vm522_vm4, %v11955_v22, %v2072_v10  ;;  %v1961_v44 = vsel %vm522_vm4, %v11956_v43, %v1960_v14  ;;  %v1284_v55 = vsel %vm522_vm4, %v8462_v15, %v1283_v60  ;;  %v2082_v10 = vrot.slane %v8696_v21, 4 }
 0x16f   : > { %v2059_v27 = vsel %vm522_vm4, %v2058_v1, %v11957_v12  ;;  %v1970_v42 = vrot.slane %v8699_v63, 4  ;;  %v1953_v28 = vperm.slane %v1947_v33, %v7065_v5  ;;  %v1308_v57 = vsel %vm522_vm4, %v8538_v50, %v1307_v4 }
 0x170   : > { %v1994_v48 = vrot.slane %v8705_v40, 4  ;;  %v8734_v14 = vperm.slane %v2035_v18, %v7065_v5  ;;  %v1929_v61 = vperm.slane %v1923_v23, %v7065_v5  ;;  %v1316_v1 = vperm.slane %v1308_v57, %v7470_v0  ;;  %v8767_v57 = vpop.permute.xlu2 %6225 }
 0x171   : > { %v8739_v15 = vperm.slane %v2059_v27, %v7065_v5  ;;  %v1292_v19 = vperm.slane %v1284_v55, %v7470_v0  ;;  %v1396_v60 = vsel %vm522_vm4, %v8514_v30, %v1395_v56  ;;  %v1420_v50 = vsel %vm522_vm4, %v8585_v41, %v1419_v52  ;;  %v8758_v56 = vpop.permute.xlu1 %6180 }
 0x172   : > { %v2036_v33 = vrot.slane %v6088_v39, 4  ;;  %v1329_v4 = vrot.slane %v1316_v1, 4  ;;  %v1404_v22 = vperm.slane %v1396_v60, %v7470_v0  ;;  %v1428_v18 = vperm.slane %v1420_v50, %v7470_v0 }
 0x173   : > { %v11958_v23 = vunpack.i.h.bf16 %v8414_v32  ;;  %v1971_v12 = vsel %vm522_vm4, %v1970_v42, %v1929_v61  ;;  %v1995_v30 = vsel %vm522_vm4, %v1994_v48, %v1953_v28  ;;  %v2083_v41 = vsel %vm522_vm4, %v2082_v10, %v8734_v14 }
 0x174   : > { %v1330_v39 = vsel %vm522_vm4, %v1329_v4, %v1292_v19  ;;  %v1441_v52 = vrot.slane %v1428_v18, 4  ;;  %v8762_v27 = vperm.slane %v1971_v12, %v7470_v0  ;;  %v8765_v55 = vperm.slane %v1995_v30, %v7470_v0 }
 0x175   : > { %v2049_v43 = vsel %vm522_vm4, %v11958_v23, %v8363_v37  ;;  %v8770_v37 = vperm.slane %v2083_v41, %v7470_v0  ;;  %v2107_v42 = vsel %vm522_vm4, %v2106_v49, %v8739_v15  ;;  %v1331_v10 = vrot.slane %v1292_v19, 4 }
 0x176   : > { %11959 = vst [vmem:[#allocation28_spill] sm:$0xff] %v8762_v27  ;;  %v1443_v48 = vrot.slane %v1404_v22, 4  ;;  %v11961_v60 = vunpack.i.l.bf16 %v8414_v32  ;;  %v1442_v4 = vsel %vm522_vm4, %v1441_v52, %v1404_v22  ;;  %v2020_v23 = vrot.slane %v8762_v27, 4 }
 0x177   : > { %11960 = vst [vmem:[#allocation29_spill] sm:$0xff] %v8770_v37  ;;  %v8781_v12 = vperm.slane %v2107_v42, %v7470_v0  ;;  %v6369_v30 = vpack.i.bf16 %v1442_v4, %v1330_v39  ;;  %v2132_v41 = vrot.slane %v8770_v37, 4  ;;  %v1332_v17 = vsel %vm522_vm4, %v1316_v1, %v1331_v10 }
 0x178   : > { %v1937_v50 = vsel %vm522_vm4, %v11961_v60, %v8370_v51  ;;  %v1444_v49 = vsel %vm522_vm4, %v1428_v18, %v1443_v48  ;;  %v1924_v19 = vrot.slane %v6087_v47, 4  ;;  %v1996_v32 = vrot.slane %v1953_v28, 4  ;;  %v8818_v60 = vpop.permute.xlu0 %6205 }
 0x179   : > { %v2021_v51 = vsel %vm522_vm4, %v8765_v55, %v2020_v23  ;;  %v6374_v22 = vpack.i.bf16 %v1444_v49, %v1332_v17  ;;  %v8791_v52 = vperm.slane %v2073_v13, %v7065_v5  ;;  %v1972_v42 = vrot.slane %v1929_v61, 4  ;;  %6370 = vrot.lane.b32.xlu1 %v6369_v30, %s6960_s23  ;;  %v8840_v49 = vpop.permute.xlu2 %6240 }
 0x17a   : > { %v8794_v39 = vperm.slane %v1937_v50, %v7065_v5  ;;  %v2133_v1 = vsel %vm522_vm4, %v8781_v12, %v2132_v41  ;;  %v8800_v31 = vperm.slane %v2049_v43, %v7065_v5  ;;  %v11962_v47 = vunpack.i.h.bf16 %v8486_v20 }
 0x17b   : > { %v11963_v13 = vunpack.i.l.bf16 %v8486_v20  ;;  %v6379_v61 = vpack.i.bf16 %v2133_v1, %v2021_v51  ;;  %6375 = vrot.lane.b32.xlu2 %v6374_v22, %s6957_s20  ;;  %v8812_v18 = vperm.slane %v1961_v44, %v7065_v5  ;;  %v11964_v10 = vunpack.i.h.bf16 %v8323_v6 }
 0x17c   : > { %v2061_v17 = vsel %vm522_vm4, %v11962_v47, %v8592_v25  ;;  %v2108_v48 = vrot.slane %v8739_v15, 4  ;;  %v8820_v25 = vpop.permute.xlu1 %6195  ;;  %v2084_v20 = vrot.slane %v8734_v14, 4  ;;  %v1973_v44 = vsel %vm522_vm4, %v8699_v63, %v1972_v42 }
 0x17d   : > { %v1949_v28 = vsel %vm522_vm4, %v11963_v13, %v8624_v9  ;;  %v2037_v43 = vsel %vm522_vm4, %v11964_v10, %v2036_v33  ;;  %v11965_v9 = vunpack.i.l.bf16 %v8323_v6  ;;  %6380 = vrot.lane.b32.xlu0 %v6379_v61, %s6954_s17  ;;  %v1997_v33 = vsel %vm522_vm4, %v8705_v40, %v1996_v32 }
 0x17e   : > { %v1982_v15 = vrot.slane %v8794_v39, 4  ;;  %v2069_v4 = vperm.slane %v2061_v17, %v7065_v5  ;;  %v1957_v23 = vperm.slane %v1949_v28, %v7065_v5  ;;  %v1981_v14 = vperm.slane %v1973_v44, %v7470_v0 }
 0x17f   : > { %v1925_v50 = vsel %vm522_vm4, %v11965_v9, %v1924_v19  ;;  %v2118_v6 = vrot.slane %v8791_v52, 4  ;;  %v2094_v30 = vrot.slane %v8800_v31, 4  ;;  %v2005_v41 = vperm.slane %v1997_v33, %v7470_v0 }
 0x180   : > { %v2085_v63 = vsel %vm522_vm4, %v8696_v21, %v2084_v20  ;;  %v2006_v40 = vrot.slane %v8812_v18, 4  ;;  %v1933_v19 = vperm.slane %v1925_v50, %v7065_v5  ;;  %v2109_v51 = vsel %vm522_vm4, %v8682_v45, %v2108_v48 }
 0x181   : > { %v2093_v32 = vperm.slane %v2085_v63, %v7470_v0  ;;  %v2045_v22 = vperm.slane %v2037_v43, %v7065_v5  ;;  %v2022_v42 = vrot.slane %v2005_v41, 4  ;;  %v2117_v1 = vperm.slane %v2109_v51, %v7470_v0 }
 0x182   : > { %v1983_v47 = vsel %vm522_vm4, %v1982_v15, %v1933_v19  ;;  %v2007_v21 = vsel %vm522_vm4, %v2006_v40, %v1957_v23  ;;  %v2119_v17 = vsel %vm522_vm4, %v2118_v6, %v2069_v4  ;;  %v2024_v13 = vrot.slane %v1981_v14, 4  ;;  %v8863_v40 = vpop.permute.xlu0 %6230 }
 0x183   : > { %v2023_v28 = vsel %vm522_vm4, %v2022_v42, %v1981_v14  ;;  %v2134_v61 = vrot.slane %v2117_v1, 4  ;;  %v2013_v10 = vperm.slane %v2007_v21, %v7470_v0  ;;  %v2095_v20 = vsel %vm522_vm4, %v2094_v30, %v2045_v22 }
 0x184   : > { %v2125_v45 = vperm.slane %v2119_v17, %v7470_v0  ;;  %v2025_v43 = vsel %vm522_vm4, %v2005_v41, %v2024_v13  ;;  %v2136_v48 = vrot.slane %v2093_v32, 4  ;;  %v8857_v9 = vpop.permute.xlu1 %6210  ;;  %v1989_v44 = vperm.slane %v1983_v47, %v7470_v0 }
 0x185   : > { %v2135_v50 = vsel %vm522_vm4, %v2134_v61, %v2093_v32  ;;  %v2026_v33 = vrot.slane %v2013_v10, 4  ;;  %v2101_v14 = vperm.slane %v2095_v20, %v7470_v0  ;;  %v2008_v30 = vrot.slane %v1957_v23, 4 }
 0x186   : > { %v6384_v15 = vpack.i.bf16 %v2135_v50, %v2023_v28  ;;  %v2138_v6 = vrot.slane %v2125_v45, 4  ;;  %v2137_v63 = vsel %vm522_vm4, %v2117_v1, %v2136_v48  ;;  %v1984_v42 = vrot.slane %v1933_v19, 4  ;;  %v8869_v28 = vpop.permute.xlu2 %6255 }
 0x187   : > { %v2027_v51 = vsel %vm522_vm4, %v2026_v33, %v1989_v44  ;;  %v6389_v41 = vpack.i.bf16 %v2137_v63, %v2025_v43  ;;  %v2120_v21 = vrot.slane %v2069_v4, 4  ;;  %v2096_v47 = vrot.slane %v2045_v22, 4 }
 0x188   : > { %6385 = vrot.lane.b32.xlu1 %v6384_v15, %s6956_s19  ;;  %v2139_v32 = vsel %vm522_vm4, %v2138_v6, %v2101_v14  ;;  %v2028_v13 = vrot.slane %v1989_v44, 4  ;;  %v2140_v1 = vrot.slane %v2101_v14, 4  ;;  %v1985_v23 = vsel %vm522_vm4, %v8794_v39, %v1984_v42 }
 0x189   : > { %v6394_v17 = vpack.i.bf16 %v2139_v32, %v2027_v51  ;;  %6390 = vrot.lane.b32.xlu2 %v6389_v41, %s6959_s22  ;;  %v1993_v4 = vperm.slane %v1985_v23, %v7470_v0  ;;  %v2009_v61 = vsel %vm522_vm4, %v8812_v18, %v2008_v30  ;;  %v2097_v22 = vsel %vm522_vm4, %v8800_v31, %v2096_v47 }
 0x18a   : > { %v2029_v19 = vsel %vm522_vm4, %v2013_v10, %v2028_v13  ;;  %v2141_v20 = vsel %vm522_vm4, %v2125_v45, %v2140_v1  ;;  %v2017_v43 = vperm.slane %v2009_v61, %v7470_v0  ;;  %v2105_v48 = vperm.slane %v2097_v22, %v7470_v0  ;;  %v8897_v42 = vpop.permute.xlu0 %6245 }
 0x18b   : > { %6395 = vrot.lane.b32.xlu0 %v6394_v17, %s6955_s18  ;;  %v2121_v39 = vsel %vm522_vm4, %v8791_v52, %v2120_v21  ;;  %v11754_v10 = vunpack.i.l.bf16 %v8634_v16  ;;  %v2032_v44 = vrot.slane %v1993_v4, 4  ;;  %v6399_v18 = vpack.i.bf16 %v2141_v20, %v2029_v19  ;;  %11966 = vst [vmem:[#allocation30_spill] sm:$0xff] %v8897_v42 }
 0x18c   : > { %v8885_v50 = vpop.permute.xlu1 %6215  ;;  %v2129_v33 = vperm.slane %v2121_v39, %v7470_v0  ;;  %v2144_v15 = vrot.slane %v2105_v48, 4  ;;  %v2030_v14 = vrot.slane %v2017_v43, 4  ;;  %v6138_v31 = vunpack.i.h.bf16 %v8459_v26 }
 0x18d   : > { %v6128_v45 = vunpack.i.h.bf16 %v8552_v59  ;;  %v2033_v6 = vsel %vm522_vm4, %v2017_v43, %v2032_v44  ;;  %v6137_v30 = vunpack.i.l.bf16 %v8459_v26  ;;  %v6143_v52 = vunpack.i.h.bf16 %v8634_v16 }
 0x18e   : > { %v2142_v63 = vrot.slane %v2129_v33, 4  ;;  %v2145_v51 = vsel %vm522_vm4, %v2129_v33, %v2144_v15  ;;  %v2031_v41 = vsel %vm522_vm4, %v2030_v14, %v1993_v4  ;;  %v6127_v21 = vunpack.i.l.bf16 %v8552_v59  ;;  %v8910_v22 = vpop.permute.xlu2 %6270 }
 0x18f   : > { %v2276_v32 = vrot.slane %v11754_v10, 4  ;;  %v6409_v47 = vpack.i.bf16 %v2145_v51, %v2033_v6  ;;  %v6133_v26 = vunpack.i.h.bf16 %v8250_v3  ;;  %v6223_v13 = vunpack.i.h.bf16 %v8687_v36 }
 0x190   : > { %6400 = vrot.lane.b32.xlu1 %v6399_v18, %s6958_s21  ;;  %v2143_v17 = vsel %vm522_vm4, %v2142_v63, %v2105_v48  ;;  %v6222_v1 = vunpack.i.l.bf16 %v8687_v36  ;;  %v6132_v19 = vunpack.i.l.bf16 %v8250_v3  ;;  %v6153_v4 = vunpack.i.h.bf16 %v8526_v53 }
 0x191   : > { %v6404_v23 = vpack.i.bf16 %v2143_v17, %v2031_v41  ;;  %v6152_v61 = vunpack.i.l.bf16 %v8526_v53  ;;  %v2378_v59 = vrot.slane %v6128_v45, 4  ;;  %v2376_v20 = vrot.slane %v6138_v31, 4 }
 0x192   : > { %v2264_v43 = vrot.slane %v6137_v30, 4  ;;  %v2388_v48 = vrot.slane %v6143_v52, 4  ;;  %v2266_v36 = vrot.slane %v6127_v21, 4  ;;  %v2277_v39 = vsel %vm522_vm4, %v2276_v32, %v6132_v19 }
 0x193   : > { %6410 = vrot.lane.b32.xlu0 %v6409_v47, %s6957_s20  ;;  %6405 = vrot.lane.b32.xlu2 %v6404_v23, %s6960_s23  ;;  %v6218_v3 = vunpack.i.h.bf16 %v8885_v50  ;;  %v6217_v44 = vunpack.i.l.bf16 %v8885_v50  ;;  %v2390_v53 = vrot.slane %v6133_v26, 4  ;;  %v2377_v33 = vsel %vm522_vm4, %v2376_v20, %v6128_v45 }
 0x194   : > { %v2412_v18 = vrot.slane %v6223_v13, 4  ;;  %v2300_v15 = vrot.slane %v6222_v1, 4  ;;  %v8919_v14 = vpop.permute.xlu1 %6235  ;;  %v2414_v6 = vrot.slane %v6153_v4, 4  ;;  %v2302_v63 = vrot.slane %v6152_v61, 4 }
 0x195   : > { %v2379_v51 = vsel %vm522_vm4, %v6138_v31, %v2378_v59  ;;  %v2265_v41 = vsel %vm522_vm4, %v2264_v43, %v6127_v21  ;;  %v2389_v47 = vsel %vm522_vm4, %v2388_v48, %v6133_v26  ;;  %v8925_v32 = vperm.slane %v2277_v39, %v7065_v5  ;;  %v8937_v43 = vpop.permute.xlu0 %6260 }
 0x196   : > { %v2400_v17 = vrot.slane %v6218_v3, 4  ;;  %v2288_v50 = vrot.slane %v6217_v44, 4  ;;  %v6148_v23 = vunpack.i.h.bf16 %v8348_v58  ;;  %v6147_v45 = vunpack.i.l.bf16 %v8348_v58  ;;  %11967 = vst [vmem:[#allocation31_spill] sm:$0xff] %v8937_v43 }
 0x197   : > { %v8930_v20 = vperm.slane %v2377_v33, %v7065_v5  ;;  %v2267_v10 = vsel %vm522_vm4, %v6137_v30, %v2266_v36  ;;  %v2413_v31 = vsel %vm522_vm4, %v2412_v18, %v6153_v4  ;;  %v2415_v21 = vsel %vm522_vm4, %v6223_v13, %v2414_v6 }
 0x198   : > { %v2301_v26 = vsel %vm522_vm4, %v2300_v15, %v6152_v61  ;;  %v2303_v59 = vsel %vm522_vm4, %v6222_v1, %v2302_v63  ;;  %v2278_v48 = vrot.slane %v6132_v19, 4  ;;  %v8940_v39 = vperm.slane %v2379_v51, %v7065_v5 }
 0x199   : > { %v8943_v58 = vperm.slane %v2265_v41, %v7065_v5  ;;  %v8946_v33 = vperm.slane %v2389_v47, %v7065_v5  ;;  %v8949_v30 = vperm.slane %v2267_v10, %v7065_v5  ;;  %v2312_v13 = vrot.slane %v8925_v32, 4  ;;  %v8966_v10 = vpop.permute.xlu2 %6285 }
 0x19a   : > { %v2401_v4 = vsel %vm522_vm4, %v2400_v17, %v6148_v23  ;;  %v2289_v1 = vsel %vm522_vm4, %v2288_v50, %v6147_v45  ;;  %v8955_v19 = vperm.slane %v2413_v31, %v7065_v5  ;;  %v8958_v61 = vperm.slane %v2415_v21, %v7065_v5 }
 0x19b   : > { %v8961_v36 = vperm.slane %v2301_v26, %v7065_v5  ;;  %v8964_v18 = vperm.slane %v2303_v59, %v7065_v5  ;;  %v2402_v15 = vrot.slane %v6148_v23, 4  ;;  %v2290_v6 = vrot.slane %v6147_v45, 4 }
 0x19c   : > { %v2426_v63 = vrot.slane %v8930_v20, 4  ;;  %v2391_v51 = vsel %vm522_vm4, %v6143_v52, %v2390_v53  ;;  %v2424_v41 = vrot.slane %v8946_v33, 4  ;;  %v11968_v47 = vunpack.i.l.bf16 %v8634_v16  ;;  %v8983_v52 = vpop.permute.xlu1 %6250 }
 0x19d   : > { %v2407_v50 = vperm.slane %v2401_v4, %v7065_v5  ;;  %v2295_v31 = vperm.slane %v2289_v1, %v7065_v5  ;;  %v2314_v23 = vrot.slane %v8943_v58, 4  ;;  %v2313_v26 = vsel %vm522_vm4, %v2312_v13, %v8943_v58  ;;  %11969 = vst [vmem:[#allocation32_spill] sm:$0xff] %v8983_v52  ;;  %v6276_v37 = vpop.permute.xlu0 %6275 }
 0x19e   : > { %v2279_v17 = vsel %vm522_vm4, %v11968_v47, %v2278_v48  ;;  %v2448_v53 = vrot.slane %v8955_v19, 4  ;;  %v2336_v59 = vrot.slane %v8961_v36, 4  ;;  %v2348_v48 = vrot.slane %v8964_v18, 4 }
 0x19f   : > { %v8990_v4 = vperm.slane %v2391_v51, %v7065_v5  ;;  %v8993_v1 = vperm.slane %v2279_v17, %v7065_v5  ;;  %v8997_v58 = vperm.slane %v2313_v26, %v7470_v0  ;;  %v2403_v13 = vsel %vm522_vm4, %v6218_v3, %v2402_v15 }
 0x1a0   : > { %v2337_v21 = vsel %vm522_vm4, %v2336_v59, %v2295_v31  ;;  %v2425_v45 = vsel %vm522_vm4, %v2424_v41, %v8930_v20  ;;  %v2449_v16 = vsel %vm522_vm4, %v2448_v53, %v2407_v50  ;;  %v2291_v51 = vsel %vm522_vm4, %v6217_v44, %v2290_v6 }
 0x1a1   : > { %11970 = vst [vmem:[#allocation33_spill] sm:$0xff] %v8997_v58  ;;  %v9006_v17 = vperm.slane %v2337_v21, %v7470_v0  ;;  %v2362_v47 = vrot.slane %v8997_v58, 4  ;;  %v9010_v26 = vperm.slane %v2425_v45, %v7470_v0  ;;  %v6288_v15 = vunpack.i.h.bf16 %v8966_v10  ;;  %v9027_v27 = vpop.permute.xlu2 %6300 }
 0x1a2   : > { %v6287_v59 = vunpack.i.l.bf16 %v8966_v10  ;;  %v9016_v20 = vperm.slane %v2449_v16, %v7470_v0  ;;  %v2436_v44 = vrot.slane %v8990_v4, 4  ;;  %v9020_v6 = vperm.slane %v2403_v13, %v7065_v5 }
 0x1a3   : > { %11971 = vst [vmem:[#allocation34_spill] sm:$0xff] %v9006_v17  ;;  %v2363_v41 = vsel %vm522_vm4, %v9006_v17, %v2362_v47  ;;  %v2474_v21 = vrot.slane %v9010_v26, 4  ;;  %v2324_v45 = vrot.slane %v8993_v1, 4  ;;  %v2299_v53 = vperm.slane %v2291_v51, %v7065_v5 }
 0x1a4   : > { %11972 = vst [vmem:[#allocation35_spill] sm:$0xff] %v9010_v26  ;;  %v2338_v3 = vrot.slane %v2295_v31, 4  ;;  %v6277_v10 = vunpack.i.l.bf16 %v6276_v37  ;;  %v11974_v16 = vunpack.i.h.bf16 %v8910_v22  ;;  %v2450_v2 = vrot.slane %v2407_v50, 4 }
 0x1a5   : > { %11973 = vst [vmem:[#allocation36_spill] sm:$0xff] %v9016_v20  ;;  %v6278_v13 = vunpack.i.h.bf16 %v6276_v37  ;;  %v2475_v52 = vsel %vm522_vm4, %v9016_v20, %v2474_v21  ;;  %v11975_v47 = vunpack.i.l.bf16 %v8910_v22  ;;  %v3081_v26 = vrot.slane %v6288_v15, 4  ;;  %v9044_v37 = vpop.permute.xlu1 %6265  ;;  %v9063_v20 = vpop.permute.xlu0 %6290 }
 0x1a6   : > { %v9031_v38 = vrot.slane %v11974_v16, 4  ;;  %v2969_v43 = vrot.slane %v6287_v59, 4  ;;  %v6414_v51 = vpack.i.bf16 %v2475_v52, %v2363_v41  ;;  %v2462_v31 = vrot.slane %v9020_v6, 4  ;;  %11976 = vst [vmem:[#allocation37_spill] sm:$0xff] %v9044_v37 }
 0x1a7   : > { %v9037_v58 = vrot.slane %v11975_v47, 4  ;;  %v2315_v50 = vsel %vm522_vm4, %v8925_v32, %v2314_v23  ;;  %v2350_v16 = vrot.slane %v2299_v53, 4  ;;  %v2339_v52 = vsel %vm522_vm4, %v8961_v36, %v2338_v3 }
 0x1a8   : > { %v2970_v21 = vsel %vm522_vm4, %v2969_v43, %v6277_v10  ;;  %6415 = vrot.lane.b32.xlu0 %v6414_v51, %s6954_s17  ;;  %v2323_v47 = vperm.slane %v2315_v50, %v7470_v0  ;;  %v3083_v41 = vrot.slane %v6278_v13, 4  ;;  %v2347_v42 = vperm.slane %v2339_v52, %v7470_v0 }
 0x1a9   : > { %v2427_v17 = vsel %vm522_vm4, %v8946_v33, %v2426_v63  ;;  %v2451_v32 = vsel %vm522_vm4, %v8955_v19, %v2450_v2  ;;  %v2971_v23 = vrot.slane %v6277_v10, 4  ;;  %v9059_v50 = vperm.slane %v2970_v21, %v7065_v5 }
 0x1aa   : > { %v2366_v37 = vrot.slane %v2323_v47, 4  ;;  %v2435_v43 = vperm.slane %v2427_v17, %v7470_v0  ;;  %v2459_v51 = vperm.slane %v2451_v32, %v7470_v0  ;;  %v3082_v36 = vsel %vm522_vm4, %v3081_v26, %v6278_v13 }
 0x1ab   : > { %v2364_v3 = vrot.slane %v2347_v42, 4  ;;  %v2349_v52 = vsel %vm522_vm4, %v2348_v48, %v2299_v53  ;;  %v2325_v19 = vsel %vm522_vm4, %v2324_v45, %v8949_v30  ;;  %v2437_v21 = vsel %vm522_vm4, %v2436_v44, %v8940_v39 }
 0x1ac   : > { %v2367_v33 = vsel %vm522_vm4, %v2347_v42, %v2366_v37  ;;  %v2478_v63 = vrot.slane %v2435_v43, 4  ;;  %v2476_v2 = vrot.slane %v2459_v51, 4  ;;  %v2355_v10 = vperm.slane %v2349_v52, %v7470_v0 }
 0x1ad   : > { %v2365_v17 = vsel %vm522_vm4, %v2364_v3, %v2323_v47  ;;  %v11977_v26 = vrot.slane %v8958_v61, 4  ;;  %v9077_v53 = vsel %vm522_vm4, %v6288_v15, %v3083_v41  ;;  %v2331_v32 = vperm.slane %v2325_v19, %v7470_v0 }
 0x1ae   : > { %v2479_v42 = vsel %vm522_vm4, %v2459_v51, %v2478_v63  ;;  %v2477_v13 = vsel %vm522_vm4, %v2476_v2, %v2435_v43  ;;  %v2368_v3 = vrot.slane %v2355_v10, 4  ;;  %v2972_v44 = vsel %vm522_vm4, %v6287_v59, %v2971_v23 }
 0x1af   : > { %v2461_v48 = vsel %vm522_vm4, %v11977_v26, %v9020_v6  ;;  %v6424_v37 = vpack.i.bf16 %v2479_v42, %v2367_v33  ;;  %v6419_v47 = vpack.i.bf16 %v2477_v13, %v2365_v17  ;;  %v9085_v52 = vperm.slane %v3082_v36, %v7065_v5  ;;  %v9099_v36 = vpop.permute.xlu1 %6280 }
 0x1b0   : > { %v2467_v45 = vperm.slane %v2461_v48, %v7470_v0  ;;  %v2443_v6 = vperm.slane %v2437_v21, %v7470_v0  ;;  %v11978_v41 = vunpack.i.l.bf16 %v9027_v27  ;;  %v2369_v43 = vsel %vm522_vm4, %v2368_v3, %v2331_v32  ;;  %v9117_v3 = vpop.permute.xlu0 %6305 }
 0x1b1   : > { %6425 = vrot.lane.b32.xlu2 %v6424_v37, %s6959_s22  ;;  %6420 = vrot.lane.b32.xlu1 %v6419_v47, %s6956_s19  ;;  %v11979_v33 = vrot.slane %v8949_v30, 4  ;;  %v2351_v23 = vsel %vm522_vm4, %v8964_v18, %v2350_v16  ;;  %v6293_v63 = vunpack.i.h.bf16 %v9063_v20  ;;  %v6292_v2 = vunpack.i.l.bf16 %v9063_v20 }
 0x1b2   : > { %v2480_v15 = vrot.slane %v2467_v45, 4  ;;  %v2981_v51 = vrot.slane %v11978_v41, 4  ;;  %v2359_v26 = vperm.slane %v2351_v23, %v7470_v0  ;;  %v11980_v30 = vrot.slane %v8940_v39, 4 }
 0x1b3   : > { %v2327_v59 = vsel %vm522_vm4, %v8993_v1, %v11979_v33  ;;  %v2463_v18 = vsel %vm522_vm4, %v8958_v61, %v2462_v31  ;;  %v2370_v20 = vrot.slane %v2331_v32, 4  ;;  %v2482_v42 = vrot.slane %v2443_v6, 4 }
 0x1b4   : > { %v2481_v19 = vsel %vm522_vm4, %v2480_v15, %v2443_v6  ;;  %v2335_v17 = vperm.slane %v2327_v59, %v7470_v0  ;;  %v2439_v1 = vsel %vm522_vm4, %v8990_v4, %v11980_v30  ;;  %v2471_v48 = vperm.slane %v2463_v18, %v7470_v0 }
 0x1b5   : > { %v6429_v21 = vpack.i.bf16 %v2481_v19, %v2369_v43  ;;  %v2447_v16 = vperm.slane %v2439_v1, %v7470_v0  ;;  %v2372_v13 = vrot.slane %v2359_v26, 4  ;;  %v6283_v47 = vunpack.i.h.bf16 %v9099_v36 }
 0x1b6   : > { %v2374_v37 = vrot.slane %v2335_v17, 4  ;;  %v6282_v39 = vunpack.i.l.bf16 %v9099_v36  ;;  %v2484_v4 = vrot.slane %v2471_v48, 4  ;;  %v2371_v15 = vsel %vm522_vm4, %v2355_v10, %v2370_v20 }
 0x1b7   : > { %6430 = vrot.lane.b32.xlu0 %v6429_v21, %s6955_s18  ;;  %v2483_v61 = vsel %vm522_vm4, %v2467_v45, %v2482_v42  ;;  %v2486_v31 = vrot.slane %v2447_v16, 4  ;;  %v3095_v41 = vrot.slane %v6293_v63, 4  ;;  %v2373_v32 = vsel %vm522_vm4, %v2372_v13, %v2335_v17  ;;  %v6296_v13 = vpop.permute.xlu1 %6295 }
 0x1b8   : > { %v6434_v6 = vpack.i.bf16 %v2483_v61, %v2371_v15  ;;  %v3069_v43 = vrot.slane %v6283_v47, 4  ;;  %v2485_v33 = vsel %vm522_vm4, %v2484_v4, %v2447_v16  ;;  %v2375_v59 = vsel %vm522_vm4, %v2359_v26, %v2374_v37 }
 0x1b9   : > { %v2487_v23 = vsel %vm522_vm4, %v2471_v48, %v2486_v31  ;;  %v2957_v36 = vrot.slane %v6282_v39, 4  ;;  %v9126_v19 = vperm.slane %v2972_v44, %v7065_v5  ;;  %v2982_v10 = vsel %vm522_vm4, %v2981_v51, %v6292_v2 }
 0x1ba   : > { %v6307_v45 = vunpack.i.l.bf16 %v9117_v3  ;;  %v6439_v21 = vpack.i.bf16 %v2485_v33, %v2373_v32  ;;  %6435 = vrot.lane.b32.xlu1 %v6434_v6, %s6958_s21  ;;  %v11981_v17 = vunpack.i.h.bf16 %v9027_v27  ;;  %v3005_v1 = vrot.slane %v9059_v50, 4 }
 0x1bb   : > { %v2983_v18 = vrot.slane %v6292_v2, 4  ;;  %v11982_v26 = vunpack.i.l.bf16 %v8910_v22  ;;  %v6308_v44 = vunpack.i.h.bf16 %v9117_v3  ;;  %v6444_v51 = vpack.i.bf16 %v2487_v23, %v2375_v59 }
 0x1bc   : > { %v3093_v30 = vrot.slane %v11981_v17, 4  ;;  %6440 = vrot.lane.b32.xlu2 %v6439_v21, %s6960_s23  ;;  %v11983_v20 = vunpack.i.h.bf16 %v8910_v22  ;;  %v9145_v37 = vperm.slane %v9077_v53, %v7065_v5  ;;  %v2988_v2 = vperm.slane %v2982_v10, %v7065_v5 }
 0x1bd   : > { %v2958_v16 = vsel %vm522_vm4, %v2957_v36, %v11982_v26  ;;  %v11984_v3 = vmov %v11981_v17  ;;  %v3017_v61 = vrot.slane %v9126_v19, 4  ;;  %v3117_v31 = vrot.slane %v9085_v52, 4 }
 0x1be   : > { %v2964_v48 = vperm.slane %v2958_v16, %v7065_v5  ;;  %v3070_v42 = vsel %vm522_vm4, %v3069_v43, %v11983_v20  ;;  %v3094_v4 = vsel %vm522_vm4, %v3093_v30, %v6293_v63  ;;  %v3096_v15 = vsel %vm522_vm4, %v11984_v3, %v3095_v41 }
 0x1bf   : > { %v2993_v22 = vrot.slane %v6307_v45, 4  ;;  %6445 = vrot.lane.b32.xlu0 %v6444_v51, %s6957_s20  ;;  %v2960_v32 = vsel %vm522_vm4, %v6282_v39, %v9037_v58  ;;  %v3076_v6 = vperm.slane %v3070_v42, %v7065_v5  ;;  %v6298_v43 = vunpack.i.h.bf16 %v6296_v13 }
 0x1c0   : > { %v3007_v53 = vrot.slane %v2964_v48, 4  ;;  %v6297_v33 = vunpack.i.l.bf16 %v6296_v13  ;;  %v11985_v63 = vunpack.i.l.bf16 %v9027_v27  ;;  %v3100_v41 = vperm.slane %v3094_v4, %v7065_v5 }
 0x1c1   : > { %v9163_v23 = vperm.slane %v3096_v15, %v7065_v5  ;;  %v3105_v36 = vrot.slane %v6308_v44, 4  ;;  %v3031_v10 = vrot.slane %v2988_v2, 4  ;;  %v9166_v21 = vperm.slane %v2960_v32, %v7065_v5 }
 0x1c2   : > { %v2984_v59 = vsel %vm522_vm4, %v11985_v63, %v2983_v18  ;;  %v2994_v58 = vsel %vm522_vm4, %v2993_v22, %v6297_v33  ;;  %v2995_v39 = vrot.slane %v6297_v33, 4  ;;  %v3072_v17 = vsel %vm522_vm4, %v6283_v47, %v9031_v38 }
 0x1c3   : > { %v3107_v30 = vrot.slane %v6298_v43, 4  ;;  %v3000_v27 = vperm.slane %v2994_v58, %v7065_v5  ;;  %v3106_v18 = vsel %vm522_vm4, %v3105_v36, %v6298_v43  ;;  %v3119_v26 = vrot.slane %v3076_v6, 4 }
 0x1c4   : > { %v2996_v16 = vsel %vm522_vm4, %v6307_v45, %v2995_v39  ;;  %v3112_v51 = vperm.slane %v3106_v18, %v7065_v5  ;;  %v3008_v20 = vsel %vm522_vm4, %v9059_v50, %v3007_v53  ;;  %v2992_v42 = vperm.slane %v2984_v59, %v7065_v5 }
 0x1c5   : > { %v3143_v13 = vrot.slane %v3100_v41, 4  ;;  %v3029_v4 = vrot.slane %v3000_v27, 4  ;;  %v3016_v3 = vperm.slane %v3008_v20, %v7470_v0  ;;  %v3019_v38 = vrot.slane %v9166_v21, 4  ;;  %v9210_v20 = vpop.permute.xlu2 %6310 }
 0x1c6   : > { %v3080_v47 = vperm.slane %v3072_v17, %v7065_v5  ;;  %v3141_v15 = vrot.slane %v3112_v51, 4  ;;  %v3032_v22 = vsel %vm522_vm4, %v3000_v27, %v3031_v10  ;;  %v3004_v45 = vperm.slane %v2996_v16, %v7065_v5 }
 0x1c7   : > { %v3108_v32 = vsel %vm522_vm4, %v6308_v44, %v3107_v30  ;;  %v3040_v43 = vperm.slane %v3032_v22, %v7470_v0  ;;  %v3059_v50 = vrot.slane %v3016_v3, 4  ;;  %v3120_v53 = vsel %vm522_vm4, %v9085_v52, %v3119_v26 }
 0x1c8   : > { %v3144_v33 = vsel %vm522_vm4, %v3112_v51, %v3143_v13  ;;  %v3006_v63 = vsel %vm522_vm4, %v3005_v1, %v2964_v48  ;;  %v3030_v59 = vsel %vm522_vm4, %v3029_v4, %v2988_v2  ;;  %v3128_v10 = vperm.slane %v3120_v53, %v7470_v0 }
 0x1c9   : > { %v3060_v36 = vsel %vm522_vm4, %v3040_v43, %v3059_v50  ;;  %v3152_v58 = vperm.slane %v3144_v33, %v7470_v0  ;;  %v3057_v39 = vrot.slane %v3040_v43, 4  ;;  %v9194_v44 = vperm.slane %v3006_v63, %v7470_v0 }
 0x1ca   : > { %v9197_v17 = vperm.slane %v3030_v59, %v7470_v0  ;;  %v3118_v52 = vsel %vm522_vm4, %v3117_v31, %v3076_v6  ;;  %v3142_v30 = vsel %vm522_vm4, %v3141_v15, %v3100_v41  ;;  %v3171_v1 = vrot.slane %v3128_v10, 4 }
 0x1cb   : > { %v3058_v48 = vsel %vm522_vm4, %v3057_v39, %v3016_v3  ;;  %v3169_v2 = vrot.slane %v3152_v58, 4  ;;  %v9203_v27 = vperm.slane %v3118_v52, %v7470_v0  ;;  %v3043_v18 = vrot.slane %v2992_v42, 4 }
 0x1cc   : > { %v3116_v26 = vperm.slane %v3108_v32, %v7065_v5  ;;  %v3055_v16 = vrot.slane %v9194_v44, 4  ;;  %v9208_v51 = vperm.slane %v3142_v30, %v7470_v0  ;;  %v3041_v31 = vrot.slane %v3004_v45, 4 }
 0x1cd   : > { %v3172_v6 = vsel %vm522_vm4, %v3152_v58, %v3171_v1  ;;  %v3170_v41 = vsel %vm522_vm4, %v3169_v2, %v3128_v10  ;;  %v3167_v13 = vrot.slane %v9203_v27, 4  ;;  %v3131_v4 = vrot.slane %v3080_v47, 4 }
 0x1ce   : > { %v6459_v3 = vpack.i.bf16 %v3172_v6, %v3060_v36  ;;  %v6454_v15 = vpack.i.bf16 %v3170_v41, %v3058_v48  ;;  %v3056_v22 = vsel %vm522_vm4, %v9197_v17, %v3055_v16  ;;  %v3155_v32 = vrot.slane %v9163_v23, 4  ;;  %v9247_v6 = vpop.permute.xlu2 %6325 }
 0x1cf   : > { %v3168_v43 = vsel %vm522_vm4, %v9208_v51, %v3167_v13  ;;  %v3020_v50 = vsel %vm522_vm4, %v9126_v19, %v3019_v38  ;;  %v3044_v53 = vsel %vm522_vm4, %v3004_v45, %v3043_v18  ;;  %v3153_v33 = vrot.slane %v3116_v26, 4  ;;  %11986 = vst [vmem:[#allocation38_spill] sm:$0xff] %v9247_v6 }
 0x1d0   : > { %6460 = vrot.lane.b32.xlu0 %v6459_v3, %s6959_s22  ;;  %6455 = vrot.lane.b32.xlu2 %v6454_v15, %s6956_s19  ;;  %v6449_v63 = vpack.i.bf16 %v3168_v43, %v3056_v22  ;;  %v3052_v59 = vperm.slane %v3044_v53, %v7470_v0  ;;  %v3129_v36 = vrot.slane %v9145_v37, 4  ;;  %v3156_v10 = vsel %vm522_vm4, %v3116_v26, %v3155_v32 }
 0x1d1   : > { %v3018_v58 = vsel %vm522_vm4, %v3017_v61, %v9166_v21  ;;  %v3042_v38 = vsel %vm522_vm4, %v3041_v31, %v2992_v42  ;;  %v3028_v45 = vperm.slane %v3020_v50, %v7470_v0  ;;  %v3132_v52 = vsel %vm522_vm4, %v9145_v37, %v3131_v4 }
 0x1d2   : > { %6450 = vrot.lane.b32.xlu1 %v6449_v63, %s6954_s17  ;;  %v3065_v39 = vrot.slane %v3052_v59, 4  ;;  %v3164_v30 = vperm.slane %v3156_v10, %v7470_v0  ;;  %v3024_v1 = vperm.slane %v3018_v58, %v7470_v0  ;;  %v3048_v48 = vperm.slane %v3042_v38, %v7470_v0  ;;  %v9266_v10 = vpop.permute.xlu0 %6315  ;;  %v11989_v58 = vld [vmem:[#allocation17_spill] sm:$0xff] }
 0x1d3   : > { %v3130_v19 = vsel %vm522_vm4, %v3129_v36, %v3080_v47  ;;  %v3154_v21 = vsel %vm522_vm4, %v3153_v33, %v9163_v23  ;;  %v3140_v2 = vperm.slane %v3132_v52, %v7470_v0  ;;  %v3067_v43 = vrot.slane %v3028_v45, 4  ;;  %11988 = vst [vmem:[#allocation40_spill] sm:$0xff] %v9266_v10 }
 0x1d4   : > { %v3136_v61 = vperm.slane %v3130_v19, %v7470_v0  ;;  %v3066_v42 = vsel %vm522_vm4, %v3065_v39, %v3028_v45  ;;  %v3177_v18 = vrot.slane %v3164_v30, 4  ;;  %v3063_v26 = vrot.slane %v3024_v1, 4  ;;  %v11992_v45 = vld [vmem:[#allocation2_spill] sm:$0xff] }
 0x1d5   : > { %v3160_v37 = vperm.slane %v3154_v21, %v7470_v0  ;;  %v3061_v31 = vrot.slane %v3048_v48, 4  ;;  %v3179_v50 = vrot.slane %v3140_v2, 4  ;;  %v3068_v53 = vsel %vm522_vm4, %v3052_v59, %v3067_v43  ;;  %v11991_v59 = vld [vmem:[#allocation3_spill] sm:$0xff]  ;;  %v11995_v39 = vld [vmem:[#allocation14_spill] sm:$0xff] }
 0x1d6   : > { %v3175_v16 = vrot.slane %v3136_v61, 4  ;;  %v3178_v41 = vsel %vm522_vm4, %v3177_v18, %v3140_v2  ;;  %v3064_v47 = vsel %vm522_vm4, %v3048_v48, %v3063_v26  ;;  %v9259_v63 = vpop.permute.xlu2 %6340 }
 0x1d7   : > { %v6474_v13 = vpack.i.bf16 %v3178_v41, %v3066_v42  ;;  %v3062_v23 = vsel %vm522_vm4, %v3061_v31, %v3024_v1  ;;  %v3173_v3 = vrot.slane %v3160_v37, 4  ;;  %v3180_v33 = vsel %vm522_vm4, %v3164_v30, %v3179_v50  ;;  %11987 = vst [vmem:[#allocation39_spill] sm:$0xff] %v9259_v63  ;;  %v11997_v30 = vld [vmem:[#allocation12_spill] sm:$0xff]  ;;  %v9286_v1 = vpop.permute.xlu1 %6320 }
 0x1d8   : > { %v3176_v4 = vsel %vm522_vm4, %v3160_v37, %v3175_v16  ;;  %v6479_v36 = vpack.i.bf16 %v3180_v33, %v3068_v53  ;;  %v3053_v33 = vrot.slane %v9197_v17, 4 }
 0x1d9   : > { %v6469_v15 = vpack.i.bf16 %v3176_v4, %v3064_v47  ;;  %6475 = vrot.lane.b32.xlu0 %v6474_v13, %s6960_s23  ;;  %v3174_v22 = vsel %vm522_vm4, %v3173_v3, %v3136_v61 }
 0x1da   : > { %v6464_v32 = vpack.i.bf16 %v3174_v22, %v3062_v23  ;;  %v3054_v63 = vsel %vm522_vm4, %v3053_v33, %v9194_v44 }
 0x1db   : > { %6470 = vrot.lane.b32.xlu2 %v6469_v15, %s6958_s21 }
 0x1dc   : > { %6465 = vrot.lane.b32.xlu1 %v6464_v32, %s6955_s18 }
 0x1de   : > { %v9270_v38 = vpop.permute.xlu2 %6345 }
 0x1df   : > { %11990 = vst [vmem:[#allocation17_spill] sm:$0xff] %v9270_v38  ;;  %v9292_v61 = vpop.permute.xlu1 %6335 }
 0x1e0   : > { %12001 = vst [vmem:[#allocation41_spill] sm:$0xff] %v9292_v61 }
 0x1e1   : > { %6490 = vrot.lane.b32.xlu0 %v8090_v8, %s6952_s16  ;;  %v9276_v8 = vpop.permute.xlu0 %6330 }
 0x1e2   : > { %11993 = vst [vmem:[#allocation3_spill] sm:$0xff] %v9276_v8 }
 0x1e3   : > { %6485 = vrot.lane.b32.xlu2 %v8115_v46, %s6952_s16  ;;  %v11994_v46 = vld [vmem:[#allocation6_spill] sm:$0xff] }
 0x1e4   : > { %6480 = vrot.lane.b32.xlu1 %v6479_v36, %s6957_s20  ;;  %11998 = vst [vmem:[#allocation6_spill] sm:$0xff] %v9286_v1  ;;  %v3165_v36 = vrot.slane %v9208_v51, 4 }
 0x1e6   : > { %v9282_v52 = vpop.permute.xlu2 %6360 }
 0x1e7   : > { %11996 = vst [vmem:[#allocation2_spill] sm:$0xff] %v9282_v52  ;;  %v9300_v18 = vpop.permute.xlu1 %6355 }
 0x1e8   : > { %12005 = vst [vmem:[#allocation45_spill] sm:$0xff] %v9300_v18 }
 0x1e9   : > { %6505 = vrot.lane.b32.xlu0 %v11989_v58, %s6952_s16  ;;  %v9288_v48 = vpop.permute.xlu0 %6350 }
 0x1ea   : > { %11999 = vst [vmem:[#allocation14_spill] sm:$0xff] %v9288_v48 }
 0x1eb   : > { %6500 = vrot.lane.b32.xlu2 %v11991_v59, %s6952_s16 }
 0x1ec   : > { %6495 = vrot.lane.b32.xlu1 %v11992_v45, %s6952_s16 }
 0x1ee   : > { %v9290_v19 = vpop.permute.xlu2 %6375 }
 0x1ef   : > { %12000 = vst [vmem:[#allocation12_spill] sm:$0xff] %v9290_v19  ;;  %v9306_v16 = vpop.permute.xlu1 %6370  ;;  %v3166_v19 = vsel %vm522_vm4, %v3165_v36, %v9203_v27 }
 0x1f0   : > { %12008 = vst [vmem:[#allocation48_spill] sm:$0xff] %v9306_v16 }
 0x1f1   : > { %6520 = vrot.lane.b32.xlu0 %v11994_v46, %s6952_s16  ;;  %v9294_v21 = vpop.permute.xlu0 %6365 }
 0x1f2   : > { %12002 = vst [vmem:[#allocation42_spill] sm:$0xff] %v9294_v21 }
 0x1f3   : > { %6515 = vrot.lane.b32.xlu2 %v11995_v39, %s6952_s16 }
 0x1f4   : > { %6510 = vrot.lane.b32.xlu1 %v11997_v30, %s6952_s16 }
 0x1f6   : > { %v9296_v42 = vpop.permute.xlu2 %6390 }
 0x1f7   : > { %12003 = vst [vmem:[#allocation43_spill] sm:$0xff] %v9296_v42 }
 0x1f9   : > { %v9298_v2 = vpop.permute.xlu0 %6380 }
 0x1fa   : > { %12004 = vst [vmem:[#allocation44_spill] sm:$0xff] %v9298_v2  ;;  %v9312_v47 = vpop.permute.xlu1 %6385 }
 0x1fb   : > { %12010 = vst [vmem:[#allocation50_spill] sm:$0xff] %v9312_v47 }
 0x1fe   : > { %v9302_v26 = vpop.permute.xlu2 %6405 }
 0x1ff   : > { %12006 = vst [vmem:[#allocation46_spill] sm:$0xff] %v9302_v26 }
 0x201   : > { %v9304_v37 = vpop.permute.xlu0 %6395 }
 0x202   : > { %12007 = vst [vmem:[#allocation47_spill] sm:$0xff] %v9304_v37  ;;  %v9318_v23 = vpop.permute.xlu1 %6400 }
 0x203   : > { %12012 = vst [vmem:[#allocation52_spill] sm:$0xff] %v9318_v23 }
 0x209   : > { %v9310_v41 = vpop.permute.xlu0 %6410 }
 0x20a   : > { %12009 = vst [vmem:[#allocation49_spill] sm:$0xff] %v9310_v41 }
 0x20b   : > { %v9308_v31 = vpop.permute.xlu2 %6425 }
 0x216   : > { %v9314_v13 = vpop.permute.xlu2 %6440 }
 0x217   : > { %12011 = vst [vmem:[#allocation51_spill] sm:$0xff] %v9314_v13 }
 0x21a   : > { %v9316_v4 = vpop.permute.xlu0 %6415 }
 0x223   : > { %v9322_v22 = vpop.permute.xlu1 %6420 }
 0x229   : > { %v9320_v15 = vpop.permute.xlu0 %6430 }
 0x22a   : > { %v6456_v3 = vpop.permute.xlu2 %6455  ;;  %12013 = vst [vmem:[#allocation53_spill] sm:$0xff] %v9320_v15 }
 0x22b   : > { %v6458_v39 = vunpack.i.h.bf16 %v6456_v3  ;;  %v6457_v30 = vunpack.i.l.bf16 %v6456_v3 }
 0x22c   : > { %v9328_v50 = vpop.permute.xlu1 %6435 }
 0x22d   : > { %12016 = vst [vmem:[#allocation56_spill] sm:$0xff] %v9328_v50 }
 0x231   : > { %v9326_v43 = vpop.permute.xlu0 %6445 }
 0x232   : > { %12015 = vst [vmem:[#allocation55_spill] sm:$0xff] %v9326_v43 }
 0x235   : > { %v9324_v32 = vpop.permute.xlu2 %6470 }
 0x236   : > { %12014 = vst [vmem:[#allocation54_spill] sm:$0xff] %v9324_v32 }
 0x23d   : > { %v9330_v53 = vpop.permute.xlu2 %6485 }
 0x242   : > { %v6461_v58 = vpop.permute.xlu0 %6460 }
 0x243   : > { %v6463_v41 = vunpack.i.h.bf16 %v6461_v58  ;;  %v6462_v26 = vunpack.i.l.bf16 %v6461_v58 }
 0x244   : > { %v6451_v59 = vpop.permute.xlu1 %6450 }
 0x245   : > { %v6453_v45 = vunpack.i.h.bf16 %v6451_v59  ;;  %v6452_v46 = vunpack.i.l.bf16 %v6451_v59  ;;  %v6501_v37 = vpop.permute.xlu2 %6500 }
 0x246   : > { %v6503_v58 = vunpack.i.h.bf16 %v6501_v37 }
 0x247   : > { %v3244_v17 = vsel %vm802_vm6, %v3166_v19, %v6453_v45  ;;  %v3237_v51 = vsel %vm802_vm6, %v3054_v63, %v6452_v46  ;;  %v6502_v45 = vunpack.i.l.bf16 %v6501_v37 }
 0x248   : > { %v3245_v16 = vsel %vm804_vm7, %v3244_v17, %v6458_v39  ;;  %v3238_v23 = vsel %vm804_vm7, %v3237_v51, %v6457_v30 }
 0x249   : > { %v3239_v59 = vsel %vm806_vm8, %v3238_v23, %v6462_v26  ;;  %v3246_v3 = vsel %vm806_vm8, %v3245_v16, %v6463_v41  ;;  %v3423_v16 = vrot.slane %v6503_v58, 4  ;;  %v3311_v17 = vrot.slane %v6502_v45, 4 }
 0x24b   : > { %v9344_v44 = vpop.permute.xlu0 %6475 }
 0x24c   : > { %12017 = vst [vmem:[#allocation57_spill] sm:$0xff] %v9344_v44 }
 0x24d   : > { %v6516_v39 = vpop.permute.xlu2 %6515 }
 0x24e   : > { %v6466_v33 = vpop.permute.xlu1 %6465  ;;  %v6518_v51 = vunpack.i.h.bf16 %v6516_v39 }
 0x24f   : > { %v6468_v27 = vunpack.i.h.bf16 %v6466_v33  ;;  %v6467_v36 = vunpack.i.l.bf16 %v6466_v33  ;;  %v6517_v33 = vunpack.i.l.bf16 %v6516_v39 }
 0x250   : > { %v3435_v47 = vrot.slane %v6518_v51, 4 }
 0x251   : > { %v9347_v19 = vsel %vm808_vm9, %v3239_v59, %v6467_v36  ;;  %v9350_v63 = vsel %vm808_vm9, %v3246_v3, %v6468_v27  ;;  %v6488_v36 = vunpack.i.h.bf16 %v9330_v53  ;;  %v6487_v3 = vunpack.i.l.bf16 %v9330_v53 }
 0x252   : > { %12018 = vst [vmem:[#allocation58_spill] sm:$0xff] %v9347_v19 }
 0x253   : > { %12019 = vst [vmem:[#allocation59_spill] sm:$0xff] %v9350_v63  ;;  %v6491_v46 = vpop.permute.xlu0 %6490  ;;  %v3413_v61 = vrot.slane %v6488_v36, 4  ;;  %v3301_v52 = vrot.slane %v6487_v3, 4 }
 0x254   : > { %v6493_v26 = vunpack.i.h.bf16 %v6491_v46  ;;  %v6492_v23 = vunpack.i.l.bf16 %v6491_v46  ;;  %v3323_v46 = vrot.slane %v6517_v33, 4 }
 0x256   : > { %v3425_v41 = vrot.slane %v6493_v26, 4  ;;  %v9352_v30 = vpop.permute.xlu1 %6480  ;;  %v3424_v42 = vsel %vm522_vm4, %v3423_v16, %v6493_v26  ;;  %v3313_v59 = vrot.slane %v6492_v23, 4  ;;  %v3312_v37 = vsel %vm522_vm4, %v3311_v17, %v6492_v23 }
 0x257   : > { %12020 = vst [vmem:[#allocation60_spill] sm:$0xff] %v9352_v30  ;;  %v9360_v2 = vperm.slane %v3424_v42, %v7065_v5  ;;  %v3318_v39 = vperm.slane %v3312_v37, %v7065_v5 }
 0x258   : > { %v3426_v27 = vsel %vm522_vm4, %v6503_v58, %v3425_v41  ;;  %v3314_v18 = vsel %vm522_vm4, %v6502_v45, %v3313_v59 }
 0x259   : > { %v9365_v53 = vperm.slane %v3426_v27, %v7065_v5  ;;  %v3322_v8 = vperm.slane %v3314_v18, %v7065_v5  ;;  %v3347_v48 = vrot.slane %v3318_v39, 4 }
 0x25b   : > { %v6506_v21 = vpop.permute.xlu0 %6505  ;;  %v3359_v6 = vrot.slane %v3322_v8, 4 }
 0x25c   : > { %v6508_v26 = vunpack.i.h.bf16 %v6506_v21  ;;  %v6507_v16 = vunpack.i.l.bf16 %v6506_v21  ;;  %v3459_v21 = vrot.slane %v9360_v2, 4 }
 0x25e   : > { %v3436_v23 = vsel %vm522_vm4, %v3435_v47, %v6508_v26  ;;  %v3437_v58 = vrot.slane %v6508_v26, 4  ;;  %v3324_v41 = vsel %vm522_vm4, %v3323_v46, %v6507_v16  ;;  %v3325_v17 = vrot.slane %v6507_v16, 4  ;;  %v6496_v42 = vpop.permute.xlu1 %6495 }
 0x25f   : > { %v9371_v45 = vperm.slane %v3436_v23, %v7065_v5  ;;  %v6498_v59 = vunpack.i.h.bf16 %v6496_v42  ;;  %v6497_v37 = vunpack.i.l.bf16 %v6496_v42  ;;  %v3330_v26 = vperm.slane %v3324_v41, %v7065_v5 }
 0x260   : > { %v3438_v27 = vsel %vm522_vm4, %v6518_v51, %v3437_v58  ;;  %v3326_v1 = vsel %vm522_vm4, %v6517_v33, %v3325_v17 }
 0x261   : > { %v9378_v46 = vperm.slane %v3438_v27, %v7065_v5  ;;  %v9382_v18 = vperm.slane %v3326_v1, %v7065_v5  ;;  %v3411_v16 = vrot.slane %v6498_v59, 4  ;;  %v3414_v23 = vsel %vm522_vm4, %v6498_v59, %v3413_v61 }
 0x262   : > { %v3299_v42 = vrot.slane %v6497_v37, 4  ;;  %v3302_v38 = vsel %vm522_vm4, %v6497_v37, %v3301_v52  ;;  %v3485_v51 = vrot.slane %v9371_v45, 4  ;;  %v9388_v33 = vperm.slane %v3414_v23, %v7065_v5 }
 0x263   : > { %v3310_v58 = vperm.slane %v3302_v38, %v7065_v5  ;;  %v6521_v17 = vpop.permute.xlu0 %6520  ;;  %v3412_v41 = vsel %vm522_vm4, %v3411_v16, %v6488_v36  ;;  %v3373_v59 = vrot.slane %v3330_v26, 4  ;;  %v3385_v10 = vrot.slane %v9382_v18, 4 }
 0x264   : > { %v3300_v1 = vsel %vm522_vm4, %v3299_v42, %v6487_v3  ;;  %v6523_v27 = vunpack.i.h.bf16 %v6521_v17  ;;  %v6522_v47 = vunpack.i.l.bf16 %v6521_v17  ;;  %v3418_v52 = vperm.slane %v3412_v41, %v7065_v5 }
 0x265   : > { %v3306_v37 = vperm.slane %v3300_v1, %v7065_v5  ;;  %v3473_v23 = vrot.slane %v9388_v33, 4  ;;  %v3360_v42 = vsel %vm522_vm4, %v3359_v6, %v3310_v58  ;;  %v3361_v17 = vrot.slane %v3310_v58, 4 }
 0x266   : > { %v3447_v13 = vrot.slane %v6523_v27, 4  ;;  %v3335_v38 = vrot.slane %v6522_v47, 4  ;;  %v6511_v43 = vpop.permute.xlu1 %6510  ;;  %v3461_v63 = vrot.slane %v3418_v52, 4  ;;  %v3460_v41 = vsel %vm522_vm4, %v3459_v21, %v3418_v52 }
 0x267   : > { %v3349_v36 = vrot.slane %v3306_v37, 4  ;;  %v6513_v16 = vunpack.i.h.bf16 %v6511_v43  ;;  %v6512_v3 = vunpack.i.l.bf16 %v6511_v43  ;;  %v3348_v61 = vsel %vm522_vm4, %v3347_v48, %v3306_v37 }
 0x268   : > { %v3462_v6 = vsel %vm522_vm4, %v9360_v2, %v3461_v63 }
 0x269   : > { %v3449_v50 = vrot.slane %v6513_v16, 4  ;;  %v3336_v1 = vsel %vm522_vm4, %v3335_v38, %v6512_v3  ;;  %v3337_v15 = vrot.slane %v6512_v3, 4  ;;  %v3448_v19 = vsel %vm522_vm4, %v3447_v13, %v6513_v16 }
 0x26a   : > { %v3342_v44 = vperm.slane %v3336_v1, %v7065_v5  ;;  %v3454_v30 = vperm.slane %v3448_v19, %v7065_v5  ;;  %v3350_v32 = vsel %vm522_vm4, %v3318_v39, %v3349_v36  ;;  %v3470_v58 = vperm.slane %v3462_v6, %v7470_v0 }
 0x26b   : > { %v3338_v43 = vsel %vm522_vm4, %v6522_v47, %v3337_v15  ;;  %v3450_v48 = vsel %vm522_vm4, %v6523_v27, %v3449_v50  ;;  %v3358_v21 = vperm.slane %v3350_v32, %v7470_v0  ;;  %v3362_v38 = vsel %vm522_vm4, %v3322_v8, %v3361_v17 }
 0x26c   : > { %v3346_v52 = vperm.slane %v3338_v43, %v7065_v5  ;;  %v3371_v13 = vrot.slane %v3342_v44, 4  ;;  %v3483_v37 = vrot.slane %v3454_v30, 4  ;;  %v3458_v19 = vperm.slane %v3450_v48, %v7065_v5 }
 0x26d   : > { %v3374_v39 = vsel %vm522_vm4, %v3342_v44, %v3373_v59  ;;  %v3401_v36 = vrot.slane %v3358_v21, 4  ;;  %v3486_v2 = vsel %vm522_vm4, %v3454_v30, %v3485_v51  ;;  %v3513_v63 = vrot.slane %v3470_v58, 4 }
 0x26e   : > { %v3383_v15 = vrot.slane %v3346_v52, 4  ;;  %v3382_v50 = vperm.slane %v3374_v39, %v7470_v0  ;;  %v3494_v32 = vperm.slane %v3486_v2, %v7470_v0  ;;  %v9420_v47 = vperm.slane %v3348_v61, %v7470_v0 }
 0x26f   : > { %v3372_v27 = vsel %vm522_vm4, %v3371_v13, %v3330_v26  ;;  %v9424_v8 = vperm.slane %v3460_v41, %v7470_v0  ;;  %v3484_v44 = vsel %vm522_vm4, %v3483_v37, %v9371_v45  ;;  %v3495_v41 = vrot.slane %v3458_v19, 4 }
 0x270   : > { %v3402_v59 = vsel %vm522_vm4, %v3382_v50, %v3401_v36  ;;  %v3514_v30 = vsel %vm522_vm4, %v3494_v32, %v3513_v63  ;;  %v3399_v51 = vrot.slane %v3382_v50, 4  ;;  %v3511_v16 = vrot.slane %v3494_v32, 4 }
 0x271   : > { %v6534_v3 = vpack.i.bf16 %v3514_v30, %v3402_v59  ;;  %v9431_v17 = vperm.slane %v3372_v27, %v7470_v0  ;;  %v3397_v61 = vrot.slane %v9420_v47, 4  ;;  %v9435_v26 = vperm.slane %v3484_v44, %v7470_v0 }
 0x272   : > { %v3400_v1 = vsel %vm522_vm4, %v3399_v51, %v3358_v21  ;;  %v3512_v45 = vsel %vm522_vm4, %v3511_v16, %v3470_v58  ;;  %v3509_v6 = vrot.slane %v9424_v8, 4  ;;  %v12021_v43 = vrot.slane %v9365_v53, 4 }
 0x273   : > { %6535 = vrot.lane.b32.xlu0 %v6534_v3, %s6959_s22  ;;  %v6529_v13 = vpack.i.bf16 %v3512_v45, %v3400_v1  ;;  %v3398_v37 = vsel %vm522_vm4, %v9431_v17, %v3397_v61  ;;  %v3474_v39 = vsel %vm522_vm4, %v9365_v53, %v3473_v23  ;;  %v3370_v58 = vperm.slane %v3362_v38, %v7470_v0 }
 0x274   : > { %v3472_v48 = vsel %vm522_vm4, %v12021_v43, %v9388_v33  ;;  %v3510_v21 = vsel %vm522_vm4, %v9435_v26, %v3509_v6  ;;  %v3386_v36 = vsel %vm522_vm4, %v3346_v52, %v3385_v10  ;;  %v12022_v2 = vrot.slane %v9378_v46, 4 }
 0x275   : > { %6530 = vrot.lane.b32.xlu2 %v6529_v13, %s6956_s19  ;;  %v6524_v50 = vpack.i.bf16 %v3510_v21, %v3398_v37  ;;  %v3394_v32 = vperm.slane %v3386_v36, %v7470_v0  ;;  %v3366_v53 = vperm.slane %v3360_v42, %v7470_v0  ;;  %v3482_v23 = vperm.slane %v3474_v39, %v7470_v0  ;;  %v12023_v21 = vld [vmem:[#allocation21_spill] sm:$0xff] }
 0x276   : > { %v3498_v33 = vsel %vm522_vm4, %v3458_v19, %v12022_v2  ;;  %v3384_v38 = vsel %vm522_vm4, %v3383_v15, %v9382_v18  ;;  %v3478_v10 = vperm.slane %v3472_v48, %v7470_v0  ;;  %v3496_v52 = vsel %vm522_vm4, %v3495_v41, %v9378_v46  ;;  %v12024_v2 = vld [vmem:[#allocation22_spill] sm:$0xff] }
 0x277   : > { %v3506_v63 = vperm.slane %v3498_v33, %v7470_v0  ;;  %6525 = vrot.lane.b32.xlu1 %v6524_v50, %s6954_s17  ;;  %v3407_v19 = vrot.slane %v3394_v32, 4  ;;  %v3390_v44 = vperm.slane %v3384_v38, %v7470_v0  ;;  %v3405_v59 = vrot.slane %v3366_v53, 4  ;;  %v12025_v50 = vld [vmem:[#allocation18_spill] sm:$0xff] }
 0x278   : > { %v3502_v30 = vperm.slane %v3496_v52, %v7470_v0  ;;  %v3517_v42 = vrot.slane %v3478_v10, 4  ;;  %v3409_v43 = vrot.slane %v3370_v58, 4  ;;  %v3521_v48 = vrot.slane %v3482_v23, 4 }
 0x279   : > { %v3519_v27 = vrot.slane %v3506_v63, 4  ;;  %v3408_v51 = vsel %vm522_vm4, %v3407_v19, %v3370_v58  ;;  %v3406_v18 = vsel %vm522_vm4, %v3390_v44, %v3405_v59  ;;  %v3403_v15 = vrot.slane %v3390_v44, 4  ;;  %v12027_v19 = vld [vmem:[#allocation26_spill] sm:$0xff] }
 0x27a   : > { %v3518_v46 = vsel %vm522_vm4, %v3502_v30, %v3517_v42  ;;  %v3515_v61 = vrot.slane %v3502_v30, 4  ;;  %v3410_v13 = vsel %vm522_vm4, %v3394_v32, %v3409_v43  ;;  %v3522_v37 = vsel %vm522_vm4, %v3506_v63, %v3521_v48  ;;  %v12029_v32 = vld [vmem:[#allocation16_spill] sm:$0xff]  ;;  %v12030_v63 = vld [vmem:[#allocation19_spill] sm:$0xff] }
 0x27b   : > { %v3520_v16 = vsel %vm522_vm4, %v3519_v27, %v3482_v23  ;;  %v6544_v41 = vpack.i.bf16 %v3518_v46, %v3406_v18  ;;  %v3404_v1 = vsel %vm522_vm4, %v3403_v15, %v3366_v53  ;;  %v6554_v39 = vpack.i.bf16 %v3522_v37, %v3410_v13  ;;  %v12028_v23 = vld [vmem:[#allocation7_spill] sm:$0xff]  ;;  %v12031_v30 = vld [vmem:[#allocation20_spill] sm:$0xff] }
 0x27c   : > { %v6549_v3 = vpack.i.bf16 %v3520_v16, %v3408_v51  ;;  %v3516_v45 = vsel %vm522_vm4, %v3515_v61, %v3478_v10  ;;  %v618_v36 = vrot.slane %v12023_v21, 4  ;;  %v730_v33 = vrot.slane %v12024_v2, 4  ;;  %v12026_v10 = vld [vmem:[#allocation24_spill] sm:$0xff] }
 0x27d   : > { %6545 = vrot.lane.b32.xlu2 %v6544_v41, %s6958_s21  ;;  %v6539_v6 = vpack.i.bf16 %v3516_v45, %v3404_v1  ;;  %v6158_v53 = vunpack.i.h.bf16 %v12025_v50  ;;  %v6157_v38 = vunpack.i.l.bf16 %v12025_v50  ;;  %v1676_v52 = vrot.slane %v12026_v10, 4  ;;  %v12032_v18 = vld [vmem:[#allocation4_spill] sm:$0xff]  ;;  %v12041_v1 = vld [vmem:[#allocation31_spill] sm:$0xff] }
 0x27e   : > { %6550 = vrot.lane.b32.xlu0 %v6549_v3, %s6960_s23  ;;  %v1788_v58 = vrot.slane %v12027_v19, 4  ;;  %v2711_v27 = vrot.slane %v12028_v23, 4  ;;  %v2823_v44 = vrot.slane %v12029_v32, 4  ;;  %v619_v59 = vsel %vm522_vm4, %v618_v36, %v12030_v63  ;;  %v12033_v3 = vld [vmem:[#allocation13_spill] sm:$0xff]  ;;  %v12034_v23 = vld [vmem:[#allocation23_spill] sm:$0xff] }
 0x27f   : > { %6540 = vrot.lane.b32.xlu1 %v6539_v6, %s6955_s18  ;;  %v731_v42 = vsel %vm522_vm4, %v730_v33, %v12031_v30  ;;  %v6163_v51 = vunpack.i.h.bf16 %v8607_v24  ;;  %v6162_v16 = vunpack.i.l.bf16 %v8607_v24  ;;  %v975_v15 = vrot.slane %v12032_v18, 4 }
 0x280   : > { %v1087_v46 = vrot.slane %v12033_v3, 4  ;;  %v803_v61 = vsel %vm802_vm6, %v619_v59, %v6157_v38  ;;  %v816_v41 = vsel %vm802_vm6, %v731_v42, %v6158_v53  ;;  %v1317_v6 = vrot.slane %v8569_v11, 4  ;;  %v12035_v59 = vld [vmem:[#allocation25_spill] sm:$0xff]  ;;  %v12039_v53 = vld [vmem:[#allocation34_spill] sm:$0xff]  ;;  %v12064_v11 = vld [vmem:[#allocation3_spill] sm:$0xff] }
 0x281   : > { %v6167_v43 = vunpack.i.l.bf16 %v8689_v54  ;;  %v1429_v48 = vrot.slane %v8582_v62, 4  ;;  %v6168_v37 = vunpack.i.h.bf16 %v8689_v54  ;;  %v817_v21 = vsel %vm804_vm7, %v816_v41, %v6163_v51  ;;  %v12038_v41 = vld [vmem:[#allocation36_spill] sm:$0xff] }
 0x282   : > { %v2018_v36 = vrot.slane %v8765_v55, 4  ;;  %v6193_v2 = vunpack.i.h.bf16 %v8746_v7  ;;  %v2130_v33 = vrot.slane %v8781_v12, 4  ;;  %v6192_v38 = vunpack.i.l.bf16 %v8746_v7  ;;  %v12072_v55 = vld [vmem:[#allocation50_spill] sm:$0xff] }
 0x283   : > { %v1677_v32 = vsel %vm522_vm4, %v1676_v52, %v12034_v23  ;;  %v9523_v63 = vsel %vm806_vm8, %v817_v21, %v6168_v37  ;;  %v1789_v30 = vsel %vm522_vm4, %v1788_v58, %v12035_v59  ;;  %v6243_v42 = vunpack.i.h.bf16 %v8840_v49  ;;  %v12037_v59 = vld [vmem:[#allocation10_spill] sm:$0xff] }
 0x284   : > { %v6198_v7 = vunpack.i.h.bf16 %v8820_v25  ;;  %v1867_v51 = vsel %vm802_vm6, %v1789_v30, %v6193_v2  ;;  %v6197_v18 = vunpack.i.l.bf16 %v8820_v25  ;;  %v6238_v3 = vunpack.i.h.bf16 %v8919_v14 }
 0x285   : > { %v1860_v52 = vsel %vm802_vm6, %v1677_v32, %v6192_v38  ;;  %v6237_v58 = vunpack.i.l.bf16 %v8919_v14  ;;  %v12036_v38 = vld [vmem:[#allocation15_spill] sm:$0xff]  ;;  %v2712_v30 = vsel %vm522_vm4, %v2711_v27, %v12037_v59  ;;  %v2472_v50 = vrot.slane %v12038_v41, 4 }
 0x286   : > { %v9542_v25 = vsel %vm804_vm7, %v1867_v51, %v6198_v7  ;;  %v2824_v23 = vsel %vm522_vm4, %v2823_v44, %v12036_v38  ;;  %v9549_v14 = vsel %vm804_vm7, %v1860_v52, %v6197_v18  ;;  %v6313_v51 = vunpack.i.h.bf16 %v9210_v20  ;;  %v12040_v38 = vld [vmem:[#allocation30_spill] sm:$0xff]  ;;  %v12044_v44 = vld [vmem:[#allocation35_spill] sm:$0xff] }
 0x287   : > { %6555 = vrot.lane.b32.xlu1 %v6554_v39, %s6957_s20  ;;  %v805_v39 = vsel %vm804_vm7, %v803_v61, %v6162_v16  ;;  %v6242_v16 = vunpack.i.l.bf16 %v8840_v49  ;;  %v2902_v61 = vsel %vm802_vm6, %v2824_v23, %v6238_v3  ;;  %v2895_v7 = vsel %vm802_vm6, %v2712_v30, %v6237_v58  ;;  %v12042_v23 = vld [vmem:[#allocation5_spill] sm:$0xff]  ;;  %v12047_v3 = vld [vmem:[#allocation60_spill] sm:$0xff] }
 0x288   : > { %v9518_v19 = vsel %vm806_vm8, %v805_v39, %v6167_v43  ;;  %v2360_v21 = vrot.slane %v12039_v53, 4  ;;  %v6247_v52 = vunpack.i.l.bf16 %v12040_v38  ;;  %v6417_v2 = vunpack.i.l.bf16 %v9316_v4  ;;  %v12043_v30 = vld [vmem:[#allocation9_spill] sm:$0xff] }
 0x289   : > { %v976_v58 = vsel %vm522_vm4, %v975_v15, %v12042_v23  ;;  %v6422_v59 = vunpack.i.l.bf16 %v9322_v22  ;;  %v9569_v41 = vsel %vm804_vm7, %v2895_v7, %v6242_v16  ;;  %v9572_v53 = vsel %vm804_vm7, %v2902_v61, %v6243_v42  ;;  %v12045_v23 = vld [vmem:[#allocation33_spill] sm:$0xff]  ;;  %v12046_v61 = vld [vmem:[#allocation54_spill] sm:$0xff] }
 0x28a   : > { %v1088_v10 = vsel %vm522_vm4, %v1087_v46, %v12043_v30  ;;  %v6312_v45 = vunpack.i.l.bf16 %v9210_v20  ;;  %v6427_v32 = vunpack.i.l.bf16 %v9308_v31  ;;  %v2473_v15 = vsel %vm522_vm4, %v2472_v50, %v12044_v44 }
 0x28b   : > { %v1166_v54 = vsel %vm802_vm6, %v1088_v10, %v6313_v51  ;;  %v2361_v27 = vsel %vm522_vm4, %v2360_v21, %v12045_v23  ;;  %v6418_v16 = vunpack.i.h.bf16 %v9316_v4  ;;  %v6472_v7 = vunpack.i.l.bf16 %v12046_v61  ;;  %v12048_v51 = vld [vmem:[#allocation57_spill] sm:$0xff]  ;;  %v12049_v21 = vld [vmem:[#allocation58_spill] sm:$0xff] }
 0x28c   : > { %v2544_v42 = vsel %vm802_vm6, %v2361_v27, %v6417_v2  ;;  %v6482_v46 = vunpack.i.l.bf16 %v12047_v3  ;;  %v6423_v20 = vunpack.i.h.bf16 %v9322_v22  ;;  %v6477_v30 = vunpack.i.l.bf16 %v12048_v51  ;;  %v12050_v2 = vld [vmem:[#allocation53_spill] sm:$0xff] }
 0x28d   : > { %v2545_v10 = vsel %vm804_vm7, %v2544_v42, %v6422_v59  ;;  %v6473_v50 = vunpack.i.h.bf16 %v12046_v61  ;;  %v6483_v44 = vunpack.i.h.bf16 %v12047_v3  ;;  %v3241_v4 = vsel %vm810_vm10, %v12049_v21, %v6472_v7  ;;  %v12051_v42 = vld [vmem:[#allocation56_spill] sm:$0xff]  ;;  %v12052_v61 = vld [vmem:[#allocation59_spill] sm:$0xff] }
 0x28e   : > { %v6432_v27 = vunpack.i.l.bf16 %v12050_v2  ;;  %v6478_v23 = vunpack.i.h.bf16 %v12048_v51  ;;  %v3242_v22 = vsel %vm812_vm11, %v3241_v4, %v6477_v30  ;;  %v2551_v59 = vsel %vm802_vm6, %v2473_v15, %v6418_v16  ;;  %v12053_v4 = vld [vmem:[#allocation55_spill] sm:$0xff] }
 0x28f   : > { %v6437_v43 = vunpack.i.l.bf16 %v12051_v42  ;;  %v9600_v37 = vsel %vm814_vm12, %v3242_v22, %v6482_v46  ;;  %v3248_v3 = vsel %vm810_vm10, %v12052_v61, %v6473_v50  ;;  %v6428_v39 = vunpack.i.h.bf16 %v9308_v31  ;;  %v12054_v50 = vld [vmem:[#allocation32_spill] sm:$0xff]  ;;  %v12055_v31 = vld [vmem:[#allocation51_spill] sm:$0xff] }
 0x290   : > { %v2552_v7 = vsel %vm804_vm7, %v2551_v59, %v6423_v20  ;;  %v6433_v21 = vunpack.i.h.bf16 %v12050_v2  ;;  %v3249_v51 = vsel %vm812_vm11, %v3248_v3, %v6478_v23  ;;  %v6438_v30 = vunpack.i.h.bf16 %v12051_v42 }
 0x291   : > { %v6447_v15 = vunpack.i.l.bf16 %v12053_v4  ;;  %v9611_v16 = vsel %vm814_vm12, %v3249_v51, %v6483_v44  ;;  %v2546_v46 = vsel %vm806_vm8, %v2545_v10, %v6427_v32  ;;  %v1159_v22 = vsel %vm802_vm6, %v976_v58, %v6312_v45  ;;  %v12056_v44 = vld [vmem:[#allocation40_spill] sm:$0xff]  ;;  %v12057_v10 = vld [vmem:[#allocation38_spill] sm:$0xff] }
 0x292   : > { %v6442_v24 = vunpack.i.l.bf16 %v12055_v31  ;;  %v2547_v20 = vsel %vm808_vm9, %v2546_v46, %v6432_v27  ;;  %v6448_v23 = vunpack.i.h.bf16 %v12053_v4  ;;  %v2553_v42 = vsel %vm806_vm8, %v2552_v7, %v6428_v39  ;;  %v12058_v39 = vld [vmem:[#allocation37_spill] sm:$0xff] }
 0x293   : > { %v2548_v59 = vsel %vm810_vm10, %v2547_v20, %v6437_v43  ;;  %v6318_v3 = vunpack.i.h.bf16 %v12056_v44  ;;  %v6443_v32 = vunpack.i.h.bf16 %v12055_v31  ;;  %v2554_v58 = vsel %vm808_vm9, %v2553_v42, %v6433_v21  ;;  %v12060_v42 = vld [vmem:[#allocation6_spill] sm:$0xff]  ;;  %v12066_v20 = vld [vmem:[#allocation41_spill] sm:$0xff] }
 0x294   : > { %v2549_v45 = vsel %vm812_vm11, %v2548_v59, %v6442_v24  ;;  %v6317_v27 = vunpack.i.l.bf16 %v12056_v44  ;;  %v2555_v4 = vsel %vm810_vm10, %v2554_v58, %v6438_v30  ;;  %v12059_v24 = vld [vmem:[#allocation17_spill] sm:$0xff]  ;;  %v6322_v51 = vunpack.i.l.bf16 %v12060_v42  ;;  %v12061_v30 = vld [vmem:[#allocation8_spill] sm:$0xff]  ;;  %v12062_v58 = vld [vmem:[#allocation27_spill] sm:$0xff] }
 0x295   : > { %v9629_v46 = vsel %vm814_vm12, %v2549_v45, %v6447_v15  ;;  %v2556_v31 = vsel %vm812_vm11, %v2555_v4, %v6443_v32  ;;  %v6348_v59 = vunpack.i.h.bf16 %v12059_v24  ;;  %v6347_v21 = vunpack.i.l.bf16 %v12059_v24  ;;  %v12063_v43 = vld [vmem:[#allocation14_spill] sm:$0xff] }
 0x296   : > { %v9640_v44 = vsel %vm814_vm12, %v2556_v31, %v6448_v23  ;;  %v1167_v15 = vsel %vm804_vm7, %v1166_v54, %v6318_v3  ;;  %v1318_v45 = vsel %vm522_vm4, %v1317_v6, %v12061_v30  ;;  %v1430_v32 = vsel %vm522_vm4, %v1429_v48, %v12062_v58 }
 0x297   : > { %v6323_v4 = vunpack.i.h.bf16 %v12060_v42  ;;  %v1160_v24 = vsel %vm804_vm7, %v1159_v22, %v6317_v27  ;;  %v6352_v7 = vunpack.i.l.bf16 %v12063_v43  ;;  %v3395_v23 = vrot.slane %v9431_v17, 4  ;;  %v12065_v17 = vld [vmem:[#allocation2_spill] sm:$0xff] }
 0x298   : > { %v3507_v54 = vrot.slane %v9435_v26, 4  ;;  %v6353_v6 = vunpack.i.h.bf16 %v12063_v43  ;;  %v1508_v48 = vsel %vm802_vm6, %v1430_v32, %v6348_v59  ;;  %v1501_v42 = vsel %vm802_vm6, %v1318_v45, %v6347_v21 }
 0x299   : > { %v9662_v27 = vsel %vm806_vm8, %v1160_v24, %v6322_v51  ;;  %v9667_v49 = vsel %vm806_vm8, %v1167_v15, %v6323_v4  ;;  %v3396_v51 = vsel %vm522_vm4, %v3395_v23, %v9420_v47  ;;  %v3646_v4 = vld [vmem:[%s11691_s4] sm:$0xf]  ;;  %v12067_v24 = vld [vmem:[#allocation45_spill] sm:$0xff] }
 0x29a   : > { %v3508_v21 = vsel %vm522_vm4, %v3507_v54, %v9424_v8  ;;  %v9677_v45 = vsel %vm804_vm7, %v1508_v48, %v6353_v6  ;;  %v6357_v8 = vunpack.i.l.bf16 %v12067_v24  ;;  %v12068_v54 = vld [vmem:[#allocation28_spill] sm:$0xff] }
 0x29b   : > { %v2019_v47 = vsel %vm522_vm4, %v2018_v36, %v12068_v54  ;;  %v6388_v36 = vunpack.i.h.bf16 %v12072_v55 }
 0x2cf   : > { %v6531_v3 = vpop.permute.xlu2 %6530 }
 0x2d0   : > { %v6533_v23 = vunpack.i.h.bf16 %v6531_v3  ;;  %v6532_v6 = vunpack.i.l.bf16 %v6531_v3  ;;  %v6387_v3 = vunpack.i.l.bf16 %v12072_v55 }
 0x2e5   : > { %v6536_v13 = vpop.permute.xlu0 %6535 }
 0x2e6   : > { %v6538_v48 = vunpack.i.h.bf16 %v6536_v13  ;;  %v6537_v58 = vunpack.i.l.bf16 %v6536_v13 }
 0x2e9   : > { %v6526_v31 = vpop.permute.xlu1 %6525 }
 0x2ea   : > { %v6528_v30 = vunpack.i.h.bf16 %v6526_v31  ;;  %v6527_v62 = vunpack.i.l.bf16 %v6526_v31  ;;  %v1502_v31 = vsel %vm804_vm7, %v1501_v42, %v6352_v7  ;;  %v3638_v7 = vld [vmem:[%s11690_s3] sm:$0xf]  ;;  %v12070_v42 = vld [vmem:[#allocation29_spill] sm:$0xff] }
 0x2ec   : > { %v3586_v32 = vsel %vm802_vm6, %v3508_v21, %v6528_v30  ;;  %v3579_v15 = vsel %vm802_vm6, %v3396_v51, %v6527_v62  ;;  %v6961_v30 = vmov 0   ;;  %v12069_v62 = vld [vmem:[#allocation42_spill] sm:$0xff]  ;;  %v2131_v21 = vsel %vm522_vm4, %v2130_v33, %v12070_v42  ;;  %v12071_v51 = vld [vmem:[#allocation44_spill] sm:$0xff]  ;;  %v12073_v33 = vld [vmem:[#allocation43_spill] sm:$0xff] }
 0x2ed   : > { %6560 = vset.pattern.permute.xlu0 %v6961_v30  ;;  %6559 = vset.pattern.permute.xlu2 %v6961_v30  ;;  %v6383_v43 = vunpack.i.h.bf16 %v12071_v51  ;;  %v6382_v59 = vunpack.i.l.bf16 %v12071_v51  ;;  %v3587_v54 = vsel %vm804_vm7, %v3586_v32, %v6533_v23  ;;  %v3580_v30 = vsel %vm804_vm7, %v3579_v15, %v6532_v6  ;;  %v6546_v51 = vpop.permute.xlu2 %6545 }
 0x2ee   : > { %3649 = vperm.xlu0 %6560, %v3646_v4   ;;  %3641 = vperm.xlu2 %6559, %v3638_v7   ;;  %v6393_v42 = vunpack.i.h.bf16 %v12073_v33  ;;  %v6358_v4 = vunpack.i.h.bf16 %v12067_v24  ;;  %v9707_v7 = vsel %vm806_vm8, %v1502_v31, %v6357_v8  ;;  %v6392_v55 = vunpack.i.l.bf16 %v12073_v33  ;;  %v12074_v8 = vld [vmem:[#allocation47_spill] sm:$0xff] }
 0x2ef   : > { %v2202_v32 = vsel %vm802_vm6, %v2019_v47, %v6382_v59  ;;  %v3581_v15 = vsel %vm806_vm8, %v3580_v30, %v6537_v58  ;;  %v3588_v13 = vsel %vm806_vm8, %v3587_v54, %v6538_v48  ;;  %v6398_v61 = vunpack.i.h.bf16 %v12074_v8  ;;  %v12075_v58 = vld [vmem:[#allocation52_spill] sm:$0xff] }
 0x2f0   : > { %v2203_v23 = vsel %vm804_vm7, %v2202_v32, %v6387_v3  ;;  %v6548_v18 = vunpack.i.h.bf16 %v6546_v51  ;;  %v6547_v33 = vunpack.i.l.bf16 %v6546_v51  ;;  %v6551_v2 = vpop.permute.xlu0 %6550  ;;  %v6397_v59 = vunpack.i.l.bf16 %v12074_v8 }
 0x2f1   : > { %v6541_v22 = vpop.permute.xlu1 %6540  ;;  %v6403_v47 = vunpack.i.h.bf16 %v12075_v58  ;;  %v6402_v48 = vunpack.i.l.bf16 %v12075_v58  ;;  %v12077_v54 = vunpack.i.h.bf16 %v12040_v38  ;;  %v6552_v51 = vunpack.i.l.bf16 %v6551_v2 }
 0x2f2   : > { %v6543_v12 = vunpack.i.h.bf16 %v6541_v22  ;;  %v6542_v26 = vunpack.i.l.bf16 %v6541_v22  ;;  %v2209_v22 = vsel %vm802_vm6, %v2131_v21, %v6383_v43  ;;  %v12081_v8 = vunpack.i.h.bf16 %v8632_v29 }
 0x2f3   : > { %v2210_v31 = vsel %vm804_vm7, %v2209_v22, %v6388_v36  ;;  %v12076_v36 = vunpack.i.l.bf16 %v12054_v50  ;;  %v2904_v30 = vsel %vm806_vm8, %v9572_v53, %v12077_v54  ;;  %v1510_v58 = vsel %vm806_vm8, %v9677_v45, %v6358_v4 }
 0x2f4   : > { %v3582_v6 = vsel %vm808_vm9, %v3581_v15, %v6542_v26  ;;  %v3589_v24 = vsel %vm808_vm9, %v3588_v13, %v6543_v12  ;;  %v2897_v26 = vsel %vm806_vm8, %v9569_v41, %v6247_v52  ;;  %v6553_v12 = vunpack.i.h.bf16 %v6551_v2 }
 0x2f5   : > { %v3583_v43 = vsel %vm810_vm10, %v3582_v6, %v6547_v33  ;;  %v3590_v21 = vsel %vm810_vm10, %v3589_v24, %v6548_v18  ;;  %v2898_v3 = vsel %vm808_vm9, %v2897_v26, %v12076_v36  ;;  %v12078_v15 = vunpack.i.h.bf16 %v12054_v50  ;;  %v12083_v26 = vld [vmem:[#allocation48_spill] sm:$0xff] }
 0x2f6   : > { %v2204_v41 = vsel %vm806_vm8, %v2203_v23, %v6392_v55  ;;  %v2211_v22 = vsel %vm806_vm8, %v2210_v31, %v6393_v42  ;;  %v12079_v6 = vunpack.i.l.bf16 %v8632_v29  ;;  %v3584_v53 = vsel %vm812_vm11, %v3583_v43, %v6552_v51 }
 0x2f7   : > { %v2905_v52 = vsel %vm808_vm9, %v2904_v30, %v12078_v15  ;;  %v3591_v2 = vsel %vm812_vm11, %v3590_v21, %v6553_v12  ;;  %v12080_v24 = vunpack.i.l.bf16 %v8869_v28  ;;  %v1869_v55 = vsel %vm806_vm8, %v9542_v25, %v12081_v8  ;;  %v12084_v21 = vld [vmem:[#allocation46_spill] sm:$0xff] }
 0x2f8   : > { %v1862_v38 = vsel %vm806_vm8, %v9549_v14, %v12079_v6  ;;  %v12082_v31 = vunpack.i.h.bf16 %v8869_v28  ;;  %v2205_v33 = vsel %vm808_vm9, %v2204_v41, %v6397_v59  ;;  %v6373_v43 = vunpack.i.h.bf16 %v12083_v26 }
 0x2f9   : > { %v6556_v32 = vpop.permute.xlu1 %6555  ;;  %v2899_v50 = vsel %vm810_vm10, %v2898_v3, %v12080_v24  ;;  %v2206_v29 = vsel %vm810_vm10, %v2205_v33, %v6402_v48  ;;  %v2212_v25 = vsel %vm808_vm9, %v2211_v22, %v6398_v61  ;;  %v6407_v36 = vunpack.i.l.bf16 %v12084_v21 }
 0x2fa   : > { %v6558_v13 = vunpack.i.h.bf16 %v6556_v32  ;;  %v6557_v18 = vunpack.i.l.bf16 %v6556_v32  ;;  %v2906_v14 = vsel %vm810_vm10, %v2905_v52, %v12082_v31  ;;  %v2213_v3 = vsel %vm810_vm10, %v2212_v25, %v6403_v47 }
 0x2fb   : > { %v12085_v28 = vunpack.i.l.bf16 %v8818_v60  ;;  %v12086_v59 = vunpack.i.h.bf16 %v8818_v60  ;;  %v6408_v4 = vunpack.i.h.bf16 %v12084_v21  ;;  %v12087_v61 = vunpack.i.l.bf16 %v12041_v1 }
 0x2fc   : > { %v3585_v42 = vsel %vm814_vm12, %v3584_v53, %v6557_v18  ;;  %v3592_v23 = vsel %vm814_vm12, %v3591_v2, %v6558_v13  ;;  %v12088_v47 = vunpack.i.h.bf16 %v12041_v1  ;;  %v12089_v12 = vunpack.i.l.bf16 %v8857_v9 }
 0x2fd   : > { %3605 = vmatpush.msra.mxu0 %v3585_v42  ;;  %3625 = vmatpush.msra.mxu1 %v3592_v23  ;;  %v1863_v54 = vsel %vm808_vm9, %v1862_v38, %v12085_v28  ;;  %v1870_v45 = vsel %vm808_vm9, %v1869_v55, %v12086_v59  ;;  %v2900_v48 = vsel %vm812_vm11, %v2899_v50, %v12087_v61  ;;  %v12090_v51 = vunpack.i.l.bf16 %v12058_v39  ;;  %v12095_v38 = vld [vmem:[#allocation49_spill] sm:$0xff]  ;;  %v12098_v55 = vld [vmem:[#allocation12_spill] sm:$0xff] }
 0x2fe   : > { %v2907_v30 = vsel %vm812_vm11, %v2906_v14, %v12088_v47  ;;  %v1864_v60 = vsel %vm810_vm10, %v1863_v54, %v12089_v12  ;;  %v2207_v15 = vsel %vm812_vm11, %v2206_v29, %v6407_v36  ;;  %v12092_v52 = vunpack.i.h.bf16 %v8857_v9 }
 0x2ff   : > { %3606 = vmatpush.msra.mxu0 %v9600_v37  ;;  %3626 = vmatpush.msra.mxu1 %v9611_v16  ;;  %v2901_v32 = vsel %vm814_vm12, %v2900_v48, %v12090_v51  ;;  %v12091_v37 = vunpack.i.h.bf16 %v12058_v39  ;;  %v6372_v41 = vunpack.i.l.bf16 %v12083_v26  ;;  %v2214_v13 = vsel %vm812_vm11, %v2213_v3, %v6408_v4 }
 0x300   : > { %v1871_v1 = vsel %vm810_vm10, %v1870_v45, %v12092_v52  ;;  %v12093_v18 = vunpack.i.l.bf16 %v12065_v17  ;;  %v12094_v39 = vunpack.i.h.bf16 %v12065_v17  ;;  %v6413_v53 = vunpack.i.h.bf16 %v12095_v38 }
 0x301   : > { %v2908_v16 = vsel %vm814_vm12, %v2907_v30, %v12091_v37  ;;  %3607 = vmatpush.msra.mxu0 %v2901_v32  ;;  %v6412_v9 = vunpack.i.l.bf16 %v12095_v38  ;;  %v12096_v2 = vunpack.i.l.bf16 %v8767_v57  ;;  %v12097_v50 = vunpack.i.l.bf16 %v8476_v35 }
 0x302   : > { %3627 = vmatpush.msra.mxu1 %v2908_v16  ;;  %v1504_v22 = vsel %vm808_vm9, %v9707_v7, %v12093_v18  ;;  %v1511_v6 = vsel %vm808_vm9, %v1510_v58, %v12094_v39  ;;  %v6378_v42 = vunpack.i.h.bf16 %v12098_v55  ;;  %v12099_v17 = vunpack.i.h.bf16 %v8767_v57 }
 0x303   : > { %v1865_v24 = vsel %vm812_vm11, %v1864_v60, %v12096_v2  ;;  %v809_v8 = vsel %vm808_vm9, %v9518_v19, %v12097_v50  ;;  %3608 = vmatpush.msra.mxu0 %v9629_v46  ;;  %v12100_v23 = vunpack.i.l.bf16 %v12057_v10  ;;  %v12101_v14 = vunpack.i.h.bf16 %v12057_v10 }
 0x304   : > { %3628 = vmatpush.msra.mxu1 %v9640_v44  ;;  %v1872_v7 = vsel %vm812_vm11, %v1871_v1, %v12099_v17  ;;  %v2208_v33 = vsel %vm814_vm12, %v2207_v15, %v6412_v9  ;;  %v2215_v46 = vsel %vm814_vm12, %v2214_v13, %v6413_v53  ;;  %v12102_v44 = vunpack.i.l.bf16 %v12069_v62  ;;  %v12116_v15 = vld [vmem:[#allocation11_spill] sm:$0xff]  ;;  %v3593_v13 = vld [vmem:[%s11689_s2] sm:$0xf] }
 0x305   : > { %v1162_v31 = vsel %vm808_vm9, %v9662_v27, %v12100_v23  ;;  %v1169_v19 = vsel %vm808_vm9, %v9667_v49, %v12101_v14  ;;  %v12103_v58 = vunpack.i.h.bf16 %v12069_v62  ;;  %v6377_v29 = vunpack.i.l.bf16 %v12098_v55  ;;  %3609 = vmatpush.msra.mxu0 %v2208_v33 }
 0x306   : > { %v1505_v57 = vsel %vm810_vm10, %v1504_v22, %v12102_v44  ;;  %3629 = vmatpush.msra.mxu1 %v2215_v46  ;;  %v12104_v27 = vunpack.i.h.bf16 %v8476_v35  ;;  %v12105_v21 = vunpack.i.l.bf16 %v8863_v40  ;;  %v12106_v62 = vunpack.i.h.bf16 %v8863_v40  ;;  %v12109_v35 = vld [vmem:[#allocation39_spill] sm:$0xff] }
 0x307   : > { %v1512_v26 = vsel %vm810_vm10, %v1511_v6, %v12103_v58  ;;  %v1506_v10 = vsel %vm812_vm11, %v1505_v57, %v6372_v41  ;;  %v12107_v28 = vunpack.i.l.bf16 %v12064_v11  ;;  %v12108_v59 = vunpack.i.h.bf16 %v12064_v11 }
 0x308   : > { %v1513_v49 = vsel %vm812_vm11, %v1512_v26, %v6373_v43  ;;  %v819_v25 = vsel %vm808_vm9, %v9523_v63, %v12104_v27  ;;  %v1866_v36 = vsel %vm814_vm12, %v1865_v24, %v12105_v21  ;;  %v1873_v3 = vsel %vm814_vm12, %v1872_v7, %v12106_v62 }
 0x309   : > { %v1163_v54 = vsel %vm810_vm10, %v1162_v31, %v12107_v28  ;;  %v1170_v43 = vsel %vm810_vm10, %v1169_v19, %v12108_v59  ;;  %v6343_v45 = vunpack.i.h.bf16 %v12109_v35  ;;  %v6342_v63 = vunpack.i.l.bf16 %v12109_v35  ;;  %3610 = vmatpush.msra.mxu0 %v1866_v36  ;;  %3630 = vmatpush.msra.mxu1 %v1873_v3 }
 0x30a   : > { %v12110_v4 = vunpack.i.l.bf16 %v12066_v20  ;;  %v12111_v61 = vunpack.i.h.bf16 %v12066_v20  ;;  %v1507_v47 = vsel %vm814_vm12, %v1506_v10, %v6377_v29  ;;  %v1514_v11 = vsel %vm814_vm12, %v1513_v49, %v6378_v42 }
 0x30b   : > { %v12112_v30 = vunpack.i.l.bf16 %v8668_v34  ;;  %v12113_v60 = vunpack.i.h.bf16 %v8668_v34  ;;  %3611 = vmatpush.msra.mxu0 %v1507_v47  ;;  %3631 = vmatpush.msra.mxu1 %v1514_v11  ;;  %v12114_v32 = vunpack.i.l.bf16 %v8758_v56  ;;  %v12115_v37 = vunpack.i.h.bf16 %v8758_v56 }
 0x30c   : > { %v1164_v40 = vsel %vm812_vm11, %v1163_v54, %v12110_v4  ;;  %v1171_v48 = vsel %vm812_vm11, %v1170_v43, %v12111_v61  ;;  %v6188_v52 = vunpack.i.h.bf16 %v12116_v15  ;;  %v6187_v1 = vunpack.i.l.bf16 %v12116_v15 }
 0x30d   : > { %v811_v12 = vsel %vm810_vm10, %v809_v8, %v12112_v30  ;;  %v820_v51 = vsel %vm810_vm10, %v819_v25, %v12113_v60  ;;  %v1165_v41 = vsel %vm814_vm12, %v1164_v40, %v6342_v63  ;;  %v1172_v34 = vsel %vm814_vm12, %v1171_v48, %v6343_v45 }
 0x30e   : > { %v813_v20 = vsel %vm812_vm11, %v811_v12, %v12114_v32  ;;  %v821_v16 = vsel %vm812_vm11, %v820_v51, %v12115_v37  ;;  %3612 = vmatpush.msra.mxu0 %v1165_v41  ;;  %3632 = vmatpush.msra.mxu1 %v1172_v34 }
 0x30f   : > { %v815_v18 = vsel %vm814_vm12, %v813_v20, %v6187_v1  ;;  %v822_v56 = vsel %vm814_vm12, %v821_v16, %v6188_v52 }
 0x310   : > { %3613 = vmatpush.msra.mxu0 %v815_v18  ;;  %3633 = vmatpush.msra.mxu1 %v822_v56 }
 0x311   : > { %5932 = vmatmul.msk.f32.vlgmr.msra.gmra.mxu0 %vm3594_vm13, %v3593_v13  ;;  %5933 = vmatmul.msk.f32.vlgmr.msra.gmra.mxu1 %vm3594_vm13, %v3593_v13 }
 0x348   : > { %v3642_v22 = vpop.permute.xlu2 %3641 }
 0x360   : > { %v3650_v6 = vpop.permute.xlu0 %3649 }
 0x38e   : > { %v3615_v39 = vpop.f32.mrf.mxu0  ;;  %v3635_v53 = vpop.f32.mrf.mxu1 }
 0x38f   : > { %v3644_v38 = vmul.f32 %v3642_v22, %v3615_v39  ;;  %v3645_v2 = vmul.f32 %v3642_v22, %v3635_v53 }
 0x391   : > { %v3652_v9 = vadd.f32 %v3650_v6, %v3644_v38  ;;  %v3653_v50 = vadd.f32 %v3650_v6, %v3645_v2 }
 0x393   : > { %v3654_v24 = vmax.f32 %v3652_v9, 0.0  ;;  %v3655_v8 = vmax.f32 %v3653_v50, 0.0 }
 0x395   : > { %3669 = vrot.lane.b32.xlu0 %v3654_v24, %s6959_s22  ;;  %3660 = vrot.lane.b32.xlu2 %v3654_v24, %s6960_s23 }
 0x396   : > { %3657 = vrot.lane.b32.xlu1 %v3654_v24, %s6957_s20 }
 0x39d   : > { %3666 = vrot.lane.b32.xlu2 %v3654_v24, %s6955_s18  ;;  %3679 = vrot.lane.b32.xlu0 %v3655_v8, %s6957_s20 }
 0x39e   : > { %3663 = vrot.lane.b32.xlu1 %v3654_v24, %s6958_s21 }
 0x3a5   : > { %3675 = vrot.lane.b32.xlu2 %v3654_v24, %s6954_s17  ;;  %3688 = vrot.lane.b32.xlu0 %v3655_v8, %s6955_s18 }
 0x3a6   : > { %3672 = vrot.lane.b32.xlu1 %v3654_v24, %s6956_s19 }
 0x3ad   : > { %3685 = vrot.lane.b32.xlu2 %v3655_v8, %s6958_s21  ;;  %3697 = vrot.lane.b32.xlu0 %v3655_v8, %s6954_s17 }
 0x3ae   : > { %3682 = vrot.lane.b32.xlu1 %v3655_v8, %s6960_s23 }
 0x3b5   : > { %3694 = vrot.lane.b32.xlu2 %v3655_v8, %s6956_s19 }
 0x3b6   : > { %3691 = vrot.lane.b32.xlu1 %v3655_v8, %s6959_s22 }
 0x3ef   : > { %v3661_v55 = vpop.permute.xlu2 %3660 }
 0x3f0   : > { %v3700_v31 = vrot.slane %v3661_v55, 4 }
 0x3f2   : > { %v3701_v46 = vsel %vm522_vm4, %v3700_v31, %v3654_v24 }
 0x3f3   : > { %v3705_v10 = vperm.slane %v3701_v46, %v7065_v5 }
 0x3f5   : > { %v3726_v2 = vrot.slane %v3705_v10, 4 }
 0x3f7   : > { %v3667_v42 = vpop.permute.xlu2 %3666 }
 0x3ff   : > { %v3676_v23 = vpop.permute.xlu2 %3675 }
 0x400   : > { %v3718_v44 = vrot.slane %v3676_v23, 4 }
 0x407   : > { %v3670_v17 = vpop.permute.xlu0 %3669  ;;  %v3686_v58 = vpop.permute.xlu2 %3685 }
 0x408   : > { %v3658_v7 = vpop.permute.xlu1 %3657  ;;  %v3719_v29 = vsel %vm522_vm4, %v3718_v44, %v3670_v17  ;;  %v3762_v43 = vrot.slane %v3686_v58, 4 }
 0x409   : > { %v3723_v27 = vperm.slane %v3719_v29, %v7065_v5 }
 0x40b   : > { %v3736_v54 = vrot.slane %v3723_v27, 4 }
 0x40f   : > { %v3680_v19 = vpop.permute.xlu0 %3679  ;;  %v3695_v35 = vpop.permute.xlu2 %3694 }
 0x410   : > { %v3664_v14 = vpop.permute.xlu1 %3663  ;;  %v3763_v63 = vsel %vm522_vm4, %v3762_v43, %v3680_v19  ;;  %v3768_v48 = vrot.slane %v3695_v35, 4 }
 0x411   : > { %v3706_v33 = vrot.slane %v3664_v14, 4  ;;  %v3767_v12 = vperm.slane %v3763_v63, %v7065_v5 }
 0x413   : > { %v3707_v57 = vsel %vm522_vm4, %v3706_v33, %v3658_v7  ;;  %v3780_v16 = vrot.slane %v3767_v12, 4 }
 0x414   : > { %v3711_v26 = vperm.slane %v3707_v57, %v7065_v5 }
 0x416   : > { %v3724_v49 = vrot.slane %v3711_v26, 4  ;;  %v3727_v17 = vsel %vm522_vm4, %v3711_v26, %v3726_v2 }
 0x417   : > { %v3689_v62 = vpop.permute.xlu0 %3688  ;;  %v3735_v33 = vperm.slane %v3727_v17, %v7470_v0 }
 0x418   : > { %v3673_v25 = vpop.permute.xlu1 %3672  ;;  %v3725_v21 = vsel %vm522_vm4, %v3724_v49, %v3705_v10  ;;  %v3769_v60 = vsel %vm522_vm4, %v3768_v48, %v3689_v62 }
 0x419   : > { %v3712_v36 = vrot.slane %v3673_v25, 4  ;;  %v3731_v28 = vperm.slane %v3725_v21, %v7470_v0  ;;  %v3773_v15 = vperm.slane %v3769_v60, %v7065_v5  ;;  %v3754_v44 = vrot.slane %v3735_v33, 4 }
 0x41b   : > { %v3713_v3 = vsel %vm522_vm4, %v3712_v36, %v3667_v42  ;;  %v3750_v40 = vrot.slane %v3731_v28, 4  ;;  %v3794_v18 = vrot.slane %v3773_v15, 4 }
 0x41c   : > { %v3717_v59 = vperm.slane %v3713_v3, %v7065_v5 }
 0x41e   : > { %v3737_v45 = vsel %vm522_vm4, %v3736_v54, %v3717_v59  ;;  %v3738_v39 = vrot.slane %v3717_v59, 4 }
 0x41f   : > { %v3743_v4 = vperm.slane %v3737_v45, %v7470_v0  ;;  %v3698_v37 = vpop.permute.xlu0 %3697 }
 0x420   : > { %v3683_v61 = vpop.permute.xlu1 %3682  ;;  %v3774_v52 = vrot.slane %v3698_v37, 4  ;;  %v3739_v7 = vsel %vm522_vm4, %v3723_v27, %v3738_v39 }
 0x421   : > { %v3756_v47 = vrot.slane %v3683_v61, 4  ;;  %v3751_v11 = vsel %vm522_vm4, %v3743_v4, %v3750_v40  ;;  %v3748_v30 = vrot.slane %v3743_v4, 4  ;;  %v3747_v46 = vperm.slane %v3739_v7, %v7470_v0 }
 0x422   : > { %3824 = vrot.lane.b32.xlu0 %v3751_v11, %s6949_s14 }
 0x423   : > { %v3757_v51 = vsel %vm522_vm4, %v3756_v47, %v3655_v8  ;;  %v3749_v32 = vsel %vm522_vm4, %v3748_v30, %v3731_v28  ;;  %v3752_v57 = vrot.slane %v3747_v46, 4  ;;  %v3755_v58 = vsel %vm522_vm4, %v3747_v46, %v3754_v44 }
 0x424   : > { %v3761_v20 = vperm.slane %v3757_v51, %v7065_v5  ;;  %3820 = vrot.lane.b32.xlu1 %v3749_v32, %s6949_s14 }
 0x425   : > { %v3753_v26 = vsel %vm522_vm4, %v3752_v57, %v3735_v33 }
 0x426   : > { %v3782_v1 = vrot.slane %v3761_v20, 4  ;;  %v3781_v34 = vsel %vm522_vm4, %v3780_v16, %v3761_v20 }
 0x427   : > { %v3787_v22 = vperm.slane %v3781_v34, %v7470_v0 }
 0x428   : > { %v3692_v41 = vpop.permute.xlu1 %3691  ;;  %v3783_v53 = vsel %vm522_vm4, %v3767_v12, %v3782_v1 }
 0x429   : > { %v3775_v13 = vsel %vm522_vm4, %v3774_v52, %v3692_v41  ;;  %v3791_v50 = vperm.slane %v3783_v53, %v7470_v0  ;;  %v3806_v42 = vrot.slane %v3787_v22, 4 }
 0x42a   : > { %v3779_v56 = vperm.slane %v3775_v13, %v7065_v5 }
 0x42b   : > { %v3810_v29 = vrot.slane %v3791_v50, 4 }
 0x42c   : > { %v3792_v6 = vrot.slane %v3779_v56, 4  ;;  %v3795_v38 = vsel %vm522_vm4, %v3779_v56, %v3794_v18 }
 0x42d   : > { %v3803_v9 = vperm.slane %v3795_v38, %v7470_v0 }
 0x42e   : > { %v3793_v24 = vsel %vm522_vm4, %v3792_v6, %v3773_v15 }
 0x42f   : > { %v3808_v8 = vrot.slane %v3803_v9, 4  ;;  %v3799_v55 = vperm.slane %v3793_v24, %v7470_v0  ;;  %v3811_v10 = vsel %vm522_vm4, %v3803_v9, %v3810_v29 }
 0x431   : > { %v3809_v23 = vsel %vm522_vm4, %v3808_v8, %v3791_v50  ;;  %v3807_v31 = vsel %vm522_vm4, %v3799_v55, %v3806_v42  ;;  %v3804_v14 = vrot.slane %v3799_v55, 4 }
 0x432   : > { %3830 = vrot.lane.b32.xlu0 %v3809_v23, %s6949_s14  ;;  %3826 = vrot.lane.b32.xlu1 %v3807_v31, %s6949_s14 }
 0x433   : > { %v3805_v19 = vsel %vm522_vm4, %v3804_v14, %v3787_v22 }
 0x434   : > { %3822 = vrot.lane.b32.xlu2 %v3805_v19, %s6949_s14 }
 0x43a   : > { %3832 = vrot.lane.b32.xlu1 %v3755_v58, %s6949_s14 }
 0x43c   : > { %3828 = vrot.lane.b32.xlu2 %v3753_v26, %s6949_s14 }
 0x444   : > { %3834 = vrot.lane.b32.xlu2 %v3811_v10, %s6949_s14 }
 0x48e   : > { %v3823_v49 = vpop.permute.xlu2 %3822 }
 0x48f   : > { %v3845_v27 = vsel %vm406_vm0, 0.0, %v3823_v49 }
 0x490   : > { %v9948_v25 = vsel %vm423_vm1, %v3845_v27, 0.0 }
 0x491   : > { %v3869_v59 = vrot.slane %v9948_v25, 7 }
 0x494   : > { %v3825_v4 = vpop.permute.xlu0 %3824 }
 0x495   : > { %v3846_v11 = vsel %vm406_vm0, 0.0, %v3825_v4 }
 0x496   : > { %v3821_v21 = vpop.permute.xlu1 %3820  ;;  %v3829_v36 = vpop.permute.xlu2 %3828  ;;  %v3854_v20 = vsel %vm423_vm1, %v3846_v11, 0.0 }
 0x497   : > { %v3844_v62 = vsel %vm406_vm0, 0.0, %v3821_v21  ;;  %v3848_v3 = vsel %vm406_vm0, 0.0, %v3829_v36  ;;  %v3871_v41 = vrot.slane %v3854_v20, 7 }
 0x498   : > { %v3852_v28 = vsel %vm423_vm1, %v3844_v62, 0.0  ;;  %v3856_v54 = vsel %vm423_vm1, %v3848_v3, 0.0 }
 0x499   : > { %v3868_v43 = vrot.slane %v3852_v28, 7  ;;  %v3874_v35 = vrot.slane %v3856_v54, 7  ;;  %v9994_v6 = vsel %vm456_vm2, 0.0, %v3871_v41  ;;  %v10050_v28 = vsel %vm456_vm2, %v3869_v59, 0.0 }
 0x49a   : > { %v4505_v25 = vrot.slane %v10050_v28, 1 }
 0x49b   : > { %v9958_v45 = vsel %vm456_vm2, %v3868_v43, %v3869_v59  ;;  %v9961_v63 = vsel %vm456_vm2, 0.0, %v3868_v43  ;;  %v9965_v61 = vsel %vm456_vm2, 0.0, %v3874_v35  ;;  %v4507_v43 = vrot.slane %v9994_v6, 1 }
 0x49c   : > { %v3902_v40 = vrot.slane %v9961_v63, 4  ;;  %v6561_v47 = vpack.i.bf16 %v9958_v45, %v9961_v63  ;;  %v3958_v34 = vrot.slane %v9958_v45, 4  ;;  %v4512_v10 = vrot.slane %v9965_v61, 1 }
 0x49d   : > { %v4503_v4 = vrot.slane %v9958_v45, 1 }
 0x49e   : > { %v9969_v48 = vsel %vm522_vm4, %v9965_v61, %v3902_v40  ;;  %6562 = vrot.lane.b32.xlu1 %v6561_v47, %s6951_s15  ;;  %v3835_v60 = vpop.permute.xlu2 %3834 }
 0x49f   : > { %v3851_v1 = vsel %vm406_vm0, 0.0, %v3835_v60 }
 0x4a0   : > { %v3859_v18 = vsel %vm423_vm1, %v3851_v1, 0.0 }
 0x4a1   : > { %v3878_v9 = vrot.slane %v3859_v18, 7 }
 0x4a3   : > { %v3899_v23 = vsel %vm456_vm2, %v3878_v9, 0.0 }
 0x4a4   : > { %v3827_v30 = vpop.permute.xlu1 %3826  ;;  %v3831_v12 = vpop.permute.xlu0 %3830  ;;  %v5142_v33 = vrot.slane %v3899_v23, 2  ;;  %v4520_v59 = vrot.slane %v3899_v23, 1 }
 0x4a5   : > { %v3847_v51 = vsel %vm406_vm0, 0.0, %v3827_v30  ;;  %v3849_v32 = vsel %vm406_vm0, 0.0, %v3831_v12  ;;  %v10072_v12 = vsel %vm1523_vm5, %v4503_v4, %v4505_v25 }
 0x4a6   : > { %v3855_v37 = vsel %vm423_vm1, %v3847_v51, 0.0  ;;  %v3857_v16 = vsel %vm423_vm1, %v3849_v32, 0.0  ;;  %v5124_v51 = vrot.slane %v9961_v63, 2  ;;  %v5125_v32 = vrot.slane %v9958_v45, 2 }
 0x4a7   : > { %v3872_v15 = vrot.slane %v3855_v37, 7  ;;  %v3875_v52 = vrot.slane %v3857_v16, 7  ;;  %v5134_v16 = vrot.slane %v9965_v61, 2 }
 0x4a9   : > { %v9983_v13 = vsel %vm456_vm2, %v3874_v35, %v3875_v52  ;;  %v9987_v56 = vsel %vm456_vm2, %v3871_v41, %v3872_v15  ;;  %v3897_v38 = vsel %vm456_vm2, %v3872_v15, 0.0  ;;  %v3898_v14 = vsel %vm456_vm2, %v3875_v52, 0.0 }
 0x4aa   : > { %v9991_v22 = vsel %vm522_vm4, %v9983_v13, %v3958_v34  ;;  %v6566_v24 = vpack.i.bf16 %v9987_v56, %v9994_v6  ;;  %v6571_v50 = vpack.i.bf16 %v9983_v13, %v9965_v61  ;;  %v5130_v55 = vrot.slane %v9987_v56, 2 }
 0x4ab   : > { %v5132_v42 = vrot.slane %v3897_v38, 2  ;;  %v4513_v44 = vrot.slane %v9983_v13, 1  ;;  %v4515_v57 = vrot.slane %v3898_v14, 1  ;;  %v4508_v62 = vrot.slane %v9987_v56, 1 }
 0x4ac   : > { %v3833_v39 = vpop.permute.xlu1 %3832  ;;  %6567 = vrot.lane.b32.xlu2 %v6566_v24, %s6951_s15  ;;  %6572 = vrot.lane.b32.xlu0 %v6571_v50, %s6951_s15  ;;  %v4510_v3 = vrot.slane %v3897_v38, 1  ;;  %v4502_v35 = vrot.slane %v9961_v63, 1  ;;  %v5135_v20 = vrot.slane %v9983_v13, 2  ;;  %v10095_v34 = vsel %vm2558_vm3, %v5124_v51, %v5125_v32 }
 0x4ad   : > { %v3850_v53 = vsel %vm406_vm0, 0.0, %v3833_v39  ;;  %v10016_v31 = vsel %vm2558_vm3, %v5130_v55, %v5132_v42  ;;  %v10041_v21 = vsel %vm1523_vm5, %v4513_v44, %v4515_v57  ;;  %v10044_v36 = vsel %vm1523_vm5, %v4512_v10, %v4513_v44 }
 0x4ae   : > { %v3858_v2 = vsel %vm423_vm1, %v3850_v53, 0.0  ;;  %v5222_v26 = vrot.slane %v10016_v31, 4  ;;  %v6611_v54 = vpack.i.bf16 %v10041_v21, %v10044_v36  ;;  %v10066_v11 = vsel %vm1523_vm5, %v4507_v43, %v4508_v62 }
 0x4af   : > { %v3877_v8 = vrot.slane %v3858_v2, 7  ;;  %v10069_v30 = vsel %vm1523_vm5, %v4502_v35, %v4503_v4  ;;  %v10098_v18 = vsel %vm2558_vm3, %v5134_v16, %v5135_v20  ;;  %v5137_v39 = vrot.slane %v3898_v14, 2 }
 0x4b0   : > { %v6601_v15 = vpack.i.bf16 %v10072_v12, %v10069_v30  ;;  %v5154_v38 = vrot.slane %v10095_v34, 4  ;;  %v5152_v53 = vrot.slane %v10098_v18, 4  ;;  %v3914_v14 = vrot.slane %v9994_v6, 4 }
 0x4b1   : > { %v10007_v17 = vsel %vm456_vm2, %v3877_v8, %v3878_v9  ;;  %v10010_v7 = vsel %vm456_vm2, 0.0, %v3877_v8  ;;  %v10117_v8 = vsel %vm2558_vm3, %v5135_v20, %v5137_v39  ;;  %v3970_v44 = vrot.slane %v9987_v56, 4 }
 0x4b2   : > { %v6576_v19 = vpack.i.bf16 %v10007_v17, %v10010_v7  ;;  %v5140_v46 = vrot.slane %v10007_v17, 2  ;;  %v4518_v40 = vrot.slane %v10007_v17, 1  ;;  %v4517_v1 = vrot.slane %v10010_v7, 1 }
 0x4b3   : > { %v5139_v41 = vrot.slane %v10010_v7, 2  ;;  %v3912_v10 = vrot.slane %v10010_v7, 4 }
 0x4b4   : > { %6577 = vrot.lane.b32.xlu1 %v6576_v19, %s6951_s15  ;;  %v10025_v58 = vsel %vm2558_vm3, %v5140_v46, %v5142_v33  ;;  %6592 = vrot.lane.b32.xlu2 %v6571_v50, %s6952_s16  ;;  %v10075_v60 = vsel %vm1523_vm5, %v4518_v40, %v4520_v59  ;;  %v10103_v9 = vsel %vm1523_vm5, %v4517_v1, %v4518_v40 }
 0x4b5   : > { %6582 = vrot.lane.b32.xlu0 %v6561_v47, %s6952_s16  ;;  %v5220_v29 = vrot.slane %v10025_v58, 4  ;;  %v10034_v49 = vsel %vm522_vm4, %v10025_v58, %v5222_v26  ;;  %v10063_v47 = vsel %vm1523_vm5, %v4508_v62, %v4510_v3  ;;  %v6621_v52 = vpack.i.bf16 %v10075_v60, %v10069_v30 }
 0x4b6   : > { %v6606_v37 = vpack.i.bf16 %v10063_v47, %v10066_v11  ;;  %v10106_v2 = vsel %vm2558_vm3, %v5139_v41, %v5140_v46  ;;  %v10114_v50 = vsel %vm522_vm4, %v10098_v18, %v5154_v38  ;;  %v6616_v42 = vpack.i.bf16 %v10075_v60, %v10103_v9 }
 0x4b7   : > { %v10038_v27 = vsel %vm522_vm4, %v5220_v29, %v10016_v31  ;;  %12117 = vst [vmem:[#allocation21_spill] sm:$0xff] %v10114_v50  ;;  %v6631_v23 = vpack.i.bf16 %v10106_v2, %v10117_v8  ;;  %v3915_v33 = vsel %vm522_vm4, %v10010_v7, %v3914_v14  ;;  %v5129_v46 = vrot.slane %v9994_v6, 2 }
 0x4b8   : > { %v3911_v26 = vperm.slane %v9969_v48, %v7065_v5  ;;  %v3956_v29 = vrot.slane %v9983_v13, 4  ;;  %v3923_v62 = vperm.slane %v3915_v33, %v7065_v5  ;;  %v3968_v3 = vrot.slane %v10007_v17, 4 }
 0x4b9   : > { %v5127_v48 = vrot.slane %v10050_v28, 2  ;;  %v10153_v13 = vsel %vm2558_vm3, %v5129_v46, %v5130_v55  ;;  %v3913_v43 = vsel %vm522_vm4, %v3912_v10, %v9994_v6  ;;  %v4530_v10 = vrot.slane %v10044_v36, 4 }
 0x4ba   : > { %v3957_v28 = vsel %vm522_vm4, %v3956_v29, %v9958_v45  ;;  %v3969_v55 = vsel %vm522_vm4, %v3968_v3, %v9987_v56  ;;  %v3936_v35 = vrot.slane %v3923_v62, 4  ;;  %v3919_v25 = vperm.slane %v3913_v43, %v7065_v5 }
 0x4bb   : > { %v3963_v6 = vperm.slane %v3957_v28, %v7065_v5  ;;  %v6641_v56 = vpack.i.bf16 %v10072_v12, %v10103_v9  ;;  %v10184_v1 = vsel %vm2558_vm3, %v5125_v32, %v5127_v48  ;;  %v4598_v28 = vrot.slane %v10075_v60, 4 }
 0x4bc   : > { %6587 = vrot.lane.b32.xlu1 %v6566_v24, %s6952_s16  ;;  %6612 = vrot.lane.b32.xlu2 %v6611_v54, %s6951_s15  ;;  %v10110_v24 = vsel %vm522_vm4, %v5152_v53, %v10095_v34  ;;  %v3971_v54 = vsel %vm522_vm4, %v10007_v17, %v3970_v44  ;;  %v6646_v53 = vpack.i.bf16 %v10153_v13, %v10184_v1 }
 0x4bd   : > { %6597 = vrot.lane.b32.xlu0 %v6576_v19, %s6952_s16  ;;  %v3900_v19 = vrot.slane %v9965_v61, 4  ;;  %v3967_v61 = vperm.slane %v9991_v22, %v7065_v5  ;;  %v3938_v22 = vrot.slane %v3911_v26, 4  ;;  %v3979_v17 = vperm.slane %v3971_v54, %v7065_v5 }
 0x4be   : > { %v3982_v38 = vrot.slane %v3963_v6, 4 }
 0x4bf   : > { %v3901_v57 = vsel %vm522_vm4, %v3900_v19, %v9961_v63  ;;  %v6626_v63 = vpack.i.bf16 %v10016_v31, %v10025_v58  ;;  %v3994_v7 = vrot.slane %v3967_v61, 4  ;;  %v3939_v4 = vsel %vm522_vm4, %v3923_v62, %v3938_v22 }
 0x4c0   : > { %v10170_v51 = vperm.slane %v3939_v4, %v7470_v0  ;;  %v6636_v22 = vpack.i.bf16 %v10041_v21, %v10063_v47 }
 0x4c1   : > { %v3995_v40 = vsel %vm522_vm4, %v3979_v17, %v3994_v7  ;;  %v4531_v7 = vsel %vm522_vm4, %v4530_v10, %v10069_v30 }
 0x4c2   : > { %v10173_v20 = vperm.slane %v3995_v40, %v7470_v0  ;;  %v10245_v4 = vperm.slane %v4531_v7, %v7065_v5 }
 0x4c4   : > { %6607 = vrot.lane.b32.xlu1 %v6606_v37, %s6951_s15  ;;  %6622 = vrot.lane.b32.xlu2 %v6621_v52, %s6952_s16  ;;  %v3975_v37 = vperm.slane %v3969_v55, %v7065_v5  ;;  %v3992_v52 = vrot.slane %v3979_v17, 4  ;;  %v6671_v41 = vpack.i.bf16 %v10173_v20, %v10170_v51  ;;  %v4542_v55 = vrot.slane %v10103_v9, 4 }
 0x4c5   : > { %6602 = vrot.lane.b32.xlu0 %v6601_v15, %s6951_s15  ;;  %v3937_v15 = vsel %vm522_vm4, %v3936_v35, %v3911_v26 }
 0x4c6   : > { %v3993_v45 = vsel %vm522_vm4, %v3992_v52, %v3967_v61  ;;  %v3983_v32 = vsel %vm522_vm4, %v3975_v37, %v3982_v38  ;;  %v4586_v61 = vrot.slane %v10041_v21, 4  ;;  %v3980_v17 = vrot.slane %v3975_v37, 4 }
 0x4c7   : > { %v3991_v14 = vperm.slane %v3983_v32, %v7470_v0  ;;  %v6651_v37 = vpack.i.bf16 %v10095_v34, %v10098_v18  ;;  %v4544_v38 = vrot.slane %v10066_v11, 4 }
 0x4c8   : > { %v4587_v43 = vsel %vm522_vm4, %v4586_v61, %v10072_v12 }
 0x4c9   : > { %v4006_v29 = vrot.slane %v3991_v14, 4  ;;  %v10248_v40 = vperm.slane %v4587_v43, %v7065_v5 }
 0x4cb   : > { %v10226_v54 = vsel %vm522_vm4, 0.0, %v4006_v29  ;;  %v4612_v52 = vrot.slane %v10248_v40, 4 }
 0x4cc   : > { %5554 = vrot.lane.b32.xlu1 %v10025_v58, %s6952_s16  ;;  %6632 = vrot.lane.b32.xlu2 %v6631_v23, %s6951_s15  ;;  %v3907_v58 = vperm.slane %v3901_v57, %v7065_v5  ;;  %v10200_v23 = vperm.slane %v3993_v45, %v7470_v0 }
 0x4cd   : > { %6617 = vrot.lane.b32.xlu0 %v6616_v42, %s6951_s15  ;;  %v10195_v42 = vperm.slane %v3937_v15, %v7470_v0  ;;  %v4556_v15 = vrot.slane %v10245_v4, 4 }
 0x4ce   : > { %v3926_v59 = vrot.slane %v3907_v58, 4  ;;  %v4008_v44 = vrot.slane %v10200_v23, 4 }
 0x4cf   : > { %v3952_v19 = vrot.slane %v10195_v42, 4  ;;  %v6666_v46 = vpack.i.bf16 %v10200_v23, %v10195_v42 }
 0x4d0   : > { %v3927_v16 = vsel %vm522_vm4, %v3919_v25, %v3926_v59  ;;  %v10221_v62 = vsel %vm522_vm4, 0.0, %v4008_v44  ;;  %v6656_v59 = vpack.i.bf16 %v10044_v36, %v10066_v11 }
 0x4d1   : > { %v10189_v39 = vperm.slane %v3927_v16, %v7470_v0  ;;  %v10213_v26 = vsel %vm522_vm4, 0.0, %v3952_v19 }
 0x4d2   : > { %v6686_v3 = vpack.i.bf16 %v10221_v62, %v10213_v26 }
 0x4d3   : > { %v3950_v33 = vrot.slane %v10189_v39, 4  ;;  %v6661_v57 = vpack.i.bf16 %v3991_v14, %v10189_v39  ;;  %v4532_v39 = vrot.slane %v10069_v30, 4 }
 0x4d4   : > { %5550 = vrot.lane.b32.xlu1 %v10117_v8, %s6952_s16  ;;  %5552 = vrot.lane.b32.xlu2 %v10106_v2, %s6952_s16 }
 0x4d5   : > { %6627 = vrot.lane.b32.xlu0 %v6626_v63, %s6951_s15  ;;  %v3924_v63 = vrot.slane %v3919_v25, 4  ;;  %v3981_v25 = vsel %vm522_vm4, %v3980_v17, %v3963_v6  ;;  %v4533_v14 = vsel %vm522_vm4, %v10044_v36, %v4532_v39 }
 0x4d6   : > { %v4541_v10 = vperm.slane %v4533_v14, %v7065_v5 }
 0x4d7   : > { %v3925_v35 = vsel %vm522_vm4, %v3924_v63, %v3907_v58  ;;  %v4599_v58 = vsel %vm522_vm4, %v4598_v28, %v10063_v47 }
 0x4d8   : > { %v4605_v6 = vperm.slane %v4599_v58, %v7065_v5  ;;  %v4568_v28 = vrot.slane %v4541_v10, 4  ;;  %v10310_v58 = vperm.slane %v3925_v35, %v7470_v0 }
 0x4da   : > { %v4613_v32 = vsel %vm522_vm4, %v4605_v6, %v4612_v52  ;;  %v4610_v52 = vrot.slane %v4605_v6, 4  ;;  %v3948_v35 = vrot.slane %v10310_v58, 4 }
 0x4db   : > { %v10278_v30 = vperm.slane %v4613_v32, %v7470_v0 }
 0x4dc   : > { %6642 = vrot.lane.b32.xlu1 %v6641_v56, %s6952_s16  ;;  %6647 = vrot.lane.b32.xlu2 %v6646_v53, %s6951_s15  ;;  %v4543_v56 = vsel %vm522_vm4, %v4542_v55, %v10066_v11  ;;  %v4588_v53 = vrot.slane %v10072_v12, 4  ;;  %v3954_v11 = vrot.slane %v10170_v51, 4  ;;  %v4600_v12 = vrot.slane %v10063_v47, 4 }
 0x4dd   : > { %5546 = vrot.lane.b32.xlu0 %v10016_v31, %s6952_s16  ;;  %v10216_v31 = vsel %vm522_vm4, 0.0, %v3950_v33  ;;  %v4549_v16 = vperm.slane %v4543_v56, %v7065_v5  ;;  %v4010_v33 = vrot.slane %v10173_v20, 4  ;;  %v4636_v29 = vrot.slane %v10278_v30, 4 }
 0x4de   : > { %v6681_v48 = vpack.i.bf16 %v10226_v54, %v10216_v31  ;;  %v4589_v44 = vsel %vm522_vm4, %v10041_v21, %v4588_v53  ;;  %v4601_v61 = vsel %vm522_vm4, %v10075_v60, %v4600_v12  ;;  %v3955_v63 = vsel %vm522_vm4, 0.0, %v3954_v11 }
 0x4df   : > { %v4557_v45 = vsel %vm522_vm4, %v4549_v16, %v4556_v15  ;;  %v4011_v47 = vsel %vm522_vm4, 0.0, %v4010_v33  ;;  %v4597_v7 = vperm.slane %v4589_v44, %v7065_v5  ;;  %v4609_v60 = vperm.slane %v4601_v61, %v7065_v5 }
 0x4e0   : > { %v10275_v19 = vperm.slane %v4557_v45, %v7470_v0  ;;  %v6691_v17 = vpack.i.bf16 %v4011_v47, %v3955_v63  ;;  %v10313_v15 = vperm.slane %v3981_v25, %v7470_v0  ;;  %v3949_v42 = vsel %vm522_vm4, 0.0, %v3948_v35 }
 0x4e1   : > { %v4622_v56 = vrot.slane %v4609_v60, 4 }
 0x4e2   : > { %v4580_v36 = vrot.slane %v10275_v19, 4  ;;  %v6696_v55 = vpack.i.bf16 %v10278_v30, %v10275_v19  ;;  %v4004_v25 = vrot.slane %v10313_v15, 4 }
 0x4e3   : > { %v4623_v39 = vsel %vm522_vm4, %v4622_v56, %v4597_v7 }
 0x4e4   : > { %5542 = vrot.lane.b32.xlu1 %v10184_v1, %s6952_s16  ;;  %5544 = vrot.lane.b32.xlu2 %v10153_v13, %s6952_s16  ;;  %v4629_v6 = vperm.slane %v4623_v39, %v7470_v0  ;;  %v4005_v23 = vsel %vm522_vm4, 0.0, %v4004_v25 }
 0x4e5   : > { %6637 = vrot.lane.b32.xlu0 %v6636_v22, %s6952_s16  ;;  %v4581_v22 = vsel %vm522_vm4, 0.0, %v4580_v36 }
 0x4e6   : > { %v4638_v36 = vrot.slane %v4629_v6, 4 }
 0x4e8   : > { %v4639_v61 = vsel %vm522_vm4, 0.0, %v4638_v36 }
 0x4ec   : > { %6657 = vrot.lane.b32.xlu1 %v6656_v59, %s6952_s16  ;;  %5540 = vrot.lane.b32.xlu2 %v10095_v34, %s6952_s16  ;;  %v4545_v34 = vsel %vm522_vm4, %v10103_v9, %v4544_v38  ;;  %v4637_v9 = vsel %vm522_vm4, 0.0, %v4636_v29  ;;  %v4624_v59 = vrot.slane %v4597_v7, 4 }
 0x4ed   : > { %6652 = vrot.lane.b32.xlu0 %v6651_v37, %s6951_s15  ;;  %v4553_v21 = vperm.slane %v4545_v34, %v7065_v5  ;;  %v6716_v43 = vpack.i.bf16 %v4637_v9, %v4581_v22 }
 0x4ee   : > { %v4625_v51 = vsel %vm522_vm4, %v4609_v60, %v4624_v59 }
 0x4ef   : > { %v4566_v37 = vrot.slane %v4553_v21, 4  ;;  %v4633_v26 = vperm.slane %v4625_v51, %v7470_v0 }
 0x4f1   : > { %v4640_v30 = vrot.slane %v4633_v26, 4 }
 0x4f3   : > { %v4641_v12 = vsel %vm522_vm4, 0.0, %v4640_v30 }
 0x4f4   : > { %6662 = vrot.lane.b32.xlu1 %v6661_v57, %s6956_s19  ;;  %6672 = vrot.lane.b32.xlu2 %v6671_v41, %s6960_s23  ;;  %v4569_v57 = vsel %vm522_vm4, %v4553_v21, %v4568_v28  ;;  %v4567_v41 = vsel %vm522_vm4, %v4566_v37, %v4541_v10 }
 0x4f5   : > { %5548 = vrot.lane.b32.xlu0 %v10098_v18, %s6952_s16  ;;  %v4554_v18 = vrot.slane %v4549_v16, 4  ;;  %v4577_v20 = vperm.slane %v4569_v57, %v7470_v0  ;;  %v4573_v16 = vperm.slane %v4567_v41, %v7470_v0  ;;  %s5942_s16 = sshll.u32 %s12212_s28, 3 }
 0x4f7   : > { %v4555_v62 = vsel %vm522_vm4, %v4554_v18, %v10245_v4  ;;  %v6706_v54 = vpack.i.bf16 %v4633_v26, %v4577_v20  ;;  %v6676_v4 = vpack.i.bf16 %v4005_v23, %v3949_v42  ;;  %v4584_v19 = vrot.slane %v4577_v20, 4 }
 0x4f8   : > { %v4582_v44 = vrot.slane %v4573_v16, 4 }
 0x4f9   : > { %v4585_v11 = vsel %vm522_vm4, 0.0, %v4584_v19 }
 0x4fa   : > { %v6726_v34 = vpack.i.bf16 %v4641_v12, %v4585_v11  ;;  %v4583_v29 = vsel %vm522_vm4, 0.0, %v4582_v44 }
 0x4fb   : > { %v6721_v10 = vpack.i.bf16 %v4639_v61, %v4583_v29 }
 0x4fc   : > { %6687 = vrot.lane.b32.xlu1 %v6686_v3, %s6958_s21  ;;  %6682 = vrot.lane.b32.xlu2 %v6681_v48, %s6959_s22  ;;  %v4611_v3 = vsel %vm522_vm4, %v4610_v52, %v10248_v40  ;;  %v6701_v48 = vpack.i.bf16 %v4629_v6, %v4573_v16 }
 0x4fd   : > { %6667 = vrot.lane.b32.xlu0 %v6666_v46, %s6955_s18  ;;  %v10343_v46 = vperm.slane %v4555_v62, %v7470_v0  ;;  %v10346_v31 = vperm.slane %v4611_v3, %v7470_v0 }
 0x4ff   : > { %12118 = vst [vmem:[#allocation22_spill] sm:$0xff] %v10343_v46  ;;  %v4578_v40 = vrot.slane %v10343_v46, 4  ;;  %v4634_v38 = vrot.slane %v10346_v31, 4 }
 0x500   : > { %12119 = vst [vmem:[#allocation18_spill] sm:$0xff] %v10346_v31 }
 0x501   : > { %v4579_v45 = vsel %vm522_vm4, 0.0, %v4578_v40  ;;  %v4635_v32 = vsel %vm522_vm4, 0.0, %v4634_v38  ;;  %v10389_v40 = vperm.slane %v10038_v27, %v7065_v5  ;;  %v10393_v38 = vperm.slane %v10034_v49, %v7065_v5 }
 0x502   : > { %v6711_v14 = vpack.i.bf16 %v4635_v32, %v4579_v45 }
 0x504   : > { %6707 = vrot.lane.b32.xlu1 %v6706_v54, %s6960_s23  ;;  %6702 = vrot.lane.b32.xlu2 %v6701_v48, %s6955_s18  ;;  %v5208_v48 = vrot.slane %v10117_v8, 4 }
 0x505   : > { %6677 = vrot.lane.b32.xlu0 %v6676_v4, %s6954_s17 }
 0x506   : > { %v10353_v53 = vpop.permute.xlu2 %6567 }
 0x507   : > { %v6569_v21 = vunpack.i.l.bf16 %v10353_v53 }
 0x509   : > { %v4124_v59 = vrot.slane %v6569_v21, 4 }
 0x50c   : > { %6717 = vrot.lane.b32.xlu1 %v6716_v43, %s6959_s22  ;;  %6712 = vrot.lane.b32.xlu2 %v6711_v14, %s6954_s17 }
 0x50d   : > { %6692 = vrot.lane.b32.xlu0 %v6691_v17, %s6957_s20  ;;  %v6570_v17 = vunpack.i.h.bf16 %v10353_v53 }
 0x50e   : > { %v10362_v33 = vpop.permute.xlu2 %6592 }
 0x50f   : > { %v4180_v57 = vrot.slane %v6570_v17, 4  ;;  %v6595_v62 = vunpack.i.h.bf16 %v10362_v33  ;;  %v6594_v3 = vunpack.i.l.bf16 %v10362_v33 }
 0x510   : > { %v6563_v47 = vpop.permute.xlu1 %6562 }
 0x511   : > { %v6564_v9 = vunpack.i.l.bf16 %v6563_v47  ;;  %v6565_v7 = vunpack.i.h.bf16 %v6563_v47  ;;  %v4372_v14 = vrot.slane %v6595_v62, 4  ;;  %v4316_v19 = vrot.slane %v6594_v3, 4 }
 0x513   : > { %v4112_v28 = vrot.slane %v6564_v9, 4  ;;  %v4168_v52 = vrot.slane %v6565_v7, 4 }
 0x514   : > { %6727 = vrot.lane.b32.xlu2 %v6726_v34, %s6957_s20 }
 0x515   : > { %6697 = vrot.lane.b32.xlu0 %v6696_v55, %s6956_s19 }
 0x516   : > { %v10368_v63 = vpop.permute.xlu2 %6612 }
 0x51d   : > { %6722 = vrot.lane.b32.xlu0 %v6721_v10, %s6958_s21 }
 0x51e   : > { %v6573_v22 = vpop.permute.xlu0 %6572  ;;  %v10373_v37 = vpop.permute.xlu2 %6622 }
 0x51f   : > { %v6575_v43 = vunpack.i.h.bf16 %v6573_v22  ;;  %v6574_v60 = vunpack.i.l.bf16 %v6573_v22 }
 0x521   : > { %v4166_v51 = vrot.slane %v6575_v43, 4  ;;  %v4113_v20 = vsel %vm522_vm4, %v6574_v60, %v4112_v28  ;;  %v4169_v25 = vsel %vm522_vm4, %v6575_v43, %v4168_v52  ;;  %v4110_v26 = vrot.slane %v6574_v60, 4 }
 0x522   : > { %v4121_v16 = vperm.slane %v4113_v20, %v7065_v5  ;;  %v4177_v4 = vperm.slane %v4169_v25, %v7065_v5 }
 0x523   : > { %v4167_v6 = vsel %vm522_vm4, %v4166_v51, %v6565_v7  ;;  %v4111_v53 = vsel %vm522_vm4, %v4110_v26, %v6564_v9 }
 0x524   : > { %v10399_v30 = vperm.slane %v4167_v6, %v7065_v5  ;;  %v4148_v12 = vrot.slane %v4121_v16, 4  ;;  %v4204_v36 = vrot.slane %v4177_v4, 4  ;;  %v10403_v49 = vperm.slane %v4111_v53, %v7065_v5 }
 0x526   : > { %v6578_v55 = vpop.permute.xlu1 %6577  ;;  %v10405_v61 = vpop.permute.xlu2 %6632 }
 0x527   : > { %v6580_v56 = vunpack.i.h.bf16 %v6578_v55  ;;  %v6579_v18 = vunpack.i.l.bf16 %v6578_v55  ;;  %v6583_v41 = vpop.permute.xlu0 %6582 }
 0x528   : > { %v6585_v11 = vunpack.i.h.bf16 %v6583_v41  ;;  %v6584_v29 = vunpack.i.l.bf16 %v6583_v41 }
 0x529   : > { %v4125_v39 = vsel %vm522_vm4, %v6579_v18, %v4124_v59  ;;  %v4181_v35 = vsel %vm522_vm4, %v6580_v56, %v4180_v57  ;;  %v4122_v42 = vrot.slane %v6579_v18, 4  ;;  %v4178_v45 = vrot.slane %v6580_v56, 4 }
 0x52a   : > { %v4133_v23 = vperm.slane %v4125_v39, %v7065_v5  ;;  %v4189_v54 = vperm.slane %v4181_v35, %v7065_v5  ;;  %v4374_v60 = vrot.slane %v6585_v11, 4  ;;  %v4136_v56 = vrot.slane %v10403_v49, 4 }
 0x52b   : > { %v4123_v33 = vsel %vm522_vm4, %v4122_v42, %v6569_v21  ;;  %v4179_v47 = vsel %vm522_vm4, %v4178_v45, %v6570_v17  ;;  %v4192_v21 = vrot.slane %v10399_v30, 4  ;;  %v4317_v52 = vsel %vm522_vm4, %v4316_v19, %v6584_v29 }
 0x52c   : > { %v4146_v27 = vrot.slane %v4133_v23, 4  ;;  %v4202_v34 = vrot.slane %v4189_v54, 4  ;;  %v4149_v7 = vsel %vm522_vm4, %v4133_v23, %v4148_v12  ;;  %v10413_v43 = vperm.slane %v4123_v33, %v7065_v5 }
 0x52d   : > { %v4205_v57 = vsel %vm522_vm4, %v4189_v54, %v4204_v36  ;;  %v10420_v18 = vperm.slane %v4179_v47, %v7065_v5  ;;  %v10424_v51 = vperm.slane %v4149_v7, %v7470_v0  ;;  %v4373_v20 = vsel %vm522_vm4, %v4372_v14, %v6585_v11 }
 0x52e   : > { %v10396_v32 = vpop.permute.xlu1 %6587  ;;  %v4147_v59 = vsel %vm522_vm4, %v4146_v27, %v4121_v16  ;;  %v4203_v17 = vsel %vm522_vm4, %v4202_v34, %v4177_v4  ;;  %v4318_v41 = vrot.slane %v6584_v29, 4  ;;  %v10430_v26 = vperm.slane %v4205_v57, %v7470_v0  ;;  %v10468_v29 = vpop.permute.xlu2 %5552 }
 0x52f   : > { %v6598_v44 = vpop.permute.xlu0 %6597  ;;  %v6590_v22 = vunpack.i.h.bf16 %v10396_v32  ;;  %v6589_v9 = vunpack.i.l.bf16 %v10396_v32  ;;  %v10433_v16 = vperm.slane %v4147_v59, %v7470_v0  ;;  %v10436_v6 = vperm.slane %v4203_v17, %v7470_v0 }
 0x530   : > { %v6599_v10 = vunpack.i.l.bf16 %v6598_v44  ;;  %v6600_v28 = vunpack.i.h.bf16 %v6598_v44  ;;  %v4137_v42 = vsel %vm522_vm4, %v10413_v43, %v4136_v56  ;;  %v4375_v23 = vsel %vm522_vm4, %v6595_v62, %v4374_v60 }
 0x531   : > { %v4386_v39 = vrot.slane %v6590_v22, 4  ;;  %v4330_v35 = vrot.slane %v6589_v9, 4  ;;  %v10442_v54 = vperm.slane %v4317_v52, %v7065_v5  ;;  %v6741_v32 = vpack.i.bf16 %v10430_v26, %v10424_v51 }
 0x532   : > { %v4328_v55 = vrot.slane %v6599_v10, 4  ;;  %v4384_v4 = vrot.slane %v6600_v28, 4  ;;  %v6736_v14 = vpack.i.bf16 %v10436_v6, %v10433_v16  ;;  %v10452_v19 = vperm.slane %v4137_v42, %v7470_v0 }
 0x533   : > { %v4193_v62 = vsel %vm522_vm4, %v10420_v18, %v4192_v21  ;;  %v4319_v11 = vsel %vm522_vm4, %v6594_v3, %v4318_v41  ;;  %v4387_v12 = vsel %vm522_vm4, %v6600_v28, %v4386_v39  ;;  %v4331_v33 = vsel %vm522_vm4, %v6599_v10, %v4330_v35  ;;  %6742 = vrot.lane.b32.xlu1 %v6741_v32, %s6960_s23 }
 0x534   : > { %v4329_v53 = vsel %vm522_vm4, %v4328_v55, %v6589_v9  ;;  %v10460_v27 = vperm.slane %v4193_v62, %v7470_v0  ;;  %v5164_v34 = vrot.slane %v10106_v2, 4  ;;  %v5209_v44 = vsel %vm522_vm4, %v5208_v48, %v10184_v1  ;;  %6737 = vrot.lane.b32.xlu2 %v6736_v14, %s6955_s18 }
 0x535   : > { %v10466_v36 = vperm.slane %v4329_v53, %v7065_v5  ;;  %v10473_v3 = vperm.slane %v4373_v20, %v7065_v5  ;;  %v4383_v10 = vperm.slane %v4375_v23, %v7065_v5  ;;  %v4385_v47 = vsel %vm522_vm4, %v4384_v4, %v6590_v22 }
 0x536   : > { %v10427_v25 = vpop.permute.xlu1 %6607  ;;  %v6731_v9 = vpack.i.bf16 %v10460_v27, %v10452_v19  ;;  %v4327_v48 = vperm.slane %v4319_v11, %v7065_v5  ;;  %v4342_v7 = vrot.slane %v10442_v54, 4  ;;  %v4395_v21 = vperm.slane %v4387_v12, %v7065_v5  ;;  %v10532_v55 = vpop.permute.xlu2 %6647 }
 0x537   : > { %v10445_v45 = vpop.permute.xlu0 %6602  ;;  %v4339_v60 = vperm.slane %v4331_v33, %v7065_v5  ;;  %v11796_v59 = vunpack.i.h.bf16 %v10368_v63  ;;  %v10492_v17 = vsel %vm522_vm4, %v5164_v34, %v10153_v13  ;;  %v10496_v52 = vperm.slane %v4385_v47, %v7065_v5 }
 0x538   : > { %6732 = vrot.lane.b32.xlu0 %v6731_v9, %s6956_s19  ;;  %v4343_v20 = vsel %vm522_vm4, %v10466_v36, %v4342_v7  ;;  %v10501_v41 = vperm.slane %v5209_v44, %v7065_v5  ;;  %v10505_v39 = vperm.slane %v10110_v24, %v7065_v5  ;;  %v11795_v35 = vunpack.i.l.bf16 %v10368_v63 }
 0x539   : > { %v4398_v42 = vrot.slane %v10473_v3, 4  ;;  %v4410_v4 = vrot.slane %v4383_v10, 4  ;;  %v4354_v53 = vrot.slane %v4327_v48, 4  ;;  %v4408_v32 = vrot.slane %v4395_v21, 4 }
 0x53a   : > { %v4352_v14 = vrot.slane %v4339_v60, 4  ;;  %v4792_v62 = vrot.slane %v11796_v59, 4  ;;  %v11794_v11 = vunpack.i.h.bf16 %v10373_v37  ;;  %v11797_v12 = vunpack.i.l.bf16 %v10373_v37 }
 0x53b   : > { %v10516_v24 = vperm.slane %v4343_v20, %v7470_v0  ;;  %v11798_v33 = vunpack.i.h.bf16 %v10405_v61  ;;  %v4399_v34 = vsel %vm522_vm4, %v10496_v52, %v4398_v42  ;;  %v4355_v44 = vsel %vm522_vm4, %v4339_v60, %v4354_v53 }
 0x53c   : > { %v4411_v47 = vsel %vm522_vm4, %v4395_v21, %v4410_v4  ;;  %v4134_v9 = vrot.slane %v10413_v43, 4  ;;  %v11799_v7 = vunpack.i.l.bf16 %v10405_v61  ;;  %v10526_v28 = vperm.slane %v4399_v34, %v7470_v0 }
 0x53d   : > { %v10529_v56 = vperm.slane %v4355_v44, %v7470_v0  ;;  %v6605_v20 = vunpack.i.h.bf16 %v10445_v45  ;;  %v10535_v42 = vperm.slane %v4411_v47, %v7470_v0  ;;  %v4353_v60 = vsel %vm522_vm4, %v4352_v14, %v4327_v48 }
 0x53e   : > { %v10488_v22 = vpop.permute.xlu1 %5554  ;;  %v4409_v21 = vsel %vm522_vm4, %v4408_v32, %v4383_v10  ;;  %v6604_v43 = vunpack.i.l.bf16 %v10445_v45  ;;  %v6746_v4 = vpack.i.bf16 %v10526_v28, %v10516_v24  ;;  %v10543_v53 = vperm.slane %v4353_v60, %v7470_v0 }
 0x53f   : > { %v10509_v23 = vpop.permute.xlu0 %6617  ;;  %v10546_v34 = vperm.slane %v4409_v21, %v7470_v0  ;;  %v4736_v47 = vrot.slane %v11795_v35, 4  ;;  %v10554_v48 = vrot.slane %v11794_v11, 4  ;;  %v6756_v10 = vpack.i.bf16 %v10535_v42, %v10529_v56 }
 0x540   : > { %v6650_v14 = vunpack.i.h.bf16 %v10532_v55  ;;  %6747 = vrot.lane.b32.xlu2 %v6746_v4, %s6956_s19  ;;  %v4135_v21 = vsel %vm522_vm4, %v4134_v9, %v10403_v49  ;;  %v10570_v11 = vrot.slane %v11797_v12, 4  ;;  %v4190_v35 = vrot.slane %v10420_v18, 4 }
 0x541   : > { %v6751_v60 = vpack.i.bf16 %v10546_v34, %v10543_v53  ;;  %v5370_v59 = vrot.slane %v11798_v33, 4  ;;  %v10577_v4 = vrot.slane %v11799_v7, 4  ;;  %6757 = vrot.lane.b32.xlu0 %v6756_v10, %s6960_s23  ;;  %v4794_v9 = vrot.slane %v6605_v20, 4 }
 0x542   : > { %12120 = vst [vmem:[#allocation24_spill] sm:$0xff] %v10570_v11  ;;  %v4737_v45 = vsel %vm522_vm4, %v4736_v47, %v6604_v43  ;;  %v4340_v18 = vrot.slane %v10466_v36, 4  ;;  %v4793_v12 = vsel %vm522_vm4, %v4792_v62, %v6605_v20  ;;  %v6649_v33 = vunpack.i.l.bf16 %v10532_v55 }
 0x543   : > { %6752 = vrot.lane.b32.xlu1 %v6751_v60, %s6955_s18  ;;  %v10588_v7 = vperm.slane %v4135_v21, %v7470_v0  ;;  %v12122_v10 = vunpack.i.h.bf16 %v10427_v25  ;;  %v12123_v32 = vunpack.i.l.bf16 %v10427_v25  ;;  %v4738_v46 = vrot.slane %v6604_v43, 4 }
 0x544   : > { %v5372_v31 = vrot.slane %v6650_v14, 4  ;;  %v10595_v47 = vperm.slane %v4737_v45, %v7065_v5  ;;  %v4191_v62 = vsel %vm522_vm4, %v4190_v35, %v10399_v30  ;;  %v4162_v55 = vrot.slane %v10433_v16, 4 }
 0x545   : > { %12121 = vst [vmem:[#allocation26_spill] sm:$0xff] %v10588_v7  ;;  %v4806_v50 = vrot.slane %v12122_v10, 4  ;;  %v4750_v49 = vrot.slane %v12123_v32, 4  ;;  %v4158_v36 = vrot.slane %v10588_v7, 4  ;;  %v12125_v20 = vunpack.i.h.bf16 %v10368_v63  ;;  %v10614_v7 = vpop.permute.xlu2 %5544 }
 0x546   : > { %v10548_v44 = vpop.permute.xlu1 %5550  ;;  %12124 = vst [vmem:[#allocation7_spill] sm:$0xff] %v10595_v47  ;;  %v10605_v21 = vperm.slane %v4793_v12, %v7065_v5  ;;  %v10608_v43 = vperm.slane %v4191_v62, %v7470_v0  ;;  %v4218_v45 = vrot.slane %v10436_v6, 4  ;;  %v5371_v10 = vsel %vm522_vm4, %v5370_v59, %v6650_v14 }
 0x547   : > { %v10566_v57 = vpop.permute.xlu0 %6627  ;;  %v4795_v60 = vsel %vm522_vm4, %v12125_v20, %v4794_v9  ;;  %v4163_v30 = vsel %vm522_vm4, 0.0, %v4162_v55  ;;  %v4160_v16 = vrot.slane %v10452_v19, 4  ;;  %v4216_v35 = vrot.slane %v10460_v27, 4 }
 0x548   : > { %12126 = vst [vmem:[#allocation16_spill] sm:$0xff] %v10605_v21  ;;  %v12128_v12 = vunpack.i.l.bf16 %v10368_v63  ;;  %v4159_v62 = vsel %vm522_vm4, 0.0, %v4158_v36  ;;  %v4214_v6 = vrot.slane %v10608_v43, 4  ;;  %v4219_v20 = vsel %vm522_vm4, 0.0, %v4218_v45 }
 0x549   : > { %12127 = vst [vmem:[#allocation19_spill] sm:$0xff] %v10608_v43  ;;  %v6619_v59 = vunpack.i.l.bf16 %v10509_v23  ;;  %v6771_v14 = vpack.i.bf16 %v4219_v20, %v4163_v30  ;;  %v4161_v55 = vsel %vm522_vm4, 0.0, %v4160_v16  ;;  %v4217_v19 = vsel %vm522_vm4, 0.0, %v4216_v35 }
 0x54a   : > { %v4739_v9 = vsel %vm522_vm4, %v12128_v12, %v4738_v46  ;;  %v10631_v27 = vperm.slane %v4795_v60, %v7065_v5  ;;  %v6620_v46 = vunpack.i.h.bf16 %v10509_v23  ;;  %v4215_v63 = vsel %vm522_vm4, 0.0, %v4214_v6 }
 0x54b   : > { %v6766_v36 = vpack.i.bf16 %v4217_v19, %v4161_v55  ;;  %v10636_v12 = vperm.slane %v4739_v9, %v7065_v5  ;;  %v12129_v45 = vunpack.i.h.bf16 %v10405_v61  ;;  %v10642_v30 = vperm.slane %v5371_v10, %v7065_v5  ;;  %6772 = vrot.lane.b32.xlu0 %v6771_v14, %s6958_s21 }
 0x54c   : > { %v6761_v16 = vpack.i.bf16 %v4215_v63, %v4159_v62  ;;  %v4164_v23 = vrot.slane %v10424_v51, 4  ;;  %v4220_v60 = vrot.slane %v10430_v26, 4  ;;  %v4366_v35 = vrot.slane %v10516_v24, 4 }
 0x54d   : > { %v5373_v43 = vsel %vm522_vm4, %v12129_v45, %v5372_v31  ;;  %6767 = vrot.lane.b32.xlu1 %v6766_v36, %s6959_s22  ;;  %v4422_v9 = vrot.slane %v10526_v28, 4  ;;  %v4762_v6 = vrot.slane %v10595_v47, 4  ;;  %v5416_v20 = vrot.slane %v6649_v33, 4 }
 0x54e   : > { %v10611_v32 = vpop.permute.xlu1 %6642  ;;  %v4751_v10 = vsel %vm522_vm4, %v6619_v59, %v4750_v49  ;;  %6762 = vrot.lane.b32.xlu2 %v6761_v16, %s6954_s17  ;;  %v4807_v62 = vsel %vm522_vm4, %v6620_v46, %v4806_v50  ;;  %v4367_v14 = vsel %vm522_vm4, 0.0, %v4366_v35  ;;  %v4341_v26 = vsel %vm522_vm4, %v4340_v18, %v10442_v54 }
 0x54f   : > { %v10625_v11 = vpop.permute.xlu0 %5546  ;;  %v4423_v51 = vsel %vm522_vm4, 0.0, %v4422_v9  ;;  %v4830_v28 = vrot.slane %v10631_v27, 4  ;;  %v10663_v55 = vperm.slane %v5373_v43, %v7065_v5  ;;  %v5415_v49 = vsel %vm522_vm4, %v10577_v4, %v6649_v33  ;;  %v10684_v33 = vpop.permute.xlu2 %5540 }
 0x550   : > { %v10668_v19 = vperm.slane %v4341_v26, %v7470_v0  ;;  %v10671_v50 = vperm.slane %v4751_v10, %v7065_v5  ;;  %v4165_v63 = vsel %vm522_vm4, 0.0, %v4164_v23  ;;  %v4221_v54 = vsel %vm522_vm4, 0.0, %v4220_v60 }
 0x551   : > { %v12131_v18 = vrot.slane %v10496_v52, 4  ;;  %v10682_v45 = vperm.slane %v4807_v62, %v7065_v5  ;;  %v6786_v4 = vpack.i.bf16 %v4423_v51, %v4367_v14  ;;  %v4774_v23 = vrot.slane %v10636_v12, 4 }
 0x552   : > { %12130 = vst [vmem:[#allocation20_spill] sm:$0xff] %v10668_v19  ;;  %v4364_v16 = vrot.slane %v10668_v19, 4  ;;  %v12133_v60 = vunpack.i.l.bf16 %v10405_v61  ;;  %v4748_v9 = vrot.slane %v6619_v59, 4  ;;  %v10695_v10 = vperm.slane %v5415_v49, %v7065_v5 }
 0x553   : > { %v4397_v36 = vsel %vm522_vm4, %v12131_v18, %v10473_v3  ;;  %v4804_v3 = vrot.slane %v6620_v46, 4  ;;  %v6776_v62 = vpack.i.bf16 %v4221_v54, %v4165_v63  ;;  %6787 = vrot.lane.b32.xlu0 %v6786_v4, %s6959_s22  ;;  %v4368_v18 = vrot.slane %v10543_v53, 4 }
 0x554   : > { %v10688_v35 = vperm.slane %v4397_v36, %v7470_v0  ;;  %v5417_v52 = vsel %vm522_vm4, %v12133_v60, %v5416_v20  ;;  %v4365_v14 = vsel %vm522_vm4, 0.0, %v4364_v16  ;;  %v4424_v61 = vrot.slane %v10546_v34, 4 }
 0x555   : > { %v4775_v46 = vsel %vm522_vm4, %v10671_v50, %v4774_v23  ;;  %v10706_v59 = vperm.slane %v5417_v52, %v7065_v5  ;;  %v4831_v63 = vsel %vm522_vm4, %v10682_v45, %v4830_v28  ;;  %v12134_v53 = vunpack.i.h.bf16 %v10427_v25 }
 0x556   : > { %v10659_v24 = vpop.permute.xlu1 %5542  ;;  %12132 = vst [vmem:[#allocation4_spill] sm:$0xff] %v10688_v35  ;;  %v4420_v51 = vrot.slane %v10688_v35, 4  ;;  %6777 = vrot.lane.b32.xlu2 %v6776_v62, %s6957_s20  ;;  %v10711_v49 = vperm.slane %v4775_v46, %v7470_v0  ;;  %v12135_v54 = vunpack.i.l.bf16 %v10427_v25  ;;  %v10722_v16 = vperm.slane %v4831_v63, %v7470_v0 }
 0x557   : > { %v10679_v43 = vpop.permute.xlu0 %6637  ;;  %v4805_v34 = vsel %vm522_vm4, %v4804_v3, %v12134_v53  ;;  %v5632_v60 = vrot.slane %v10488_v22, 4  ;;  %v4370_v52 = vrot.slane %v10529_v56, 4  ;;  %v4426_v28 = vrot.slane %v10535_v42, 4 }
 0x558   : > { %v4421_v20 = vsel %vm522_vm4, 0.0, %v4420_v51  ;;  %v4749_v36 = vsel %vm522_vm4, %v4748_v9, %v12135_v54  ;;  %12136 = vst [vmem:[#allocation13_spill] sm:$0xff] %v10722_v16  ;;  %v5578_v3 = vrot.slane %v10614_v7, 4  ;;  %v4369_v25 = vsel %vm522_vm4, 0.0, %v4368_v18  ;;  %v10753_v54 = vpop.permute.xlu2 %6672 }
 0x559   : > { %v6781_v4 = vpack.i.bf16 %v4421_v20, %v4365_v14  ;;  %v4425_v9 = vsel %vm522_vm4, 0.0, %v4424_v61  ;;  %v11804_v14 = vunpack.i.h.bf16 %v10679_v43  ;;  %v10738_v46 = vperm.slane %v4805_v34, %v7065_v5  ;;  %12138 = vst [vmem:[#allocation23_spill] sm:$0xff] %v10753_v54 }
 0x55a   : > { %v10741_v56 = vperm.slane %v4749_v36, %v7065_v5  ;;  %v6629_v42 = vunpack.i.l.bf16 %v10566_v57  ;;  %v6811_v20 = vpack.i.bf16 %v10722_v16, %v10711_v49  ;;  %v4772_v63 = vrot.slane %v10671_v50, 4 }
 0x55b   : > { %6782 = vrot.lane.b32.xlu1 %v6781_v4, %s6954_s17  ;;  %v12137_v18 = vrot.slane %v10468_v29, 4  ;;  %v6630_v53 = vunpack.i.h.bf16 %v10566_v57  ;;  %v5620_v34 = vrot.slane %v10548_v44, 4  ;;  %v6791_v36 = vpack.i.bf16 %v4425_v9, %v4369_v25 }
 0x55c   : > { %6812 = vrot.lane.b32.xlu0 %v6811_v20, %s6960_s23  ;;  %v4371_v4 = vsel %vm522_vm4, 0.0, %v4370_v52  ;;  %v4427_v26 = vsel %vm522_vm4, 0.0, %v4426_v28  ;;  %v4998_v50 = vrot.slane %v11804_v14, 4  ;;  %v4828_v23 = vrot.slane %v10682_v45, 4 }
 0x55d   : > { %v5577_v61 = vsel %vm522_vm4, %v12137_v18, %v10614_v7  ;;  %v5579_v7 = vsel %vm522_vm4, %v10468_v29, %v5578_v3  ;;  %v6645_v57 = vunpack.i.h.bf16 %v10611_v32  ;;  %v6639_v18 = vunpack.i.l.bf16 %v10679_v43 }
 0x55e   : > { %v10728_v62 = vpop.permute.xlu1 %6657  ;;  %v5426_v31 = vrot.slane %v6629_v42, 4  ;;  %6792 = vrot.lane.b32.xlu2 %v6791_v36, %s6958_s21  ;;  %v5621_v52 = vsel %vm522_vm4, %v5620_v34, %v10659_v24  ;;  %v4763_v28 = vsel %vm522_vm4, %v10741_v56, %v4762_v6  ;;  %v12139_v45 = vrot.slane %v10605_v21, 4 }
 0x55f   : > { %v10735_v51 = vpop.permute.xlu0 %6652  ;;  %v5428_v25 = vrot.slane %v6630_v53, 4  ;;  %v6796_v9 = vpack.i.bf16 %v4427_v26, %v4371_v4  ;;  %v4999_v20 = vsel %vm522_vm4, %v4998_v50, %v6645_v57  ;;  %v10779_v36 = vperm.slane %v5577_v61, %v7065_v5 }
 0x560   : > { %v4819_v29 = vsel %vm522_vm4, %v10738_v46, %v12139_v45  ;;  %v10782_v34 = vperm.slane %v4763_v28, %v7470_v0  ;;  %v4773_v6 = vsel %vm522_vm4, %v4772_v63, %v10636_v12  ;;  %v10790_v45 = vperm.slane %v5579_v7, %v7065_v5 }
 0x561   : > { %v10785_v14 = vperm.slane %v4819_v29, %v7470_v0  ;;  %v10794_v26 = vperm.slane %v5621_v52, %v7065_v5  ;;  %v5012_v4 = vrot.slane %v6639_v18, 4  ;;  %v4829_v61 = vsel %vm522_vm4, %v4828_v23, %v10631_v27 }
 0x562   : > { %v5427_v28 = vsel %vm522_vm4, %v5426_v31, %v6630_v53  ;;  %v5634_v29 = vrot.slane %v10625_v11, 4  ;;  %v10803_v12 = vperm.slane %v4999_v20, %v7065_v5  ;;  %v11806_v63 = vunpack.i.l.bf16 %v10735_v51 }
 0x563   : > { %6797 = vrot.lane.b32.xlu1 %v6796_v9, %s6957_s20  ;;  %12140 = vst [vmem:[#allocation25_spill] sm:$0xff] %v10794_v26  ;;  %v5429_v52 = vsel %vm522_vm4, %v6629_v42, %v5428_v25  ;;  %v10810_v9 = vperm.slane %v4773_v6, %v7470_v0  ;;  %v10813_v27 = vperm.slane %v4829_v61, %v7470_v0  ;;  %v6655_v20 = vunpack.i.h.bf16 %v10735_v51 }
 0x564   : > { %v5633_v31 = vsel %vm522_vm4, %v5632_v60, %v10625_v11  ;;  %v6801_v53 = vpack.i.bf16 %v10785_v14, %v10782_v34  ;;  %v5358_v3 = vrot.slane %v11806_v63, 4  ;;  %v10824_v42 = vperm.slane %v5427_v28, %v7065_v5  ;;  %v10836_v63 = vpop.permute.xlu2 %6682 }
 0x565   : > { %v5646_v25 = vrot.slane %v10794_v26, 4  ;;  %v5011_v6 = vsel %vm522_vm4, %v10554_v48, %v6639_v18  ;;  %v12141_v61 = vunpack.i.h.bf16 %v10373_v37  ;;  %v5635_v60 = vsel %vm522_vm4, %v10488_v22, %v5634_v29 }
 0x566   : > { %v10806_v7 = vpop.permute.xlu1 %6662  ;;  %v5622_v23 = vrot.slane %v10659_v24, 4  ;;  %v5024_v54 = vrot.slane %v10803_v12, 4  ;;  %6802 = vrot.lane.b32.xlu2 %v6801_v53, %s6956_s19  ;;  %v5359_v28 = vsel %vm522_vm4, %v5358_v3, %v6655_v20  ;;  %v10841_v19 = vperm.slane %v5633_v31, %v7065_v5 }
 0x567   : > { %v10798_v50 = vpop.permute.xlu0 %5548  ;;  %v5013_v11 = vsel %vm522_vm4, %v12141_v61, %v5012_v4  ;;  %v6644_v48 = vunpack.i.l.bf16 %v10611_v32  ;;  %v6806_v18 = vpack.i.bf16 %v10813_v27, %v10810_v9  ;;  %v12142_v22 = vunpack.i.h.bf16 %v10728_v62 }
 0x568   : > { %v5000_v24 = vrot.slane %v6645_v57, 4  ;;  %v10849_v29 = vperm.slane %v5011_v6, %v7065_v5  ;;  %v5021_v61 = vperm.slane %v5013_v11, %v7065_v5  ;;  %v10853_v53 = vperm.slane %v5359_v28, %v7065_v5 }
 0x569   : > { %v4942_v4 = vrot.slane %v12142_v22, 4  ;;  %v10857_v31 = vperm.slane %v5429_v52, %v7065_v5  ;;  %v10860_v32 = vperm.slane %v5635_v60, %v7065_v5  ;;  %v5647_v57 = vsel %vm522_vm4, %v10841_v19, %v5646_v25 }
 0x56a   : > { %12143 = vst [vmem:[#allocation15_spill] sm:$0xff] %v10853_v53  ;;  %v5623_v11 = vsel %vm522_vm4, %v10548_v44, %v5622_v23  ;;  %v12145_v28 = vunpack.i.h.bf16 %v10679_v43  ;;  %v5025_v52 = vsel %vm522_vm4, %v10849_v29, %v5024_v54  ;;  %v12146_v60 = vrot.slane %v10695_v10, 4 }
 0x56b   : > { %6807 = vrot.lane.b32.xlu1 %v6806_v18, %s6955_s18  ;;  %v6659_v3 = vunpack.i.l.bf16 %v10728_v62  ;;  %v12147_v25 = vunpack.i.l.bf16 %v10373_v37  ;;  %v10883_v44 = vperm.slane %v5025_v52, %v7470_v0  ;;  %v4954_v23 = vrot.slane %v6644_v48, 4 }
 0x56c   : > { %v5001_v22 = vsel %vm522_vm4, %v12145_v28, %v5000_v24  ;;  %v5441_v18 = vsel %vm522_vm4, %v10824_v42, %v12146_v60  ;;  %v5034_v24 = vrot.slane %v5021_v61, 4  ;;  %v5384_v54 = vrot.slane %v10853_v53, 4  ;;  %v10912_v47 = vpop.permute.xlu2 %6702 }
 0x56d   : > { %12148 = vst [vmem:[#allocation36_spill] sm:$0xff] %v10883_v44  ;;  %v10886_v43 = vperm.slane %v5441_v18, %v7470_v0  ;;  %v10890_v28 = vperm.slane %v5647_v57, %v7470_v0  ;;  %v10895_v35 = vperm.slane %v5623_v11, %v7065_v5  ;;  %v5009_v37 = vperm.slane %v5001_v22, %v7065_v5 }
 0x56e   : > { %v10892_v60 = vpop.permute.xlu1 %6687  ;;  %v5564_v52 = vrot.slane %v10798_v50, 4  ;;  %v5450_v18 = vrot.slane %v10857_v31, 4  ;;  %v5656_v21 = vrot.slane %v10860_v32, 4  ;;  %v6685_v11 = vunpack.i.h.bf16 %v10836_v63 }
 0x56f   : > { %v10865_v6 = vpop.permute.xlu0 %6667  ;;  %12149 = vst [vmem:[#allocation34_spill] sm:$0xff] %v10886_v43  ;;  %5709 = vrot.lane.b32.xlu2 %v10890_v28, %s6956_s19  ;;  %v6684_v22 = vunpack.i.l.bf16 %v10836_v63  ;;  %v5035_v26 = vsel %vm522_vm4, %v5034_v24, %v5009_v37  ;;  %v5234_v16 = vrot.slane %v10501_v41, 4  ;;  %v5036_v53 = vrot.slane %v5009_v37, 4 }
 0x570   : > { %12144 = vst [vmem:[#allocation10_spill] sm:$0xff] %v10865_v6  ;;  %v4943_v6 = vsel %vm522_vm4, %v4942_v4, %v12147_v25  ;;  %v6816_v4 = vpack.i.bf16 %v10883_v44, %v10886_v43  ;;  %v5566_v25 = vrot.slane %v10684_v33, 4  ;;  %v4955_v43 = vsel %vm522_vm4, %v4954_v23, %v6659_v3 }
 0x571   : > { %12150 = vst [vmem:[#allocation30_spill] sm:$0xff] %v10890_v28  ;;  %v10905_v57 = vperm.slane %v4943_v6, %v7065_v5  ;;  %v4956_v44 = vrot.slane %v6659_v3, 4  ;;  %v5385_v6 = vsel %vm522_vm4, %v10642_v30, %v5384_v54  ;;  %v5565_v28 = vsel %vm522_vm4, %v5564_v52, %v10684_v33 }
 0x572   : > { %12151 = vst [vmem:[#allocation31_spill] sm:$0xff] %v10892_v60  ;;  %v5360_v60 = vrot.slane %v6655_v20, 4  ;;  %v5657_v63 = vsel %vm522_vm4, %v5656_v21, %v10895_v35  ;;  %v10924_v20 = vperm.slane %v5385_v6, %v7470_v0  ;;  %v5451_v54 = vsel %vm522_vm4, %v5450_v18, %v10706_v59 }
 0x573   : > { %6817 = vrot.lane.b32.xlu1 %v6816_v4, %s6956_s19  ;;  %v4968_v24 = vrot.slane %v10905_v57, 4  ;;  %v5235_v37 = vsel %vm522_vm4, %v10389_v40, %v5234_v16  ;;  %v12152_v4 = vunpack.i.l.bf16 %v10735_v51  ;;  %v10936_v21 = vperm.slane %v4955_v43, %v7065_v5 }
 0x574   : > { %v10939_v52 = vperm.slane %v5035_v26, %v7470_v0  ;;  %v10942_v6 = vperm.slane %v5235_v37, %v7470_v0  ;;  %v4957_v23 = vsel %vm522_vm4, %v6644_v48, %v4956_v44  ;;  %v5567_v18 = vsel %vm522_vm4, %v10798_v50, %v5566_v25 }
 0x575   : > { %v5361_v33 = vsel %vm522_vm4, %v12152_v4, %v5360_v60  ;;  %v10948_v16 = vperm.slane %v5565_v28, %v7065_v5  ;;  %v10951_v51 = vperm.slane %v5657_v63, %v7470_v0  ;;  %v6665_v43 = vunpack.i.h.bf16 %v10806_v7 }
 0x576   : > { %v10955_v60 = vperm.slane %v5451_v54, %v7470_v0  ;;  %v6821_v26 = vpack.i.bf16 %v10924_v20, %v10942_v6  ;;  %v5037_v37 = vsel %vm522_vm4, %v5021_v61, %v5036_v53  ;;  %v6664_v48 = vunpack.i.l.bf16 %v10806_v7  ;;  %v10970_v25 = vpop.permute.xlu1 %6707 }
 0x577   : > { %v6678_v3 = vpop.permute.xlu0 %6677  ;;  %5717 = vrot.lane.b32.xlu2 %v10951_v51, %s6955_s18  ;;  %v4969_v50 = vsel %vm522_vm4, %v10936_v21, %v4968_v24  ;;  %v10967_v44 = vperm.slane %v10492_v17, %v7065_v5  ;;  %v5178_v28 = vrot.slane %v10505_v39, 4  ;;  %12153 = vst [vmem:[#allocation5_spill] sm:$0xff] %v10970_v25  ;;  %v12154_v7 = vrot.slane %v10706_v59, 4 }
 0x578   : > { %v6826_v63 = vpack.i.bf16 %v10939_v52, %v10955_v60  ;;  %6822 = vrot.lane.b32.xlu0 %v6821_v26, %s6956_s19  ;;  %v6680_v53 = vunpack.i.h.bf16 %v6678_v3  ;;  %v6679_v24 = vunpack.i.l.bf16 %v6678_v3  ;;  %v5590_v54 = vrot.slane %v10948_v16, 4 }
 0x579   : > { %v5453_v61 = vsel %vm522_vm4, %v10857_v31, %v12154_v7  ;;  %v10981_v17 = vperm.slane %v5037_v37, %v7470_v0  ;;  %v5179_v4 = vsel %vm522_vm4, %v10967_v44, %v5178_v28  ;;  %v12155_v25 = vrot.slane %v10184_v1, 4  ;;  %v6713_v28 = vpop.permute.xlu2 %6712 }
 0x57a   : > { %v10991_v59 = vperm.slane %v4969_v50, %v7470_v0  ;;  %v4075_v31 = vsel %vm802_vm6, %v10313_v15, %v6680_v53  ;;  %v4068_v3 = vsel %vm802_vm6, %v10310_v58, %v6679_v24  ;;  %v11001_v1 = vperm.slane %v5567_v18, %v7065_v5 }
 0x57b   : > { %v5211_v26 = vsel %vm522_vm4, %v10117_v8, %v12155_v25  ;;  %6827 = vrot.lane.b32.xlu1 %v6826_v63, %s6955_s18  ;;  %v11004_v8 = vperm.slane %v5453_v61, %v7470_v0  ;;  %v4076_v50 = vsel %vm804_vm7, %v4075_v31, %v6665_v43  ;;  %v4069_v25 = vsel %vm804_vm7, %v4068_v3, %v6664_v48 }
 0x57c   : > { %v5219_v37 = vperm.slane %v5211_v26, %v7065_v5  ;;  %v11009_v15 = vperm.slane %v5179_v4, %v7470_v0  ;;  %v11012_v58 = vsel %vm806_vm8, %v4076_v50, %v6685_v11  ;;  %v11015_v63 = vsel %vm806_vm8, %v4069_v25, %v6684_v22  ;;  %v12163_v25 = vld [vmem:[#allocation24_spill] sm:$0xff] }
 0x57d   : > { %12157 = vst [vmem:[#allocation35_spill] sm:$0xff] %v11012_v58  ;;  %v12159_v18 = vrot.slane %v10393_v38, 4  ;;  %v5369_v61 = vperm.slane %v5361_v33, %v7065_v5  ;;  %v11022_v24 = vperm.slane %v4957_v23, %v7065_v5  ;;  %v6841_v43 = vpack.i.bf16 %v10981_v17, %v11004_v8 }
 0x57e   : > { %12158 = vst [vmem:[#allocation33_spill] sm:$0xff] %v11015_v63  ;;  %v5591_v48 = vsel %vm522_vm4, %v10779_v36, %v5590_v54  ;;  %v6715_v11 = vunpack.i.h.bf16 %v6713_v28  ;;  %v6714_v4 = vunpack.i.l.bf16 %v6713_v28  ;;  %v6831_v22 = vpack.i.bf16 %v11009_v15, %v10991_v59  ;;  %v6718_v63 = vpop.permute.xlu1 %6717 }
 0x57f   : > { %v10998_v7 = vpop.permute.xlu0 %6692  ;;  %v5245_v53 = vsel %vm522_vm4, %v12159_v18, %v5219_v37  ;;  %12160 = vst [vmem:[#allocation54_spill] sm:$0xff] %v11022_v24  ;;  %v5246_v26 = vrot.slane %v5219_v37, 4  ;;  %v5438_v31 = vrot.slane %v10824_v42, 4  ;;  %v5022_v3 = vrot.slane %v10849_v29, 4  ;;  %6842 = vrot.lane.b32.xlu2 %v6841_v43, %s6960_s23 }
 0x580   : > { %12156 = vst [vmem:[#allocation9_spill] sm:$0xff] %v10998_v7  ;;  %v6705_v33 = vunpack.i.h.bf16 %v10912_v47  ;;  %v6704_v23 = vunpack.i.l.bf16 %v10912_v47  ;;  %v12161_v50 = vrot.slane %v10790_v45, 4  ;;  %v11040_v28 = vperm.slane %v5591_v48, %v7470_v0  ;;  %6832 = vrot.lane.b32.xlu0 %v6831_v22, %s6956_s19 }
 0x581   : > { %v5247_v42 = vsel %vm522_vm4, %v10393_v38, %v5246_v26  ;;  %v12162_v29 = vrot.slane %v10153_v13, 4  ;;  %v5396_v37 = vrot.slane %v5369_v61, 4  ;;  %v12164_v18 = vunpack.i.h.bf16 %v10728_v62  ;;  %v12166_v13 = vld [vmem:[#allocation18_spill] sm:$0xff] }
 0x582   : > { %v5601_v54 = vsel %vm522_vm4, %v12161_v50, %v11001_v1  ;;  %v12165_v50 = vrot.slane %v10663_v55, 4  ;;  %v4978_v38 = vrot.slane %v11022_v24, 4  ;;  %v4705_v26 = vsel %vm802_vm6, %v12166_v13, %v6715_v11 }
 0x583   : > { %v5167_v47 = vsel %vm522_vm4, %v10106_v2, %v12162_v29  ;;  %v4945_v43 = vsel %vm522_vm4, %v12164_v18, %v12163_v25  ;;  %v12167_v2 = vld [vmem:[#allocation22_spill] sm:$0xff]  ;;  %5681 = vrot.lane.b32.xlu1 %v11040_v28, %s6956_s19  ;;  %v12168_v62 = vrot.slane %v10895_v35, 4  ;;  %v12169_v18 = vld [vmem:[#allocation21_spill] sm:$0xff]  ;;  %v6720_v35 = vunpack.i.h.bf16 %v6718_v63  ;;  %s325_s19 = scalar_lea.vmem %s11695_s8, %s5942_s16 }
 0x584   : > { %v5395_v48 = vsel %vm522_vm4, %v12165_v50, %v5369_v61  ;;  %v11057_v22 = vperm.slane %v5167_v47, %v7065_v5  ;;  %v4698_v29 = vsel %vm802_vm6, %v12167_v2, %v6714_v4  ;;  %v11071_v47 = vperm.slane %v5601_v54, %v7470_v0 }
 0x585   : > { %v5659_v61 = vsel %vm522_vm4, %v10860_v32, %v12168_v62  ;;  %v11075_v50 = vperm.slane %v12169_v18, %v7065_v5  ;;  %v11079_v4 = vperm.slane %v5245_v53, %v7470_v0  ;;  %v11082_v2 = vperm.slane %v5395_v48, %v7470_v0 }
 0x586   : > { %v5188_v11 = vrot.slane %v11057_v22, 4  ;;  %v11085_v32 = vperm.slane %v5659_v61, %v7470_v0  ;;  %v6719_v54 = vunpack.i.l.bf16 %v6718_v63  ;;  %v5397_v7 = vsel %vm522_vm4, %v10663_v55, %v5396_v37 }
 0x587   : > { %v6698_v25 = vpop.permute.xlu0 %6697  ;;  %v4786_v53 = vrot.slane %v10782_v34, 4  ;;  %5689 = vrot.lane.b32.xlu2 %v11071_v47, %s6955_s18  ;;  %v4842_v63 = vrot.slane %v10785_v14, 4  ;;  %v6836_v55 = vpack.i.bf16 %v11082_v2, %v11079_v4  ;;  %v5023_v34 = vsel %vm522_vm4, %v5022_v3, %v10803_v12 }
 0x588   : > { %v6700_v13 = vunpack.i.h.bf16 %v6698_v25  ;;  %v6699_v58 = vunpack.i.l.bf16 %v6698_v25  ;;  %v5189_v62 = vsel %vm522_vm4, %v5188_v11, %v11075_v50  ;;  %v11096_v25 = vperm.slane %v4945_v43, %v7065_v5  ;;  %5725 = vrot.lane.b32.xlu0 %v11085_v32, %s6960_s23 }
 0x589   : > { %v11121_v37 = vperm.slane %v5247_v42, %v7470_v0  ;;  %v4787_v12 = vsel %vm522_vm4, 0.0, %v4786_v53  ;;  %v5439_v3 = vsel %vm522_vm4, %v5438_v31, %v10695_v10  ;;  %v11128_v43 = vperm.slane %v5023_v34, %v7470_v0 }
 0x58a   : > { %v4706_v18 = vsel %vm804_vm7, %v4705_v26, %v6700_v13  ;;  %v4699_v48 = vsel %vm804_vm7, %v4698_v29, %v6699_v58  ;;  %v11111_v58 = vperm.slane %v5397_v7, %v7470_v0  ;;  %v4979_v14 = vsel %vm522_vm4, %v4978_v38, %v11096_v25  ;;  %v11136_v13 = vpop.permute.xlu2 %6727 }
 0x58b   : > { %v4707_v24 = vsel %vm806_vm8, %v4706_v18, %v6720_v35  ;;  %v4700_v61 = vsel %vm806_vm8, %v4699_v48, %v6719_v54  ;;  %6837 = vrot.lane.b32.xlu1 %v6836_v55, %s6955_s18  ;;  %v11132_v29 = vperm.slane %v4979_v14, %v7470_v0  ;;  %v4788_v42 = vrot.slane %v10810_v9, 4  ;;  %v12173_v14 = vld [vmem:[#allocation25_spill] sm:$0xff] }
 0x58c   : > { %v4708_v26 = vsel %vm808_vm9, %v4707_v24, %v6705_v33  ;;  %v4701_v5 = vsel %vm808_vm9, %v4700_v61, %v6704_v23  ;;  %v12170_v24 = vrot.slane %v10389_v40, 4  ;;  %v4843_v23 = vsel %vm522_vm4, 0.0, %v4842_v63  ;;  %v12171_v61 = vld [vmem:[#allocation15_spill] sm:$0xff] }
 0x58d   : > { %v4844_v11 = vrot.slane %v10813_v27, 4  ;;  %v6851_v10 = vpack.i.bf16 %v11111_v58, %v11121_v37  ;;  %v11141_v31 = vperm.slane %v5439_v3, %v7470_v0  ;;  %v4816_v54 = vrot.slane %v10738_v46, 4  ;;  %v12175_v3 = vld [vmem:[#allocation16_spill] sm:$0xff] }
 0x58e   : > { %v5233_v33 = vsel %vm522_vm4, %v12170_v24, %v10501_v41  ;;  %v5382_v41 = vrot.slane %v10642_v30, 4  ;;  %v4760_v9 = vrot.slane %v10741_v56, 4  ;;  %v11152_v27 = vperm.slane %v5189_v62, %v7470_v0  ;;  %v12172_v56 = vld [vmem:[#allocation13_spill] sm:$0xff] }
 0x58f   : > { %v6723_v7 = vpop.permute.xlu0 %6722  ;;  %v6861_v18 = vpack.i.bf16 %v4843_v23, %v4787_v12  ;;  %v5644_v53 = vrot.slane %v10841_v19, 4  ;;  %6852 = vrot.lane.b32.xlu2 %v6851_v10, %s6960_s23  ;;  %v5046_v48 = vrot.slane %v11128_v43, 4  ;;  %v4790_v63 = vrot.slane %v10711_v49, 4 }
 0x590   : > { %v6725_v38 = vunpack.i.h.bf16 %v6723_v7  ;;  %v6724_v40 = vunpack.i.l.bf16 %v6723_v7  ;;  %v5602_v55 = vrot.slane %v11001_v1, 4  ;;  %v6846_v46 = vpack.i.bf16 %v11152_v27, %v11132_v29  ;;  %v12174_v1 = vld [vmem:[#allocation7_spill] sm:$0xff] }
 0x591   : > { %6862 = vrot.lane.b32.xlu0 %v6861_v18, %s6959_s22  ;;  %v4846_v62 = vrot.slane %v12172_v56, 4  ;;  %v4789_v19 = vsel %vm522_vm4, 0.0, %v4788_v42  ;;  %v4845_v34 = vsel %vm522_vm4, 0.0, %v4844_v11  ;;  %v11169_v49 = vsel %vm522_vm4, 0.0, %v4790_v63 }
 0x592   : > { %v11144_v35 = vsel %vm810_vm10, %v4701_v5, %v6724_v40  ;;  %v11147_v30 = vsel %vm810_vm10, %v4708_v26, %v6725_v38  ;;  %v5383_v26 = vsel %vm522_vm4, %v5382_v41, %v12171_v61  ;;  %v5462_v5 = vrot.slane %v11141_v31, 4  ;;  %v11187_v18 = vpop.permute.xlu2 %6737 }
 0x593   : > { %v5645_v24 = vsel %vm522_vm4, %v5644_v53, %v12173_v14  ;;  %6847 = vrot.lane.b32.xlu1 %v6846_v46, %s6955_s18  ;;  %v4761_v12 = vsel %vm522_vm4, %v4760_v9, %v12174_v1  ;;  %v4817_v7 = vsel %vm522_vm4, %v4816_v54, %v12175_v3  ;;  %v4847_v23 = vsel %vm522_vm4, 0.0, %v4846_v62  ;;  %v12176_v3 = vld [vmem:[#allocation30_spill] sm:$0xff] }
 0x594   : > { %v5176_v38 = vrot.slane %v10967_v44, 4  ;;  %v5047_v40 = vsel %vm522_vm4, 0.0, %v5046_v48  ;;  %v11182_v41 = vperm.slane %v5383_v26, %v7470_v0  ;;  %v6871_v42 = vpack.i.bf16 %v4847_v23, %v11169_v49 }
 0x595   : > { %v6866_v11 = vpack.i.bf16 %v4845_v34, %v4789_v19  ;;  %v5603_v10 = vsel %vm522_vm4, %v10790_v45, %v5602_v55  ;;  %v5463_v9 = vsel %vm522_vm4, 0.0, %v5462_v5  ;;  %v11191_v54 = vperm.slane %v4761_v12, %v7470_v0 }
 0x596   : > { %v11194_v44 = vperm.slane %v4817_v7, %v7470_v0  ;;  %v11197_v53 = vperm.slane %v5233_v33, %v7470_v0  ;;  %v6876_v48 = vpack.i.bf16 %v5047_v40, %v5463_v9  ;;  %v11200_v63 = vperm.slane %v5645_v24, %v7470_v0 }
 0x597   : > { %6867 = vrot.lane.b32.xlu2 %v6866_v11, %s6958_s21  ;;  %v5406_v45 = vrot.slane %v11182_v41, 4  ;;  %v11206_v61 = vsel %vm522_vm4, %v5176_v38, %v10505_v39  ;;  %v11209_v26 = vperm.slane %v5603_v10, %v7470_v0  ;;  %v5588_v33 = vrot.slane %v10779_v36, 4 }
 0x598   : > { %v4784_v55 = vrot.slane %v11191_v54, 4  ;;  %v4840_v46 = vrot.slane %v11194_v44, 4  ;;  %v5256_v56 = vrot.slane %v11197_v53, 4  ;;  %v5668_v62 = vrot.slane %v11200_v63, 4 }
 0x599   : > { %6877 = vrot.lane.b32.xlu0 %v6876_v48, %s6954_s17  ;;  %v5407_v39 = vsel %vm522_vm4, 0.0, %v5406_v45  ;;  %v5589_v19 = vsel %vm522_vm4, %v5588_v33, %v10948_v16  ;;  %v5670_v7 = vrot.slane %v12176_v3, 4  ;;  %v5190_v23 = vrot.slane %v11075_v50, 4 }
 0x59a   : > { %v4785_v34 = vsel %vm522_vm4, 0.0, %v4784_v55  ;;  %v4841_v36 = vsel %vm522_vm4, 0.0, %v4840_v46  ;;  %v5257_v5 = vsel %vm522_vm4, 0.0, %v5256_v56  ;;  %v5669_v49 = vsel %vm522_vm4, 0.0, %v5668_v62  ;;  %v11230_v1 = vpop.permute.xlu2 %6747  ;;  %v12178_v55 = vld [vmem:[#allocation34_spill] sm:$0xff] }
 0x59b   : > { %5697 = vrot.lane.b32.xlu1 %v11209_v26, %s6960_s23  ;;  %v6881_v14 = vpack.i.bf16 %v5407_v39, %v5257_v5  ;;  %v11227_v24 = vperm.slane %v5589_v19, %v7470_v0  ;;  %v6856_v12 = vpack.i.bf16 %v4841_v36, %v4785_v34  ;;  %v5408_v38 = vrot.slane %v10924_v20, 4 }
 0x59c   : > { %v4966_v40 = vrot.slane %v10936_v21, 4  ;;  %v5258_v10 = vrot.slane %v10942_v6, 4  ;;  %v11243_v9 = vsel %vm522_vm4, %v11057_v22, %v5190_v23  ;;  %v5671_v48 = vsel %vm522_vm4, 0.0, %v5670_v7  ;;  %v12177_v21 = vld [vmem:[#allocation36_spill] sm:$0xff] }
 0x59d   : > { %v5612_v16 = vrot.slane %v11227_v24, 4  ;;  %v5050_v45 = vrot.slane %v10939_v52, 4  ;;  %v5052_v50 = vrot.slane %v10981_v17, 4  ;;  %v5468_v20 = vrot.slane %v11004_v8, 4 }
 0x59e   : > { %v5048_v33 = vrot.slane %v12177_v21, 4  ;;  %v5464_v6 = vrot.slane %v12178_v55, 4  ;;  %v5409_v22 = vsel %vm522_vm4, 0.0, %v5408_v38  ;;  %v5466_v56 = vrot.slane %v10955_v60, 4 }
 0x59f   : > { %5705 = vrot.lane.b32.xlu2 %v5669_v49, %s6954_s17  ;;  %v5613_v11 = vsel %vm522_vm4, 0.0, %v5612_v16  ;;  %v11256_v62 = vsel %vm522_vm4, 0.0, %v5052_v50  ;;  %v11259_v52 = vsel %vm522_vm4, 0.0, %v5468_v20  ;;  %v4967_v19 = vsel %vm522_vm4, %v4966_v40, %v10905_v57  ;;  %v12180_v16 = vld [vmem:[#allocation26_spill] sm:$0xff] }
 0x5a0   : > { %v6916_v34 = vpack.i.bf16 %v11256_v62, %v11259_v52  ;;  %v5259_v36 = vsel %vm522_vm4, 0.0, %v5258_v10  ;;  %v5051_v60 = vsel %vm522_vm4, 0.0, %v5050_v45  ;;  %v5049_v7 = vsel %vm522_vm4, 0.0, %v5048_v33 }
 0x5a1   : > { %6882 = vrot.lane.b32.xlu0 %v6881_v14, %s6954_s17  ;;  %v12179_v14 = vld [vmem:[#allocation19_spill] sm:$0xff]  ;;  %v6896_v3 = vpack.i.bf16 %v5409_v22, %v5259_v36  ;;  %v5467_v57 = vsel %vm522_vm4, 0.0, %v5466_v56  ;;  %v11277_v40 = vperm.slane %v4967_v19, %v7470_v0  ;;  %v5465_v45 = vsel %vm522_vm4, 0.0, %v5464_v6 }
 0x5a2   : > { %v6901_v10 = vpack.i.bf16 %v5051_v60, %v5467_v57  ;;  %v11286_v50 = vperm.slane %v11206_v61, %v7470_v0  ;;  %v6886_v20 = vpack.i.bf16 %v5049_v7, %v5465_v45  ;;  %v5202_v21 = vrot.slane %v11009_v15, 4  ;;  %v12181_v7 = vld [vmem:[#allocation54_spill] sm:$0xff] }
 0x5a3   : > { %6857 = vrot.lane.b32.xlu1 %v6856_v12, %s6954_s17  ;;  %v4990_v55 = vrot.slane %v11277_v40, 4  ;;  %v5614_v6 = vrot.slane %v11040_v28, 4  ;;  %v4994_v15 = vrot.slane %v11132_v29, 4  ;;  %v5410_v19 = vrot.slane %v11082_v2, 4 }
 0x5a4   : > { %v5203_v61 = vsel %vm522_vm4, 0.0, %v5202_v21  ;;  %v5204_v60 = vrot.slane %v11152_v27, 4  ;;  %v4980_v29 = vrot.slane %v11096_v25, 4  ;;  %v6739_v21 = vunpack.i.l.bf16 %v11187_v18 }
 0x5a5   : > { %v4991_v56 = vsel %vm522_vm4, 0.0, %v4990_v55 }
 0x5a6   : > { %v5205_v2 = vsel %vm522_vm4, 0.0, %v5204_v60  ;;  %v4981_v57 = vsel %vm522_vm4, %v12181_v7, %v4980_v29  ;;  %v12182_v29 = vld [vmem:[#allocation4_spill] sm:$0xff] }
 0x5a7   : > { %5677 = vrot.lane.b32.xlu2 %v5613_v11, %s6954_s17  ;;  %v11279_v11 = vpop.permute.xlu1 %6742 }
 0x5a8   : > { %v6763_v46 = vpop.permute.xlu2 %6762 }
 0x5a9   : > { %5713 = vrot.lane.b32.xlu0 %v5671_v48, %s6959_s22  ;;  %v6765_v17 = vunpack.i.h.bf16 %v6763_v46  ;;  %v6764_v8 = vunpack.i.l.bf16 %v6763_v46  ;;  %v4992_v48 = vrot.slane %v10991_v59, 4  ;;  %v5200_v46 = vrot.slane %v11286_v50, 4 }
 0x5aa   : > { %v6733_v39 = vpop.permute.xlu0 %6732 }
 0x5ab   : > { %6872 = vrot.lane.b32.xlu1 %v6871_v42, %s6957_s20  ;;  %v6735_v5 = vunpack.i.h.bf16 %v6733_v39  ;;  %v6734_v49 = vunpack.i.l.bf16 %v6733_v39  ;;  %v4285_v12 = vsel %vm802_vm6, %v12179_v14, %v6765_v17  ;;  %v4278_v42 = vsel %vm802_vm6, %v12180_v16, %v6764_v8 }
 0x5ac   : > { %v4993_v59 = vsel %vm522_vm4, 0.0, %v4992_v48  ;;  %v5201_v8 = vsel %vm522_vm4, 0.0, %v5200_v46  ;;  %v5615_v39 = vsel %vm522_vm4, 0.0, %v5614_v6  ;;  %v4995_v14 = vsel %vm522_vm4, 0.0, %v4994_v15 }
 0x5ad   : > { %v4286_v23 = vsel %vm804_vm7, %v4285_v12, %v6735_v5  ;;  %v4279_v38 = vsel %vm804_vm7, %v4278_v42, %v6734_v49  ;;  %v6906_v22 = vpack.i.bf16 %v5203_v61, %v4993_v59  ;;  %v6891_v36 = vpack.i.bf16 %v5201_v8, %v4991_v56 }
 0x5ae   : > { %v5260_v49 = vrot.slane %v11079_v4, 4  ;;  %v5411_v12 = vsel %vm522_vm4, 0.0, %v5410_v19  ;;  %v6921_v16 = vpack.i.bf16 %v5205_v2, %v4995_v14  ;;  %v5672_v42 = vrot.slane %v10951_v51, 4 }
 0x5af   : > { %6897 = vrot.lane.b32.xlu2 %v6896_v3, %s6959_s22  ;;  %v6740_v51 = vunpack.i.h.bf16 %v11187_v18  ;;  %v5199_v6 = vperm.slane %v11243_v9, %v7470_v0  ;;  %v5616_v61 = vrot.slane %v11071_v47, 4 }
 0x5b0   : > { %v11290_v33 = vpop.permute.xlu2 %6777  ;;  %v5261_v3 = vsel %vm522_vm4, 0.0, %v5260_v49  ;;  %v5673_v25 = vsel %vm522_vm4, 0.0, %v5672_v42  ;;  %v6749_v49 = vunpack.i.l.bf16 %v11230_v1 }
 0x5b1   : > { %6902 = vrot.lane.b32.xlu0 %v6901_v10, %s6958_s21  ;;  %v6911_v27 = vpack.i.bf16 %v5411_v12, %v5261_v3  ;;  %v5617_v15 = vsel %vm522_vm4, 0.0, %v5616_v61  ;;  %v12183_v12 = vld [vmem:[#allocation20_spill] sm:$0xff] }
 0x5b3   : > { %6887 = vrot.lane.b32.xlu1 %v6886_v20, %s6959_s22  ;;  %v11307_v28 = vpop.permute.xlu0 %6757  ;;  %v4989_v20 = vperm.slane %v4981_v57, %v7470_v0  ;;  %v5262_v0 = vrot.slane %v11121_v37, 4  ;;  %v6750_v37 = vunpack.i.h.bf16 %v11230_v1  ;;  %v5206_v57 = vrot.slane %v5199_v6, 4 }
 0x5b5   : > { %v11299_v17 = vpop.permute.xlu1 %6752  ;;  %v6926_v18 = vpack.i.bf16 %v5199_v6, %v4989_v20  ;;  %v5263_v60 = vsel %vm522_vm4, 0.0, %v5262_v0  ;;  %v4996_v7 = vrot.slane %v4989_v20, 4 }
 0x5b7   : > { %6907 = vrot.lane.b32.xlu2 %v6906_v22, %s6959_s22 }
 0x5b8   : > { %v11310_v5 = vpop.permute.xlu2 %6792 }
 0x5b9   : > { %5685 = vrot.lane.b32.xlu0 %v5615_v39, %s6959_s22  ;;  %v5830_v39 = vld [vmem:[%s11693_s6] sm:$0xf] }
 0x5bb   : > { %6892 = vrot.lane.b32.xlu1 %v6891_v36, %s6954_s17  ;;  %v5674_v36 = vrot.slane %v11085_v32, 4 }
 0x5bd   : > { %v11331_v55 = vpop.permute.xlu0 %6772  ;;  %v5675_v3 = vsel %vm522_vm4, 0.0, %v5674_v36 }
 0x5bf   : > { %6922 = vrot.lane.b32.xlu2 %v6921_v16, %s6958_s21  ;;  %v6768_v4 = vpop.permute.xlu1 %6767 }
 0x5c0   : > { %v11325_v10 = vpop.permute.xlu2 %6802  ;;  %v6770_v48 = vunpack.i.h.bf16 %v6768_v4  ;;  %v6769_v45 = vunpack.i.l.bf16 %v6768_v4  ;;  %v5618_v4 = vrot.slane %v11209_v26, 4  ;;  %v5838_v26 = vld [vmem:[%s11694_s7] sm:$0xf] }
 0x5c1   : > { %6912 = vrot.lane.b32.xlu0 %v6911_v27, %s6958_s21 }
 0x5c2   : > { %v4280_v59 = vsel %vm806_vm8, %v4279_v38, %v6769_v45  ;;  %v4287_v46 = vsel %vm806_vm8, %v4286_v23, %v6770_v48  ;;  %v5412_v38 = vrot.slane %v11111_v58, 4  ;;  %v4997_v48 = vsel %vm522_vm4, 0.0, %v4996_v7 }
 0x5c3   : > { %5721 = vrot.lane.b32.xlu1 %v5673_v25, %s6958_s21  ;;  %v11339_v22 = vsel %vm808_vm9, %v4280_v59, %v6739_v21  ;;  %v11342_v56 = vsel %vm808_vm9, %v4287_v46, %v6740_v51  ;;  %v5207_v45 = vsel %vm522_vm4, 0.0, %v5206_v57  ;;  %v5619_v51 = vsel %vm522_vm4, 0.0, %v5618_v4 }
 0x5c4   : > { %v5413_v47 = vsel %vm522_vm4, 0.0, %v5412_v38  ;;  %v6936_v21 = vpack.i.bf16 %v5207_v45, %v4997_v48 }
 0x5c5   : > { %v6788_v9 = vpop.permute.xlu0 %6787  ;;  %v6931_v62 = vpack.i.bf16 %v5413_v47, %v5263_v60 }
 0x5c6   : > { %v6790_v52 = vunpack.i.h.bf16 %v6788_v9 }
 0x5c7   : > { %6927 = vrot.lane.b32.xlu2 %v6926_v18, %s6960_s23 }
 0x5c9   : > { %5693 = vrot.lane.b32.xlu0 %v5617_v15, %s6958_s21  ;;  %v11348_v23 = vpop.permute.xlu2 %5709 }
 0x5cb   : > { %6917 = vrot.lane.b32.xlu1 %v6916_v34, %s6957_s20  ;;  %v6789_v34 = vunpack.i.l.bf16 %v6788_v9 }
 0x5cd   : > { %v6783_v8 = vpop.permute.xlu1 %6782 }
 0x5ce   : > { %v6785_v58 = vunpack.i.h.bf16 %v6783_v8  ;;  %v6784_v19 = vunpack.i.l.bf16 %v6783_v8  ;;  %v11397_v6 = vpop.permute.xlu0 %6812 }
 0x5cf   : > { %5833 = vperm.xlu2 %6559, %v5830_v39  }
 0x5d0   : > { %v4491_v14 = vsel %vm802_vm6, %v12182_v29, %v6785_v58  ;;  %v4484_v2 = vsel %vm802_vm6, %v12183_v12, %v6784_v19 }
 0x5d1   : > { %v4485_v16 = vsel %vm804_vm7, %v4484_v2, %v6749_v49  ;;  %v4492_v32 = vsel %vm804_vm7, %v4491_v14, %v6750_v37  ;;  %6932 = vrot.lane.b32.xlu0 %v6931_v62, %s6957_s20  ;;  %v11377_v27 = vpop.permute.xlu2 %5717 }
 0x5d2   : > { %v11371_v42 = vsel %vm806_vm8, %v4485_v16, %v6789_v34  ;;  %v11374_v1 = vsel %vm806_vm8, %v4492_v32, %v6790_v52  ;;  %v6804_v34 = vunpack.i.l.bf16 %v11325_v10 }
 0x5d3   : > { %5729 = vrot.lane.b32.xlu1 %v5675_v3, %s6957_s20 }
 0x5d5   : > { %v11381_v25 = vpop.permute.xlu1 %6797 }
 0x5d9   : > { %5701 = vrot.lane.b32.xlu0 %v5619_v51, %s6957_s20  ;;  %v11387_v59 = vpop.permute.xlu2 %6842 }
 0x5db   : > { %6937 = vrot.lane.b32.xlu1 %v6936_v21, %s6957_s20 }
 0x5dd   : > { %v11390_v20 = vpop.permute.xlu1 %6807 }
 0x5e1   : > { %5841 = vperm.xlu0 %6560, %v5838_v26   ;;  %v11395_v46 = vpop.permute.xlu2 %5689 }
 0x5e2   : > { %12184 = vst [vmem:[#allocation60_spill] sm:$0xff] %v11395_v46 }
 0x5e5   : > { %v11399_v61 = vpop.permute.xlu1 %6817 }
 0x5e9   : > { %v11401_v18 = vpop.permute.xlu2 %6852 }
 0x5ea   : > { %v6823_v15 = vpop.permute.xlu0 %6822 }
 0x5eb   : > { %v6825_v12 = vunpack.i.h.bf16 %v6823_v15  ;;  %v6824_v2 = vunpack.i.l.bf16 %v6823_v15 }
 0x5ed   : > { %v11403_v38 = vpop.permute.xlu1 %6827 }
 0x5f1   : > { %v11407_v47 = vpop.permute.xlu2 %6867 }
 0x5f2   : > { %v11405_v0 = vpop.permute.xlu0 %6832 }
 0x5f5   : > { %v11409_v9 = vpop.permute.xlu1 %5681 }
 0x5f9   : > { %v5706_v58 = vpop.permute.xlu2 %5705 }
 0x5fa   : > { %v11411_v8 = vpop.permute.xlu0 %5725  ;;  %v5739_v16 = vsel %vm802_vm6, %v11200_v63, %v5706_v58 }
 0x5fd   : > { %v6838_v39 = vpop.permute.xlu1 %6837 }
 0x5fe   : > { %v6840_v45 = vunpack.i.h.bf16 %v6838_v39  ;;  %v6839_v51 = vunpack.i.l.bf16 %v6838_v39 }
 0x601   : > { %v11415_v60 = vpop.permute.xlu2 %5677 }
 0x603   : > { %v6863_v19 = vpop.permute.xlu0 %6862 }
 0x604   : > { %v6864_v15 = vunpack.i.l.bf16 %v6863_v19 }
 0x605   : > { %v11413_v36 = vpop.permute.xlu1 %6847 }
 0x609   : > { %v6898_v62 = vpop.permute.xlu2 %6897 }
 0x60a   : > { %v6900_v32 = vunpack.i.h.bf16 %v6898_v62  ;;  %v6899_v7 = vunpack.i.l.bf16 %v6898_v62 }
 0x60b   : > { %v6878_v37 = vpop.permute.xlu0 %6877 }
 0x60d   : > { %v11417_v49 = vpop.permute.xlu1 %5697 }
 0x60e   : > { %12185 = vst [vmem:[#allocation57_spill] sm:$0xff] %v11417_v49 }
 0x613   : > { %v6883_v52 = vpop.permute.xlu0 %6882 }
 0x614   : > { %v6885_v29 = vunpack.i.h.bf16 %v6883_v52  ;;  %v6884_v14 = vunpack.i.l.bf16 %v6883_v52 }
 0x615   : > { %v6858_v3 = vpop.permute.xlu1 %6857 }
 0x616   : > { %v6859_v57 = vunpack.i.l.bf16 %v6858_v3  ;;  %v5526_v4 = vsel %vm802_vm6, %v11182_v41, %v6885_v29  ;;  %v5327_v48 = vsel %vm802_vm6, %v11197_v53, %v6884_v14  ;;  %v5740_v29 = vsel %vm804_vm7, %v5739_v16, %v11348_v23  ;;  %v12188_v16 = vld [vmem:[#allocation10_spill] sm:$0xff] }
 0x617   : > { %v5328_v21 = vsel %vm804_vm7, %v5327_v48, %v6824_v2  ;;  %v5527_v26 = vsel %vm804_vm7, %v5526_v4, %v6825_v12  ;;  %v6805_v4 = vunpack.i.h.bf16 %v11325_v10  ;;  %v12187_v48 = vld [vmem:[#allocation23_spill] sm:$0xff] }
 0x618   : > { %v4904_v63 = vsel %vm802_vm6, %v11191_v54, %v6859_v57  ;;  %v5329_v58 = vsel %vm806_vm8, %v5328_v21, %v6899_v7  ;;  %v5528_v62 = vsel %vm806_vm8, %v5527_v26, %v6900_v32  ;;  %v6860_v54 = vunpack.i.h.bf16 %v6858_v3 }
 0x619   : > { %v4905_v52 = vsel %vm804_vm7, %v4904_v63, %v6804_v34  ;;  %v11434_v41 = vsel %vm808_vm9, %v5329_v58, %v6839_v51  ;;  %v11437_v53 = vsel %vm808_vm9, %v5528_v62, %v6840_v45  ;;  %v6880_v32 = vunpack.i.h.bf16 %v6878_v37 }
 0x61a   : > { %12186 = vst [vmem:[#allocation58_spill] sm:$0xff] %v11437_v53  ;;  %v11440_v39 = vsel %vm806_vm8, %v4905_v52, %v6864_v15  ;;  %v6879_v7 = vunpack.i.l.bf16 %v6878_v37  ;;  %v4911_v57 = vsel %vm802_vm6, %v11194_v44, %v6860_v54  ;;  %v6865_v37 = vunpack.i.h.bf16 %v6863_v19 }
 0x61b   : > { %v5714_v14 = vpop.permute.xlu0 %5713  ;;  %v4912_v21 = vsel %vm804_vm7, %v4911_v57, %v6805_v4  ;;  %v5117_v44 = vsel %vm802_vm6, %v11128_v43, %v6880_v32  ;;  %v6730_v58 = vunpack.i.h.bf16 %v11136_v13  ;;  %v6820_v62 = vunpack.i.h.bf16 %v11399_v61 }
 0x61c   : > { %v5741_v12 = vsel %vm806_vm8, %v5740_v29, %v5714_v14  ;;  %v5533_v10 = vsel %vm802_vm6, %v11141_v31, %v6879_v7  ;;  %v6819_v52 = vunpack.i.l.bf16 %v11399_v61  ;;  %v6810_v14 = vunpack.i.h.bf16 %v11390_v20 }
 0x61d   : > { %v11445_v2 = vpop.permute.xlu1 %6872  ;;  %v11449_v34 = vsel %vm808_vm9, %v5741_v12, %v11377_v27  ;;  %v12189_v27 = vld [vmem:[#allocation31_spill] sm:$0xff]  ;;  %v4913_v54 = vsel %vm806_vm8, %v4912_v21, %v6865_v37  ;;  %v6830_v43 = vunpack.i.h.bf16 %v11403_v38  ;;  %v6829_v32 = vunpack.i.l.bf16 %v11403_v38 }
 0x61e   : > { %v5118_v31 = vsel %vm804_vm7, %v5117_v44, %v6820_v62  ;;  %v5534_v7 = vsel %vm804_vm7, %v5533_v10, %v6819_v52  ;;  %v6870_v4 = vunpack.i.h.bf16 %v11407_v47  ;;  %v6815_v21 = vunpack.i.h.bf16 %v11397_v6  ;;  %v12190_v44 = vld [vmem:[#allocation5_spill] sm:$0xff] }
 0x61f   : > { %v4914_v38 = vsel %vm808_vm9, %v4913_v54, %v6810_v14  ;;  %v6710_v10 = vunpack.i.h.bf16 %v12190_v44  ;;  %v12191_v52 = vld [vmem:[#allocation9_spill] sm:$0xff]  ;;  %v6780_v14 = vunpack.i.h.bf16 %v11290_v33  ;;  %v6775_v51 = vunpack.i.h.bf16 %v11331_v55 }
 0x620   : > { %v6695_v63 = vunpack.i.h.bf16 %v12191_v52  ;;  %v6834_v45 = vunpack.i.l.bf16 %v11405_v0 }
 0x621   : > { %v4710_v46 = vsel %vm812_vm11, %v11147_v30, %v6710_v10  ;;  %v12194_v10 = vld [vmem:[#allocation35_spill] sm:$0xff] }
 0x623   : > { %v11459_v26 = vpop.permute.xlu0 %6902 }
 0x625   : > { %v6888_v29 = vpop.permute.xlu1 %6887 }
 0x626   : > { %v6890_v19 = vunpack.i.h.bf16 %v6888_v29  ;;  %v6889_v12 = vunpack.i.l.bf16 %v6888_v29 }
 0x628   : > { %v5119_v61 = vsel %vm806_vm8, %v5118_v31, %v6890_v19  ;;  %v5535_v23 = vsel %vm806_vm8, %v5534_v7, %v6889_v12  ;;  %v4915_v19 = vsel %vm810_vm10, %v4914_v38, %v6870_v4  ;;  %v6745_v31 = vunpack.i.h.bf16 %v11279_v11  ;;  %v6908_v4 = vpop.permute.xlu2 %6907 }
 0x629   : > { %v11482_v37 = vsel %vm808_vm9, %v5119_v61, %v6830_v43  ;;  %v11485_v29 = vsel %vm808_vm9, %v5535_v23, %v6829_v32  ;;  %v11498_v23 = vsel %vm812_vm11, %v4915_v19, %v6815_v21  ;;  %v6760_v32 = vunpack.i.h.bf16 %v11307_v28 }
 0x62a   : > { %v6795_v38 = vunpack.i.h.bf16 %v11310_v5  ;;  %v6755_v12 = vunpack.i.h.bf16 %v11299_v17  ;;  %v6754_v43 = vunpack.i.l.bf16 %v11299_v17  ;;  %v6800_v21 = vunpack.i.h.bf16 %v11381_v25 }
 0x62b   : > { %v11495_v7 = vpop.permute.xlu0 %5685  ;;  %v6835_v19 = vunpack.i.h.bf16 %v11405_v0  ;;  %v6849_v61 = vunpack.i.l.bf16 %v11413_v36  ;;  %v6910_v15 = vunpack.i.h.bf16 %v6908_v4  ;;  %v6909_v3 = vunpack.i.l.bf16 %v6908_v4 }
 0x62c   : > { %12192 = vst [vmem:[#allocation53_spill] sm:$0xff] %v11495_v7  ;;  %v4494_v53 = vsel %vm808_vm9, %v11374_v1, %v6755_v12  ;;  %v4711_v7 = vsel %vm814_vm12, %v4710_v46, %v6730_v58  ;;  %v4289_v46 = vsel %vm810_vm10, %v11342_v56, %v6775_v51  ;;  %v6814_v58 = vunpack.i.l.bf16 %v11397_v6 }
 0x62d   : > { %v6893_v57 = vpop.permute.xlu1 %6892  ;;  %v4495_v0 = vsel %vm810_vm10, %v4494_v53, %v6795_v38  ;;  %v12195_v38 = vunpack.i.h.bf16 %v12189_v27  ;;  %v4290_v56 = vsel %vm812_vm11, %v4289_v46, %v6745_v31  ;;  %v12196_v51 = vunpack.i.h.bf16 %v12187_v48 }
 0x62e   : > { %v6895_v62 = vunpack.i.h.bf16 %v6893_v57  ;;  %v6894_v54 = vunpack.i.l.bf16 %v6893_v57  ;;  %v4291_v31 = vsel %vm814_vm12, %v4290_v56, %v6780_v14 }
 0x630   : > { %v5320_v49 = vsel %vm802_vm6, %v11286_v50, %v6895_v62  ;;  %v5110_v17 = vsel %vm802_vm6, %v11277_v40, %v6894_v54  ;;  %v4496_v62 = vsel %vm812_vm11, %v4495_v0, %v6760_v32  ;;  %v5755_v40 = vrot.slane %v4711_v7, 4 }
 0x631   : > { %v5111_v57 = vsel %vm804_vm7, %v5110_v17, %v6834_v45  ;;  %v5321_v50 = vsel %vm804_vm7, %v5320_v49, %v6835_v19  ;;  %v4497_v30 = vsel %vm814_vm12, %v4496_v62, %v6800_v21  ;;  %v12193_v45 = vunpack.i.h.bf16 %v12188_v16 }
 0x632   : > { %v5112_v4 = vsel %vm806_vm8, %v5111_v57, %v6909_v3  ;;  %v6794_v49 = vunpack.i.l.bf16 %v11310_v5  ;;  %v6774_v3 = vunpack.i.l.bf16 %v11331_v55  ;;  %v11542_v12 = vsel %vm5770_vm14, %v4497_v30, %v5755_v40 }
 0x633   : > { %v11526_v54 = vpop.permute.xlu0 %6912  ;;  %v11529_v1 = vsel %vm808_vm9, %v5112_v4, %v6849_v61  ;;  %v4078_v53 = vsel %vm808_vm9, %v12194_v10, %v12193_v45  ;;  %v6799_v7 = vunpack.i.l.bf16 %v11381_v25  ;;  %v5322_v32 = vsel %vm806_vm8, %v5321_v50, %v6910_v15  ;;  %v12201_v10 = vld [vmem:[#allocation33_spill] sm:$0xff] }
 0x634   : > { %v4079_v21 = vsel %vm810_vm10, %v4078_v53, %v12195_v38  ;;  %v6809_v5 = vunpack.i.l.bf16 %v11390_v20  ;;  %v6850_v55 = vunpack.i.h.bf16 %v11413_v36  ;;  %v6869_v15 = vunpack.i.l.bf16 %v11407_v47 }
 0x635   : > { %v5722_v61 = vpop.permute.xlu1 %5721  ;;  %v4080_v25 = vsel %vm812_vm11, %v4079_v21, %v12196_v51  ;;  %v6845_v20 = vunpack.i.h.bf16 %v11387_v59  ;;  %v5749_v57 = vrot.slane %v4291_v31, 4  ;;  %v6875_v0 = vunpack.i.h.bf16 %v11445_v2 }
 0x636   : > { %v5743_v6 = vsel %vm810_vm10, %v11449_v34, %v5722_v61  ;;  %v4081_v17 = vsel %vm814_vm12, %v4080_v25, %v6695_v63  ;;  %v11564_v36 = vsel %vm808_vm9, %v5322_v32, %v6850_v55  ;;  %v4907_v34 = vsel %vm808_vm9, %v11440_v39, %v6809_v5 }
 0x637   : > { %v5744_v19 = vsel %vm812_vm11, %v5743_v6, %v11411_v8  ;;  %v4908_v47 = vsel %vm810_vm10, %v4907_v34, %v6869_v15  ;;  %v4487_v8 = vsel %vm808_vm9, %v11371_v42, %v6754_v43  ;;  %v12197_v63 = vunpack.i.l.bf16 %v12190_v44 }
 0x638   : > { %v6905_v4 = vunpack.i.h.bf16 %v11459_v26  ;;  %v11578_v50 = vsel %vm5770_vm14, %v4081_v17, %v5749_v57  ;;  %v11581_v62 = vsel %vm812_vm11, %v4908_v47, %v6814_v58  ;;  %v4488_v39 = vsel %vm810_vm10, %v4487_v8, %v6794_v49  ;;  %v12207_v47 = vld [vmem:[#allocation53_spill] sm:$0xff] }
 0x639   : > { %v4703_v14 = vsel %vm812_vm11, %v11144_v35, %v12197_v63  ;;  %v6904_v40 = vunpack.i.l.bf16 %v11459_v26  ;;  %v12198_v42 = vunpack.i.l.bf16 %v11307_v28  ;;  %v12199_v43 = vunpack.i.l.bf16 %v11136_v13 }
 0x63a   : > { %v12200_v45 = vunpack.i.l.bf16 %v12188_v16  ;;  %v5121_v46 = vsel %vm810_vm10, %v11482_v37, %v6905_v4  ;;  %v12202_v58 = vunpack.i.l.bf16 %v12189_v27  ;;  %v6914_v32 = vunpack.i.l.bf16 %v11526_v54 }
 0x63b   : > { %v5694_v30 = vpop.permute.xlu0 %5693  ;;  %v4489_v44 = vsel %vm812_vm11, %v4488_v39, %v12198_v42  ;;  %v4704_v35 = vsel %vm814_vm12, %v4703_v14, %v12199_v43  ;;  %v5537_v13 = vsel %vm810_vm10, %v11485_v29, %v6904_v40  ;;  %v12203_v16 = vunpack.i.l.bf16 %v12187_v48 }
 0x63c   : > { %v4071_v53 = vsel %vm808_vm9, %v12201_v10, %v12200_v45  ;;  %v4490_v49 = vsel %vm814_vm12, %v4489_v44, %v6799_v7  ;;  %v5754_v26 = vrot.slane %v4704_v35, 4  ;;  %v4282_v37 = vsel %vm810_vm10, %v11339_v22, %v6774_v3  ;;  %v6923_v3 = vpop.permute.xlu2 %6922  ;;  %v12209_v44 = vld [vmem:[#allocation58_spill] sm:$0xff] }
 0x63d   : > { %v4072_v28 = vsel %vm810_vm10, %v4071_v53, %v12202_v58  ;;  %v6918_v61 = vpop.permute.xlu1 %6917  ;;  %v12204_v27 = vunpack.i.l.bf16 %v12191_v52  ;;  %v6844_v29 = vunpack.i.l.bf16 %v11387_v59  ;;  %v5122_v55 = vsel %vm812_vm11, %v5121_v46, %v6845_v20 }
 0x63e   : > { %v4073_v38 = vsel %vm812_vm11, %v4072_v28, %v12203_v16  ;;  %v6920_v21 = vunpack.i.h.bf16 %v6918_v61  ;;  %v6919_v7 = vunpack.i.l.bf16 %v6918_v61  ;;  %v11610_v56 = vsel %vm5770_vm14, %v4490_v49, %v5754_v26  ;;  %v12210_v49 = vld [vmem:[#allocation57_spill] sm:$0xff] }
 0x63f   : > { %v4074_v5 = vsel %vm814_vm12, %v4073_v38, %v12204_v27  ;;  %v12205_v48 = vunpack.i.l.bf16 %v11279_v11  ;;  %v5732_v22 = vsel %vm802_vm6, %v11227_v24, %v11415_v60  ;;  %v12206_v25 = vunpack.i.l.bf16 %v11290_v33  ;;  %v5779_v38 = vld [vmem:[%s11692_s5] sm:$0xf] }
 0x640   : > { %v5123_v51 = vsel %vm814_vm12, %v5122_v55, %v6920_v21  ;;  %v5538_v15 = vsel %vm812_vm11, %v5537_v13, %v6844_v29  ;;  %v5331_v11 = vsel %vm810_vm10, %v11434_v41, %v6914_v32  ;;  %v4917_v20 = vsel %vm814_vm12, %v11498_v23, %v6875_v0 }
 0x641   : > { %v4283_v6 = vsel %vm812_vm11, %v4282_v37, %v12205_v48  ;;  %v5761_v59 = vrot.slane %v5123_v51, 4  ;;  %v5539_v31 = vsel %vm814_vm12, %v5538_v15, %v6919_v7  ;;  %v6854_v24 = vunpack.i.l.bf16 %v11401_v18 }
 0x642   : > { %v4284_v52 = vsel %vm814_vm12, %v4283_v6, %v12206_v25  ;;  %v5733_v60 = vsel %vm804_vm7, %v5732_v22, %v11409_v9  ;;  %v6915_v41 = vunpack.i.h.bf16 %v11526_v54  ;;  %v5767_v23 = vrot.slane %v5539_v31, 4  ;;  %v12208_v9 = vld [vmem:[#allocation60_spill] sm:$0xff] }
 0x643   : > { %v5748_v17 = vrot.slane %v4284_v52, 4  ;;  %v6933_v33 = vpop.permute.xlu0 %6932  ;;  %v5776_v57 = vsel %vm5770_vm14, %v4917_v20, %v5761_v59  ;;  %v5734_v8 = vsel %vm806_vm8, %v5733_v60, %v12207_v47  ;;  %v5332_v4 = vsel %vm812_vm11, %v5331_v11, %v6854_v24 }
 0x644   : > { %v6934_v63 = vunpack.i.l.bf16 %v6933_v33  ;;  %v5735_v40 = vsel %vm808_vm9, %v5734_v8, %v12208_v9  ;;  %v5530_v43 = vsel %vm810_vm10, %v12209_v44, %v6915_v41  ;;  %v6935_v35 = vunpack.i.h.bf16 %v6933_v33  ;;  %v6928_v53 = vpop.permute.xlu2 %6927 }
 0x645   : > { %v5771_v34 = vsel %vm5770_vm14, %v4074_v5, %v5748_v17  ;;  %v5730_v14 = vpop.permute.xlu1 %5729  ;;  %v5736_v54 = vsel %vm810_vm10, %v5735_v40, %v5694_v30  ;;  %v6855_v45 = vunpack.i.h.bf16 %v11401_v18  ;;  %v6925_v10 = vunpack.i.h.bf16 %v6923_v3 }
 0x646   : > { %v5745_v0 = vsel %vm814_vm12, %v5744_v19, %v5730_v14  ;;  %v5333_v39 = vsel %vm814_vm12, %v5332_v4, %v6934_v63  ;;  %v6924_v19 = vunpack.i.l.bf16 %v6923_v3  ;;  %v5737_v26 = vsel %vm812_vm11, %v5736_v54, %v12210_v49 }
 0x647   : > { %5936 = vmatpush.msk.msra.mxu3 %vm5770_vm14, %v5745_v0  ;;  %v5778_v42 = vsel %vm5770_vm14, %v5333_v39, %v5767_v23  ;;  %v5531_v58 = vsel %vm812_vm11, %v5530_v43, %v6855_v45  ;;  %v5324_v30 = vsel %vm810_vm10, %v11564_v36, %v6925_v10  ;;  %v6930_v32 = vunpack.i.h.bf16 %v6928_v53 }
 0x648   : > { %v5114_v28 = vsel %vm810_vm10, %v11529_v1, %v6924_v19  ;;  %v5532_v18 = vsel %vm814_vm12, %v5531_v58, %v6935_v35  ;;  %v6929_v61 = vunpack.i.l.bf16 %v6928_v53  ;;  %v6874_v1 = vunpack.i.l.bf16 %v11445_v2 }
 0x649   : > { %5822 = vmatpush.msra.mxu3 %v5778_v42  ;;  %v5325_v7 = vsel %vm812_vm11, %v5324_v30, %v6930_v32  ;;  %v5766_v27 = vrot.slane %v5532_v18, 4 }
 0x64a   : > { %v5115_v36 = vsel %vm812_vm11, %v5114_v28, %v6929_v61  ;;  %v4910_v2 = vsel %vm814_vm12, %v11581_v62, %v6874_v1 }
 0x64b   : > { %5823 = vmatpush.msra.mxu3 %v5776_v57  ;;  %v5702_v46 = vpop.permute.xlu0 %5701 }
 0x64c   : > { %v5738_v13 = vsel %vm814_vm12, %v5737_v26, %v5702_v46  ;;  %v5834_v6 = vpop.permute.xlu2 %5833 }
 0x64d   : > { %v6938_v16 = vpop.permute.xlu1 %6937  ;;  %5824 = vmatpush.msra.mxu3 %v11542_v12  ;;  %5934 = vmatpush.msk.msra.mxu2 %vm5770_vm14, %v5738_v13 }
 0x64e   : > { %v6940_v37 = vunpack.i.h.bf16 %v6938_v16  ;;  %v6939_v21 = vunpack.i.l.bf16 %v6938_v16 }
 0x64f   : > { %5825 = vmatpush.msra.mxu3 %v11578_v50 }
 0x650   : > { %v5116_v12 = vsel %vm814_vm12, %v5115_v36, %v6939_v21  ;;  %5937 = vmatmul.msk.f32.vlgmr.msra.gmra.mxu3 %vm5780_vm15, %v5779_v38  ;;  %v5326_v5 = vsel %vm814_vm12, %v5325_v7, %v6940_v37 }
 0x651   : > { %v5777_v29 = vsel %vm5770_vm14, %v5326_v5, %v5766_v27  ;;  %v5760_v55 = vrot.slane %v5116_v12, 4 }
 0x652   : > { %5802 = vmatpush.msra.mxu2 %v5777_v29 }
 0x653   : > { %v5775_v48 = vsel %vm5770_vm14, %v4910_v2, %v5760_v55  ;;  %v5842_v3 = vpop.permute.xlu0 %5841 }
 0x654   : > { %5803 = vmatpush.msra.mxu2 %v5775_v48 }
 0x656   : > { %5804 = vmatpush.msra.mxu2 %v11610_v56 }
 0x658   : > { %5805 = vmatpush.msra.mxu2 %v5771_v34 }
 0x659   : > { %5935 = vmatmul.msk.f32.vlgmr.msra.gmra.mxu2 %vm5780_vm15, %v5779_v38 }
 0x6d3   : > { %v5827_v50 = vpop.f32.mrf.mxu3 }
 0x6d4   : > { %v5837_v22 = vmul.f32 %v5834_v6, %v5827_v50 }
 0x6d6   : > { %v5845_v51 = vadd.f32 %v5842_v3, %v5837_v22 }
 0x6d8   : > { %v5847_v52 = vmax.f32 %v5845_v51, 0.0 }
 0x6da   : > { %v5850_v17 = vrot.slane %v5847_v52, 4 }
 0x6dc   : > { %v5807_v25 = vpop.f32.mrf.mxu2 }
 0x6dd   : > { %v5836_v15 = vmul.f32 %v5834_v6, %v5807_v25 }
 0x6df   : > { %v5844_v59 = vadd.f32 %v5842_v3, %v5836_v15 }
 0x6e1   : > { %v5846_v62 = vmax.f32 %v5844_v59, 0.0 }
 0x6e3   : > { %v5851_v56 = vsel %vm5770_vm14, %v5846_v62, %v5850_v17 }
 0x6e4   : > { %5853 = vst [vmem:[%s325_s19] sm:$0xff] %v5851_v56 }
 0x6e5 PF: > { %s18_s27 = sadd.s32 1, %s6947_s27  }
 0x6e6   : > { %p15_p4 = scmp.ge.s32.totalorder %s18_s27, 4  }
 0x6e8   :  { %17 = sbr.rel (!%p15_p4) target bundleno = 1 (0x1), region = 85 }

</bundles_post_ra>
